<compile_context>
chip_gen: v7x
topology: tpu7x:2x2x1
jax: 0.10.0
libtpu: 0.0.40
codegen_flags: <defaults>
</compile_context>

<pallas_src>
import jax
import jax.numpy as jnp
from jax import lax
from jax.experimental import pallas as pl
from jax.experimental.pallas import tpu as pltpu

# ------------------------- model / aux-loss config -------------------------
HIDDEN = 32          # model_config.STATE_ENCODER.hidden_size
ACTION_DIM = 4       # action_space.shape[0]
NUM_CLASSES = 6      # semantic-map classes for the prediction monitor
MAP_HW = 48          # cross-entropy target resolution (48, 48)
LANES = 128          # lane width of the fused head / output slab
ALPHA_PRED = 1.0     # PREDICTION_MONITOR.alpha
ALPHA_PROG = 1.0     # PROGRESS_MONITOR.alpha

ROW_CHUNK = 16                      # 48 = 3 * 16; bounds CE temps to chunk size
_N_CHUNKS = MAP_HW // ROW_CHUNK

# output-slab lane assignment
_L_PLOSS = ACTION_DIM               # lane 4: pred_loss * mask   (per row)
_L_GLOSS = ACTION_DIM + 1           # lane 5: prog_loss * mask   (per row)
_L_MASK = ACTION_DIM + 2            # lane 6: mask               (per row)


# ------------------------------ fused kernel --------------------------------
def fused_kernel(feat_ref, w_ref, b_ref, prog_gt_ref, logits_ref, target_ref,
                 mask_ref, out_ref):
    bt = feat_ref.shape[0]

    # ---- heads: one lane-padded bf16 MXU matmul (pred lanes 0:4, prog @ 4)
    y = jnp.dot(feat_ref[...], w_ref[...],
                preferred_element_type=jnp.float32) + b_ref[...]     # [bt,128]

    # progress head: tanh(Linear(features)); F.mse_loss(...).mean(-1)
    prog = jnp.tanh(y[:, ACTION_DIM:ACTION_DIM + 1])                 # [bt, 1]
    diff = prog - prog_gt_ref[...]
    prog_loss = diff * diff                       # mean over last axis of size 1

    # ---- prediction monitor: cross_entropy(pred_map, target).mean([1, 2])
    # Row-chunked so f32 temporaries stay chunk-sized; the class axis is a
    # leading (untiled) dim so its reduction is plain VPU passes (no XLU).
    def ce_chunk(ci, acc):
        r0 = pl.multiple_of(ci * ROW_CHUNK, ROW_CHUNK)
        xs = logits_ref[:, :, pl.ds(r0, ROW_CHUNK), :].astype(jnp.float32)
        ts = target_ref[:, pl.ds(r0, ROW_CHUNK), :]          # [bt, RC, 48] i32
        m = xs[:, 0]
        for c in range(1, NUM_CLASSES):
            m = jnp.maximum(m, xs[:, c])
        s = jnp.zeros_like(m)
        picked = jnp.zeros_like(m)                            # select-gather of
        for c in range(NUM_CLASSES):                          # target-class logit
            xc = xs[:, c]
            s = s + jnp.exp(xc - m)
            picked = picked + jnp.where(ts == c, xc, 0.0)
        ce = (m + jnp.log(s)) - picked                        # [bt, RC, 48]
        part = jnp.sum(ce, axis=2)                            # [bt, RC]
        return acc + jnp.sum(part, axis=1, keepdims=True)     # [bt, 1]

    ce_sum = lax.fori_loop(0, _N_CHUNKS, ce_chunk,
                           jnp.zeros((bt, 1), jnp.float32), unroll=True)
    pred_loss = ce_sum * (1.0 / (MAP_HW * MAP_HW))            # [bt, 1]
    # TODO(synk): F.cross_entropy's ignore_index=-100 not handled (targets here
    #             come from a valid-class semantic map).

    # ---- lane-dense output slab: lanes 0:4 = pred, lanes 4..6 = per-row
    #      masked aux components; the alpha-weighted reduce happens outside.
    msk = mask_ref[...]                                       # [bt, 1] 0/1
    lane = lax.broadcasted_iota(jnp.int32, (bt, LANES), 1)
    slab = jnp.where(lane < ACTION_DIM, y, 0.0)
    slab = jnp.where(lane == _L_PLOSS, pred_loss * msk, slab)
    slab = jnp.where(lane == _L_GLOSS, prog_loss * msk, slab)
    slab = jnp.where(lane == _L_MASK, msk, slab)
    out_ref[...] = slab


# ------------------------------ wrappers ------------------------------------
def prepare_head_params(w_mu, b_mu, w_prog, b_prog):
    """One-time fuse + transpose + lane-pad of the two head weights.

    PyTorch nn.Linear weights are [out, in]; we build a [HIDDEN, 128] matrix
    with cols 0:ACTION_DIM = W_mu.T, col ACTION_DIM = W_prog.T, rest zero.
    Weights are stored bf16 (MXU native); the bias stays f32.
    """
    w = jnp.zeros((HIDDEN, LANES), jnp.float32)
    w = w.at[:, :ACTION_DIM].set(w_mu.T.astype(jnp.float32))
    w = w.at[:, ACTION_DIM:ACTION_DIM + 1].set(w_prog.T.astype(jnp.float32))
    b = jnp.zeros((1, LANES), jnp.float32)
    b = b.at[0, :ACTION_DIM].set(b_mu.astype(jnp.float32))
    b = b.at[0, ACTION_DIM].set(b_prog.astype(jnp.float32)[0])
    return w.astype(jnp.bfloat16), b


def base_policy_forward(features, pred_map, observations, weights,
                        fused_w, fused_b, *, b_tile=64):
    """Mirrors BasePolicy.forward: returns (pred, aux_loss).

    b_tile: batch tile (multiple of 8). Default 64 is sized for v7x's 64 MiB
    VMEM / 32 MiB scoped default; v5e/v6e (128 MiB) can use 2-4x larger tiles.
    """
    # --- glue: F.interpolate(gt, size=(48,48), mode='nearest').long()
    gt = observations["gt_semantic_map"]                      # [B, Hin, Win] int
    Hin, Win = gt.shape[1], gt.shape[2]
    if Hin % MAP_HW == 0 and Win % MAP_HW == 0:
        # exact integer ratio -> nearest == static strided slice (no gathers)
        target_map = gt[:, ::Hin // MAP_HW, ::Win // MAP_HW]
    else:
        # truncating index math == mode='nearest' (floor), not 'nearest-exact'
        ridx = (jnp.arange(MAP_HW) * (Hin / MAP_HW)).astype(jnp.int32)
        cidx = (jnp.arange(MAP_HW) * (Win / MAP_HW)).astype(jnp.int32)
        target_map = gt[:, ridx][:, :, cidx]
    target_map = target_map.astype(jnp.int32)                 # [B, 48, 48]

    B, C, H, W = pred_map.shape
    assert H == MAP_HW and W == MAP_HW and C == NUM_CLASSES
    feat = features.astype(jnp.bfloat16)                      # backbone-native dtype
    logits = pred_map                                         # native [B,C,48,48]; no reshape/relayout
    progress = observations["progress"].astype(jnp.float32)   # [B, 1]
    aux_mask = (weights > 0).reshape(B, 1).astype(jnp.float32)

    # --- batch tiling (bounds VMEM; "parallel" shards tiles across v7x's 2 TCs)
    bt = min(b_tile, B)
    if bt < B and (bt % 8 != 0 or B % bt != 0):
        bt = B          # fallback: single whole-array tile (keeps alignment simple)
    grid = (B // bt,)

    HWp = H * W
    cost = pl.CostEstimate(
        flops=2 * B * HIDDEN * LANES + 7 * B * C * HWp + 4 * B * HWp,
        transcendentals=B * C * HWp + B * HWp + B,            # exp, log, tanh
        bytes_accessed=(feat.nbytes + fused_w.nbytes + fused_b.nbytes
                        + progress.nbytes + logits.nbytes + target_map.nbytes
                        + aux_mask.nbytes + B * LANES * 4),
    )

    slab = pl.pallas_call(
        fused_kernel,
        out_shape=jax.ShapeDtypeStruct((B, LANES), jnp.float32),
        grid=grid,
        in_specs=[
            pl.BlockSpec((bt, HIDDEN), lambda i: (i, 0)),
            pl.BlockSpec((HIDDEN, LANES), lambda i: (0, 0)),     # resident weights
            pl.BlockSpec((1, LANES), lambda i: (0, 0)),
            pl.BlockSpec((bt, 1), lambda i: (i, 0)),
            pl.BlockSpec((bt, C, H, W), lambda i: (i, 0, 0, 0)),
            pl.BlockSpec((bt, H, W), lambda i: (i, 0, 0)),
            pl.BlockSpec((bt, 1), lambda i: (i, 0)),
        ],
        out_specs=pl.BlockSpec((bt, LANES), lambda i: (i, 0)),
        compiler_params=pltpu.CompilerParams(
            dimension_semantics=("parallel",)),
        cost_estimate=cost,
    )(feat, fused_w, fused_b, progress, logits, target_map, aux_mask)

    # --- AuxLosses.reduce: sum_k alpha_k * masked_select(loss_k, mask).mean()
    # NOTE: all weights <= 0 divides by 0 -> NaN, same as PyTorch's
    # masked_select().mean() on an empty mask.
    pred = slab[:, :ACTION_DIM]
    denom = jnp.sum(slab[:, _L_MASK])
    aux_loss = (ALPHA_PRED * jnp.sum(slab[:, _L_PLOSS])
                + ALPHA_PROG * jnp.sum(slab[:, _L_GLOSS])) / denom
    return pred, aux_loss


# ------------------------------- main ---------------------------------------
if __name__ == "__main__":
    key = jax.random.PRNGKey(0)
    kf, kmap, kgt, kprog, k1, k2, k3, k4 = jax.random.split(key, 8)

    B = 16
    # "net" outputs (MGMapNet backbone is external; see TODO above), shipped in
    # backbone-native bf16 -> half the dominant HBM->VMEM bytes.
    features = jax.random.normal(kf, (B, HIDDEN), jnp.float32).astype(jnp.bfloat16)
    pred_map = jax.random.normal(kmap, (B, NUM_CLASSES, MAP_HW, MAP_HW),
                                 jnp.float32).astype(jnp.bfloat16)

    observations = {
        # gt_semantic_map at 96x96 (integer labels) -> nearest-downsampled to 48x48
        "gt_semantic_map": jax.random.randint(kgt, (B, 96, 96), 0, NUM_CLASSES),
        "progress": jax.random.uniform(kprog, (B, 1), dtype=jnp.float32),
    }
    # some episodes inactive -> exercises the masked AuxLosses.reduce
    weights = jnp.where(jnp.arange(B) % 4 == 3, 0.0, 1.0).reshape(B, 1)

    # deterministic parameter init (PyTorch nn.Linear weight shape: [out, in])
    w_mu = 0.05 * jax.random.normal(k1, (ACTION_DIM, HIDDEN), jnp.float32)
    b_mu = 0.01 * jax.random.normal(k2, (ACTION_DIM,), jnp.float32)
    w_prog = 0.05 * jax.random.normal(k3, (1, HIDDEN), jnp.float32)
    b_prog = 0.01 * jax.random.normal(k4, (1,), jnp.float32)

    fused_w, fused_b = prepare_head_params(w_mu, b_mu, w_prog, b_prog)

    # b_tile=8 -> grid=(2,) so the batch grid / parallel semantics are exercised
    pred, aux_loss = base_policy_forward(features, pred_map, observations,
                                         weights, fused_w, fused_b, b_tile=8)
    jax.block_until_ready((pred, aux_loss))

    # ---- pure-JAX reference check -------------------------------------------
    f32 = jnp.float32
    feat_f = features.astype(f32)                           # bf16-rounded values
    w_mu_r = w_mu.astype(jnp.bfloat16).astype(f32)          # kernel stores bf16 W
    w_pr_r = w_prog.astype(jnp.bfloat16).astype(f32)

    ref_pred = feat_f @ w_mu_r.T + b_mu                                  # [B,4]

    ref_prog = jnp.tanh(feat_f @ w_pr_r.T + b_prog)
    ref_prog_loss = jnp.mean((ref_prog - observations["progress"]) ** 2, axis=-1)

    tgt = observations["gt_semantic_map"][:, ::2, ::2].astype(jnp.int32)
    logp = jax.nn.log_softmax(pred_map.astype(f32), axis=1)
    ref_ce = -jnp.take_along_axis(logp, tgt[:, None, :, :], axis=1)[:, 0]
    ref_pred_loss = jnp.mean(ref_ce, axis=(1, 2))

    mask_f = (weights > 0).reshape(-1).astype(f32)
    ref_aux = (ALPHA_PRED * jnp.sum(ref_pred_loss * mask_f)
               + ALPHA_PROG * jnp.sum(ref_prog_loss * mask_f)) / jnp.sum(mask_f)

    assert pred.shape == (B, ACTION_DIM) and aux_loss.shape == ()
    assert jnp.allclose(pred, ref_pred, atol=1e-4, rtol=1e-4), "pred mismatch"
    assert jnp.allclose(aux_loss, ref_aux, atol=1e-4, rtol=1e-4), "aux mismatch"
    assert bool(jnp.isfinite(aux_loss))

    print("KERNEL_OK")
</pallas_src>

<mosaic_0001>
module attributes {stable_mosaic.version = 11 : i64} {
  func.func @fused_kernel(%arg0: i32, %arg1: memref<8x32xbf16, #tpu.memory_space<vmem>>, %arg2: memref<32x128xbf16, #tpu.memory_space<vmem>>, %arg3: memref<1x128xf32, #tpu.memory_space<vmem>>, %arg4: memref<8x1xf32, #tpu.memory_space<vmem>>, %arg5: memref<8x6x48x48xbf16, #tpu.memory_space<vmem>>, %arg6: memref<8x48x48xi32, #tpu.memory_space<vmem>>, %arg7: memref<8x1xf32, #tpu.memory_space<vmem>>, %arg8: memref<8x128xf32, #tpu.memory_space<vmem>>) attributes {dimension_semantics = [#tpu.dimension_semantics<parallel>], iteration_bounds = array<i64: 2>, scalar_prefetch = 0 : i64, scratch_operands = 0 : i64, tpu.core_type = #tpu.core_type<tc>, window_params = [{transform_indices = @transform_0, window_bounds = array<i64: 8, 32>}, {pipeline_mode = #tpu.pipeline_mode<synchronous>, transform_indices = @transform_1, window_bounds = array<i64: 32, 128>}, {pipeline_mode = #tpu.pipeline_mode<synchronous>, transform_indices = @transform_2, window_bounds = array<i64: 1, 128>}, {transform_indices = @transform_3, window_bounds = array<i64: 8, 1>}, {transform_indices = @transform_4, window_bounds = array<i64: 8, 6, 48, 48>}, {transform_indices = @transform_5, window_bounds = array<i64: 8, 48, 48>}, {transform_indices = @transform_6, window_bounds = array<i64: 8, 1>}, {transform_indices = @transform_7, window_bounds = array<i64: 8, 128>}]} {
    %c0 = arith.constant 0 : index
    %c0_0 = arith.constant 0 : index
    %0 = vector.load %arg1[%c0, %c0_0] : memref<8x32xbf16, #tpu.memory_space<vmem>>, vector<8x32xbf16>
    %c0_1 = arith.constant 0 : index
    %c0_2 = arith.constant 0 : index
    %1 = vector.load %arg2[%c0_1, %c0_2] : memref<32x128xbf16, #tpu.memory_space<vmem>>, vector<32x128xbf16>
    %cst = arith.constant dense<0.000000e+00> : vector<8x128xf32>
    %2 = tpu.matmul %0, %1, %cst {dimension_numbers = #tpu.dot_dimension_numbers<[1], [0], [0], [1], [0, 0, 1, 1], [], []>} : vector<8x32xbf16>, vector<32x128xbf16>, vector<8x128xf32> -> vector<8x128xf32>
    %c0_3 = arith.constant 0 : index
    %c0_4 = arith.constant 0 : index
    %3 = vector.load %arg3[%c0_3, %c0_4] : memref<1x128xf32, #tpu.memory_space<vmem>>, vector<1x128xf32>
    %4 = vector.broadcast %3 : vector<1x128xf32> to vector<8x128xf32>
    %5 = arith.addf %2, %4 : vector<8x128xf32>
    %6 = vector.extract_strided_slice %5 {offsets = [0, 4], sizes = [8, 1], strides = [1, 1]} : vector<8x128xf32> to vector<8x1xf32>
    %7 = math.tanh %6 : vector<8x1xf32>
    %c0_5 = arith.constant 0 : index
    %c0_6 = arith.constant 0 : index
    %8 = vector.load %arg4[%c0_5, %c0_6] : memref<8x1xf32, #tpu.memory_space<vmem>>, vector<8x1xf32>
    %9 = arith.subf %7, %8 : vector<8x1xf32>
    %10 = arith.mulf %9, %9 : vector<8x1xf32>
    %cst_7 = arith.constant 0.000000e+00 : f32
    %11 = vector.broadcast %cst_7 : f32 to vector<8x1xf32>
    %c0_i32 = arith.constant 0 : i32
    %c16_i32 = arith.constant 16 : i32
    %12 = arith.muli %c0_i32, %c16_i32 : i32
    %13 = tpu.assume_multiple %12, 16 : i32
    %c0_8 = arith.constant 0 : index
    %c0_9 = arith.constant 0 : index
    %14 = arith.index_cast %13 : i32 to index
    %c0_10 = arith.constant 0 : index
    %15 = vector.load %arg5[%c0_8, %c0_9, %14, %c0_10] : memref<8x6x48x48xbf16, #tpu.memory_space<vmem>>, vector<8x6x16x48xbf16>
    %16 = arith.extf %15 : vector<8x6x16x48xbf16> to vector<8x6x16x48xf32>
    %c0_11 = arith.constant 0 : index
    %17 = arith.index_cast %13 : i32 to index
    %c0_12 = arith.constant 0 : index
    %18 = vector.load %arg6[%c0_11, %17, %c0_12] : memref<8x48x48xi32, #tpu.memory_space<vmem>>, vector<8x16x48xi32>
    %19 = vector.extract_strided_slice %16 {offsets = [0, 0, 0, 0], sizes = [8, 1, 16, 48], strides = [1, 1, 1, 1]} : vector<8x6x16x48xf32> to vector<8x1x16x48xf32>
    %20 = vector.shape_cast %19 : vector<8x1x16x48xf32> to vector<8x16x48xf32>
    %21 = vector.extract_strided_slice %16 {offsets = [0, 1, 0, 0], sizes = [8, 1, 16, 48], strides = [1, 1, 1, 1]} : vector<8x6x16x48xf32> to vector<8x1x16x48xf32>
    %22 = vector.shape_cast %21 : vector<8x1x16x48xf32> to vector<8x16x48xf32>
    %23 = arith.maximumf %20, %22 : vector<8x16x48xf32>
    %24 = vector.extract_strided_slice %16 {offsets = [0, 2, 0, 0], sizes = [8, 1, 16, 48], strides = [1, 1, 1, 1]} : vector<8x6x16x48xf32> to vector<8x1x16x48xf32>
    %25 = vector.shape_cast %24 : vector<8x1x16x48xf32> to vector<8x16x48xf32>
    %26 = arith.maximumf %23, %25 : vector<8x16x48xf32>
    %27 = vector.extract_strided_slice %16 {offsets = [0, 3, 0, 0], sizes = [8, 1, 16, 48], strides = [1, 1, 1, 1]} : vector<8x6x16x48xf32> to vector<8x1x16x48xf32>
    %28 = vector.shape_cast %27 : vector<8x1x16x48xf32> to vector<8x16x48xf32>
    %29 = arith.maximumf %26, %28 : vector<8x16x48xf32>
    %30 = vector.extract_strided_slice %16 {offsets = [0, 4, 0, 0], sizes = [8, 1, 16, 48], strides = [1, 1, 1, 1]} : vector<8x6x16x48xf32> to vector<8x1x16x48xf32>
    %31 = vector.shape_cast %30 : vector<8x1x16x48xf32> to vector<8x16x48xf32>
    %32 = arith.maximumf %29, %31 : vector<8x16x48xf32>
    %33 = vector.extract_strided_slice %16 {offsets = [0, 5, 0, 0], sizes = [8, 1, 16, 48], strides = [1, 1, 1, 1]} : vector<8x6x16x48xf32> to vector<8x1x16x48xf32>
    %34 = vector.shape_cast %33 : vector<8x1x16x48xf32> to vector<8x16x48xf32>
    %35 = arith.maximumf %32, %34 : vector<8x16x48xf32>
    %cst_13 = arith.constant 0.000000e+00 : f32
    %36 = vector.broadcast %cst_13 : f32 to vector<8x16x48xf32>
    %cst_14 = arith.constant 0.000000e+00 : f32
    %37 = vector.broadcast %cst_14 : f32 to vector<8x16x48xf32>
    %38 = vector.extract_strided_slice %16 {offsets = [0, 0, 0, 0], sizes = [8, 1, 16, 48], strides = [1, 1, 1, 1]} : vector<8x6x16x48xf32> to vector<8x1x16x48xf32>
    %39 = vector.shape_cast %38 : vector<8x1x16x48xf32> to vector<8x16x48xf32>
    %40 = arith.subf %39, %35 : vector<8x16x48xf32>
    %41 = math.exp %40 : vector<8x16x48xf32>
    %42 = arith.addf %36, %41 : vector<8x16x48xf32>
    %c0_i32_15 = arith.constant 0 : i32
    %43 = vector.broadcast %c0_i32_15 : i32 to vector<8x16x48xi32>
    %44 = arith.cmpi eq, %18, %43 : vector<8x16x48xi32>
    %cst_16 = arith.constant 0.000000e+00 : f32
    %45 = vector.broadcast %cst_16 : f32 to vector<8x16x48xf32>
    %46 = arith.select %44, %39, %45 : vector<8x16x48xi1>, vector<8x16x48xf32>
    %47 = arith.addf %37, %46 : vector<8x16x48xf32>
    %48 = vector.extract_strided_slice %16 {offsets = [0, 1, 0, 0], sizes = [8, 1, 16, 48], strides = [1, 1, 1, 1]} : vector<8x6x16x48xf32> to vector<8x1x16x48xf32>
    %49 = vector.shape_cast %48 : vector<8x1x16x48xf32> to vector<8x16x48xf32>
    %50 = arith.subf %49, %35 : vector<8x16x48xf32>
    %51 = math.exp %50 : vector<8x16x48xf32>
    %52 = arith.addf %42, %51 : vector<8x16x48xf32>
    %c1_i32 = arith.constant 1 : i32
    %53 = vector.broadcast %c1_i32 : i32 to vector<8x16x48xi32>
    %54 = arith.cmpi eq, %18, %53 : vector<8x16x48xi32>
    %cst_17 = arith.constant 0.000000e+00 : f32
    %55 = vector.broadcast %cst_17 : f32 to vector<8x16x48xf32>
    %56 = arith.select %54, %49, %55 : vector<8x16x48xi1>, vector<8x16x48xf32>
    %57 = arith.addf %47, %56 : vector<8x16x48xf32>
    %58 = vector.extract_strided_slice %16 {offsets = [0, 2, 0, 0], sizes = [8, 1, 16, 48], strides = [1, 1, 1, 1]} : vector<8x6x16x48xf32> to vector<8x1x16x48xf32>
    %59 = vector.shape_cast %58 : vector<8x1x16x48xf32> to vector<8x16x48xf32>
    %60 = arith.subf %59, %35 : vector<8x16x48xf32>
    %61 = math.exp %60 : vector<8x16x48xf32>
    %62 = arith.addf %52, %61 : vector<8x16x48xf32>
    %c2_i32 = arith.constant 2 : i32
    %63 = vector.broadcast %c2_i32 : i32 to vector<8x16x48xi32>
    %64 = arith.cmpi eq, %18, %63 : vector<8x16x48xi32>
    %cst_18 = arith.constant 0.000000e+00 : f32
    %65 = vector.broadcast %cst_18 : f32 to vector<8x16x48xf32>
    %66 = arith.select %64, %59, %65 : vector<8x16x48xi1>, vector<8x16x48xf32>
    %67 = arith.addf %57, %66 : vector<8x16x48xf32>
    %68 = vector.extract_strided_slice %16 {offsets = [0, 3, 0, 0], sizes = [8, 1, 16, 48], strides = [1, 1, 1, 1]} : vector<8x6x16x48xf32> to vector<8x1x16x48xf32>
    %69 = vector.shape_cast %68 : vector<8x1x16x48xf32> to vector<8x16x48xf32>
    %70 = arith.subf %69, %35 : vector<8x16x48xf32>
    %71 = math.exp %70 : vector<8x16x48xf32>
    %72 = arith.addf %62, %71 : vector<8x16x48xf32>
    %c3_i32 = arith.constant 3 : i32
    %73 = vector.broadcast %c3_i32 : i32 to vector<8x16x48xi32>
    %74 = arith.cmpi eq, %18, %73 : vector<8x16x48xi32>
    %cst_19 = arith.constant 0.000000e+00 : f32
    %75 = vector.broadcast %cst_19 : f32 to vector<8x16x48xf32>
    %76 = arith.select %74, %69, %75 : vector<8x16x48xi1>, vector<8x16x48xf32>
    %77 = arith.addf %67, %76 : vector<8x16x48xf32>
    %78 = vector.extract_strided_slice %16 {offsets = [0, 4, 0, 0], sizes = [8, 1, 16, 48], strides = [1, 1, 1, 1]} : vector<8x6x16x48xf32> to vector<8x1x16x48xf32>
    %79 = vector.shape_cast %78 : vector<8x1x16x48xf32> to vector<8x16x48xf32>
    %80 = arith.subf %79, %35 : vector<8x16x48xf32>
    %81 = math.exp %80 : vector<8x16x48xf32>
    %82 = arith.addf %72, %81 : vector<8x16x48xf32>
    %c4_i32 = arith.constant 4 : i32
    %83 = vector.broadcast %c4_i32 : i32 to vector<8x16x48xi32>
    %84 = arith.cmpi eq, %18, %83 : vector<8x16x48xi32>
    %cst_20 = arith.constant 0.000000e+00 : f32
    %85 = vector.broadcast %cst_20 : f32 to vector<8x16x48xf32>
    %86 = arith.select %84, %79, %85 : vector<8x16x48xi1>, vector<8x16x48xf32>
    %87 = arith.addf %77, %86 : vector<8x16x48xf32>
    %88 = vector.extract_strided_slice %16 {offsets = [0, 5, 0, 0], sizes = [8, 1, 16, 48], strides = [1, 1, 1, 1]} : vector<8x6x16x48xf32> to vector<8x1x16x48xf32>
    %89 = vector.shape_cast %88 : vector<8x1x16x48xf32> to vector<8x16x48xf32>
    %90 = arith.subf %89, %35 : vector<8x16x48xf32>
    %91 = math.exp %90 : vector<8x16x48xf32>
    %92 = arith.addf %82, %91 : vector<8x16x48xf32>
    %c5_i32 = arith.constant 5 : i32
    %93 = vector.broadcast %c5_i32 : i32 to vector<8x16x48xi32>
    %94 = arith.cmpi eq, %18, %93 : vector<8x16x48xi32>
    %cst_21 = arith.constant 0.000000e+00 : f32
    %95 = vector.broadcast %cst_21 : f32 to vector<8x16x48xf32>
    %96 = arith.select %94, %89, %95 : vector<8x16x48xi1>, vector<8x16x48xf32>
    %97 = arith.addf %87, %96 : vector<8x16x48xf32>
    %98 = math.log %92 : vector<8x16x48xf32>
    %99 = arith.addf %35, %98 : vector<8x16x48xf32>
    %100 = arith.subf %99, %97 : vector<8x16x48xf32>
    %cst_22 = arith.constant dense<0.000000e+00> : vector<8x16xf32>
    %101 = vector.multi_reduction <add>, %100, %cst_22 [2] : vector<8x16x48xf32> to vector<8x16xf32>
    %cst_23 = arith.constant dense<0.000000e+00> : vector<8xf32>
    %102 = vector.multi_reduction <add>, %101, %cst_23 [1] : vector<8x16xf32> to vector<8xf32>
    %103 = vector.shape_cast %102 : vector<8xf32> to vector<8x1xf32>
    %104 = arith.addf %11, %103 : vector<8x1xf32>
    %c1_i32_24 = arith.constant 1 : i32
    %c16_i32_25 = arith.constant 16 : i32
    %105 = arith.muli %c1_i32_24, %c16_i32_25 : i32
    %106 = tpu.assume_multiple %105, 16 : i32
    %c0_26 = arith.constant 0 : index
    %c0_27 = arith.constant 0 : index
    %107 = arith.index_cast %106 : i32 to index
    %c0_28 = arith.constant 0 : index
    %108 = vector.load %arg5[%c0_26, %c0_27, %107, %c0_28] : memref<8x6x48x48xbf16, #tpu.memory_space<vmem>>, vector<8x6x16x48xbf16>
    %109 = arith.extf %108 : vector<8x6x16x48xbf16> to vector<8x6x16x48xf32>
    %c0_29 = arith.constant 0 : index
    %110 = arith.index_cast %106 : i32 to index
    %c0_30 = arith.constant 0 : index
    %111 = vector.load %arg6[%c0_29, %110, %c0_30] : memref<8x48x48xi32, #tpu.memory_space<vmem>>, vector<8x16x48xi32>
    %112 = vector.extract_strided_slice %109 {offsets = [0, 0, 0, 0], sizes = [8, 1, 16, 48], strides = [1, 1, 1, 1]} : vector<8x6x16x48xf32> to vector<8x1x16x48xf32>
    %113 = vector.shape_cast %112 : vector<8x1x16x48xf32> to vector<8x16x48xf32>
    %114 = vector.extract_strided_slice %109 {offsets = [0, 1, 0, 0], sizes = [8, 1, 16, 48], strides = [1, 1, 1, 1]} : vector<8x6x16x48xf32> to vector<8x1x16x48xf32>
    %115 = vector.shape_cast %114 : vector<8x1x16x48xf32> to vector<8x16x48xf32>
    %116 = arith.maximumf %113, %115 : vector<8x16x48xf32>
    %117 = vector.extract_strided_slice %109 {offsets = [0, 2, 0, 0], sizes = [8, 1, 16, 48], strides = [1, 1, 1, 1]} : vector<8x6x16x48xf32> to vector<8x1x16x48xf32>
    %118 = vector.shape_cast %117 : vector<8x1x16x48xf32> to vector<8x16x48xf32>
    %119 = arith.maximumf %116, %118 : vector<8x16x48xf32>
    %120 = vector.extract_strided_slice %109 {offsets = [0, 3, 0, 0], sizes = [8, 1, 16, 48], strides = [1, 1, 1, 1]} : vector<8x6x16x48xf32> to vector<8x1x16x48xf32>
    %121 = vector.shape_cast %120 : vector<8x1x16x48xf32> to vector<8x16x48xf32>
    %122 = arith.maximumf %119, %121 : vector<8x16x48xf32>
    %123 = vector.extract_strided_slice %109 {offsets = [0, 4, 0, 0], sizes = [8, 1, 16, 48], strides = [1, 1, 1, 1]} : vector<8x6x16x48xf32> to vector<8x1x16x48xf32>
    %124 = vector.shape_cast %123 : vector<8x1x16x48xf32> to vector<8x16x48xf32>
    %125 = arith.maximumf %122, %124 : vector<8x16x48xf32>
    %126 = vector.extract_strided_slice %109 {offsets = [0, 5, 0, 0], sizes = [8, 1, 16, 48], strides = [1, 1, 1, 1]} : vector<8x6x16x48xf32> to vector<8x1x16x48xf32>
    %127 = vector.shape_cast %126 : vector<8x1x16x48xf32> to vector<8x16x48xf32>
    %128 = arith.maximumf %125, %127 : vector<8x16x48xf32>
    %cst_31 = arith.constant 0.000000e+00 : f32
    %129 = vector.broadcast %cst_31 : f32 to vector<8x16x48xf32>
    %cst_32 = arith.constant 0.000000e+00 : f32
    %130 = vector.broadcast %cst_32 : f32 to vector<8x16x48xf32>
    %131 = vector.extract_strided_slice %109 {offsets = [0, 0, 0, 0], sizes = [8, 1, 16, 48], strides = [1, 1, 1, 1]} : vector<8x6x16x48xf32> to vector<8x1x16x48xf32>
    %132 = vector.shape_cast %131 : vector<8x1x16x48xf32> to vector<8x16x48xf32>
    %133 = arith.subf %132, %128 : vector<8x16x48xf32>
    %134 = math.exp %133 : vector<8x16x48xf32>
    %135 = arith.addf %129, %134 : vector<8x16x48xf32>
    %c0_i32_33 = arith.constant 0 : i32
    %136 = vector.broadcast %c0_i32_33 : i32 to vector<8x16x48xi32>
    %137 = arith.cmpi eq, %111, %136 : vector<8x16x48xi32>
    %cst_34 = arith.constant 0.000000e+00 : f32
    %138 = vector.broadcast %cst_34 : f32 to vector<8x16x48xf32>
    %139 = arith.select %137, %132, %138 : vector<8x16x48xi1>, vector<8x16x48xf32>
    %140 = arith.addf %130, %139 : vector<8x16x48xf32>
    %141 = vector.extract_strided_slice %109 {offsets = [0, 1, 0, 0], sizes = [8, 1, 16, 48], strides = [1, 1, 1, 1]} : vector<8x6x16x48xf32> to vector<8x1x16x48xf32>
    %142 = vector.shape_cast %141 : vector<8x1x16x48xf32> to vector<8x16x48xf32>
    %143 = arith.subf %142, %128 : vector<8x16x48xf32>
    %144 = math.exp %143 : vector<8x16x48xf32>
    %145 = arith.addf %135, %144 : vector<8x16x48xf32>
    %c1_i32_35 = arith.constant 1 : i32
    %146 = vector.broadcast %c1_i32_35 : i32 to vector<8x16x48xi32>
    %147 = arith.cmpi eq, %111, %146 : vector<8x16x48xi32>
    %cst_36 = arith.constant 0.000000e+00 : f32
    %148 = vector.broadcast %cst_36 : f32 to vector<8x16x48xf32>
    %149 = arith.select %147, %142, %148 : vector<8x16x48xi1>, vector<8x16x48xf32>
    %150 = arith.addf %140, %149 : vector<8x16x48xf32>
    %151 = vector.extract_strided_slice %109 {offsets = [0, 2, 0, 0], sizes = [8, 1, 16, 48], strides = [1, 1, 1, 1]} : vector<8x6x16x48xf32> to vector<8x1x16x48xf32>
    %152 = vector.shape_cast %151 : vector<8x1x16x48xf32> to vector<8x16x48xf32>
    %153 = arith.subf %152, %128 : vector<8x16x48xf32>
    %154 = math.exp %153 : vector<8x16x48xf32>
    %155 = arith.addf %145, %154 : vector<8x16x48xf32>
    %c2_i32_37 = arith.constant 2 : i32
    %156 = vector.broadcast %c2_i32_37 : i32 to vector<8x16x48xi32>
    %157 = arith.cmpi eq, %111, %156 : vector<8x16x48xi32>
    %cst_38 = arith.constant 0.000000e+00 : f32
    %158 = vector.broadcast %cst_38 : f32 to vector<8x16x48xf32>
    %159 = arith.select %157, %152, %158 : vector<8x16x48xi1>, vector<8x16x48xf32>
    %160 = arith.addf %150, %159 : vector<8x16x48xf32>
    %161 = vector.extract_strided_slice %109 {offsets = [0, 3, 0, 0], sizes = [8, 1, 16, 48], strides = [1, 1, 1, 1]} : vector<8x6x16x48xf32> to vector<8x1x16x48xf32>
    %162 = vector.shape_cast %161 : vector<8x1x16x48xf32> to vector<8x16x48xf32>
    %163 = arith.subf %162, %128 : vector<8x16x48xf32>
    %164 = math.exp %163 : vector<8x16x48xf32>
    %165 = arith.addf %155, %164 : vector<8x16x48xf32>
    %c3_i32_39 = arith.constant 3 : i32
    %166 = vector.broadcast %c3_i32_39 : i32 to vector<8x16x48xi32>
    %167 = arith.cmpi eq, %111, %166 : vector<8x16x48xi32>
    %cst_40 = arith.constant 0.000000e+00 : f32
    %168 = vector.broadcast %cst_40 : f32 to vector<8x16x48xf32>
    %169 = arith.select %167, %162, %168 : vector<8x16x48xi1>, vector<8x16x48xf32>
    %170 = arith.addf %160, %169 : vector<8x16x48xf32>
    %171 = vector.extract_strided_slice %109 {offsets = [0, 4, 0, 0], sizes = [8, 1, 16, 48], strides = [1, 1, 1, 1]} : vector<8x6x16x48xf32> to vector<8x1x16x48xf32>
    %172 = vector.shape_cast %171 : vector<8x1x16x48xf32> to vector<8x16x48xf32>
    %173 = arith.subf %172, %128 : vector<8x16x48xf32>
    %174 = math.exp %173 : vector<8x16x48xf32>
    %175 = arith.addf %165, %174 : vector<8x16x48xf32>
    %c4_i32_41 = arith.constant 4 : i32
    %176 = vector.broadcast %c4_i32_41 : i32 to vector<8x16x48xi32>
    %177 = arith.cmpi eq, %111, %176 : vector<8x16x48xi32>
    %cst_42 = arith.constant 0.000000e+00 : f32
    %178 = vector.broadcast %cst_42 : f32 to vector<8x16x48xf32>
    %179 = arith.select %177, %172, %178 : vector<8x16x48xi1>, vector<8x16x48xf32>
    %180 = arith.addf %170, %179 : vector<8x16x48xf32>
    %181 = vector.extract_strided_slice %109 {offsets = [0, 5, 0, 0], sizes = [8, 1, 16, 48], strides = [1, 1, 1, 1]} : vector<8x6x16x48xf32> to vector<8x1x16x48xf32>
    %182 = vector.shape_cast %181 : vector<8x1x16x48xf32> to vector<8x16x48xf32>
    %183 = arith.subf %182, %128 : vector<8x16x48xf32>
    %184 = math.exp %183 : vector<8x16x48xf32>
    %185 = arith.addf %175, %184 : vector<8x16x48xf32>
    %c5_i32_43 = arith.constant 5 : i32
    %186 = vector.broadcast %c5_i32_43 : i32 to vector<8x16x48xi32>
    %187 = arith.cmpi eq, %111, %186 : vector<8x16x48xi32>
    %cst_44 = arith.constant 0.000000e+00 : f32
    %188 = vector.broadcast %cst_44 : f32 to vector<8x16x48xf32>
    %189 = arith.select %187, %182, %188 : vector<8x16x48xi1>, vector<8x16x48xf32>
    %190 = arith.addf %180, %189 : vector<8x16x48xf32>
    %191 = math.log %185 : vector<8x16x48xf32>
    %192 = arith.addf %128, %191 : vector<8x16x48xf32>
    %193 = arith.subf %192, %190 : vector<8x16x48xf32>
    %cst_45 = arith.constant dense<0.000000e+00> : vector<8x16xf32>
    %194 = vector.multi_reduction <add>, %193, %cst_45 [2] : vector<8x16x48xf32> to vector<8x16xf32>
    %cst_46 = arith.constant dense<0.000000e+00> : vector<8xf32>
    %195 = vector.multi_reduction <add>, %194, %cst_46 [1] : vector<8x16xf32> to vector<8xf32>
    %196 = vector.shape_cast %195 : vector<8xf32> to vector<8x1xf32>
    %197 = arith.addf %104, %196 : vector<8x1xf32>
    %c2_i32_47 = arith.constant 2 : i32
    %c16_i32_48 = arith.constant 16 : i32
    %198 = arith.muli %c2_i32_47, %c16_i32_48 : i32
    %199 = tpu.assume_multiple %198, 16 : i32
    %c0_49 = arith.constant 0 : index
    %c0_50 = arith.constant 0 : index
    %200 = arith.index_cast %199 : i32 to index
    %c0_51 = arith.constant 0 : index
    %201 = vector.load %arg5[%c0_49, %c0_50, %200, %c0_51] : memref<8x6x48x48xbf16, #tpu.memory_space<vmem>>, vector<8x6x16x48xbf16>
    %202 = arith.extf %201 : vector<8x6x16x48xbf16> to vector<8x6x16x48xf32>
    %c0_52 = arith.constant 0 : index
    %203 = arith.index_cast %199 : i32 to index
    %c0_53 = arith.constant 0 : index
    %204 = vector.load %arg6[%c0_52, %203, %c0_53] : memref<8x48x48xi32, #tpu.memory_space<vmem>>, vector<8x16x48xi32>
    %205 = vector.extract_strided_slice %202 {offsets = [0, 0, 0, 0], sizes = [8, 1, 16, 48], strides = [1, 1, 1, 1]} : vector<8x6x16x48xf32> to vector<8x1x16x48xf32>
    %206 = vector.shape_cast %205 : vector<8x1x16x48xf32> to vector<8x16x48xf32>
    %207 = vector.extract_strided_slice %202 {offsets = [0, 1, 0, 0], sizes = [8, 1, 16, 48], strides = [1, 1, 1, 1]} : vector<8x6x16x48xf32> to vector<8x1x16x48xf32>
    %208 = vector.shape_cast %207 : vector<8x1x16x48xf32> to vector<8x16x48xf32>
    %209 = arith.maximumf %206, %208 : vector<8x16x48xf32>
    %210 = vector.extract_strided_slice %202 {offsets = [0, 2, 0, 0], sizes = [8, 1, 16, 48], strides = [1, 1, 1, 1]} : vector<8x6x16x48xf32> to vector<8x1x16x48xf32>
    %211 = vector.shape_cast %210 : vector<8x1x16x48xf32> to vector<8x16x48xf32>
    %212 = arith.maximumf %209, %211 : vector<8x16x48xf32>
    %213 = vector.extract_strided_slice %202 {offsets = [0, 3, 0, 0], sizes = [8, 1, 16, 48], strides = [1, 1, 1, 1]} : vector<8x6x16x48xf32> to vector<8x1x16x48xf32>
    %214 = vector.shape_cast %213 : vector<8x1x16x48xf32> to vector<8x16x48xf32>
    %215 = arith.maximumf %212, %214 : vector<8x16x48xf32>
    %216 = vector.extract_strided_slice %202 {offsets = [0, 4, 0, 0], sizes = [8, 1, 16, 48], strides = [1, 1, 1, 1]} : vector<8x6x16x48xf32> to vector<8x1x16x48xf32>
    %217 = vector.shape_cast %216 : vector<8x1x16x48xf32> to vector<8x16x48xf32>
    %218 = arith.maximumf %215, %217 : vector<8x16x48xf32>
    %219 = vector.extract_strided_slice %202 {offsets = [0, 5, 0, 0], sizes = [8, 1, 16, 48], strides = [1, 1, 1, 1]} : vector<8x6x16x48xf32> to vector<8x1x16x48xf32>
    %220 = vector.shape_cast %219 : vector<8x1x16x48xf32> to vector<8x16x48xf32>
    %221 = arith.maximumf %218, %220 : vector<8x16x48xf32>
    %cst_54 = arith.constant 0.000000e+00 : f32
    %222 = vector.broadcast %cst_54 : f32 to vector<8x16x48xf32>
    %cst_55 = arith.constant 0.000000e+00 : f32
    %223 = vector.broadcast %cst_55 : f32 to vector<8x16x48xf32>
    %224 = vector.extract_strided_slice %202 {offsets = [0, 0, 0, 0], sizes = [8, 1, 16, 48], strides = [1, 1, 1, 1]} : vector<8x6x16x48xf32> to vector<8x1x16x48xf32>
    %225 = vector.shape_cast %224 : vector<8x1x16x48xf32> to vector<8x16x48xf32>
    %226 = arith.subf %225, %221 : vector<8x16x48xf32>
    %227 = math.exp %226 : vector<8x16x48xf32>
    %228 = arith.addf %222, %227 : vector<8x16x48xf32>
    %c0_i32_56 = arith.constant 0 : i32
    %229 = vector.broadcast %c0_i32_56 : i32 to vector<8x16x48xi32>
    %230 = arith.cmpi eq, %204, %229 : vector<8x16x48xi32>
    %cst_57 = arith.constant 0.000000e+00 : f32
    %231 = vector.broadcast %cst_57 : f32 to vector<8x16x48xf32>
    %232 = arith.select %230, %225, %231 : vector<8x16x48xi1>, vector<8x16x48xf32>
    %233 = arith.addf %223, %232 : vector<8x16x48xf32>
    %234 = vector.extract_strided_slice %202 {offsets = [0, 1, 0, 0], sizes = [8, 1, 16, 48], strides = [1, 1, 1, 1]} : vector<8x6x16x48xf32> to vector<8x1x16x48xf32>
    %235 = vector.shape_cast %234 : vector<8x1x16x48xf32> to vector<8x16x48xf32>
    %236 = arith.subf %235, %221 : vector<8x16x48xf32>
    %237 = math.exp %236 : vector<8x16x48xf32>
    %238 = arith.addf %228, %237 : vector<8x16x48xf32>
    %c1_i32_58 = arith.constant 1 : i32
    %239 = vector.broadcast %c1_i32_58 : i32 to vector<8x16x48xi32>
    %240 = arith.cmpi eq, %204, %239 : vector<8x16x48xi32>
    %cst_59 = arith.constant 0.000000e+00 : f32
    %241 = vector.broadcast %cst_59 : f32 to vector<8x16x48xf32>
    %242 = arith.select %240, %235, %241 : vector<8x16x48xi1>, vector<8x16x48xf32>
    %243 = arith.addf %233, %242 : vector<8x16x48xf32>
    %244 = vector.extract_strided_slice %202 {offsets = [0, 2, 0, 0], sizes = [8, 1, 16, 48], strides = [1, 1, 1, 1]} : vector<8x6x16x48xf32> to vector<8x1x16x48xf32>
    %245 = vector.shape_cast %244 : vector<8x1x16x48xf32> to vector<8x16x48xf32>
    %246 = arith.subf %245, %221 : vector<8x16x48xf32>
    %247 = math.exp %246 : vector<8x16x48xf32>
    %248 = arith.addf %238, %247 : vector<8x16x48xf32>
    %c2_i32_60 = arith.constant 2 : i32
    %249 = vector.broadcast %c2_i32_60 : i32 to vector<8x16x48xi32>
    %250 = arith.cmpi eq, %204, %249 : vector<8x16x48xi32>
    %cst_61 = arith.constant 0.000000e+00 : f32
    %251 = vector.broadcast %cst_61 : f32 to vector<8x16x48xf32>
    %252 = arith.select %250, %245, %251 : vector<8x16x48xi1>, vector<8x16x48xf32>
    %253 = arith.addf %243, %252 : vector<8x16x48xf32>
    %254 = vector.extract_strided_slice %202 {offsets = [0, 3, 0, 0], sizes = [8, 1, 16, 48], strides = [1, 1, 1, 1]} : vector<8x6x16x48xf32> to vector<8x1x16x48xf32>
    %255 = vector.shape_cast %254 : vector<8x1x16x48xf32> to vector<8x16x48xf32>
    %256 = arith.subf %255, %221 : vector<8x16x48xf32>
    %257 = math.exp %256 : vector<8x16x48xf32>
    %258 = arith.addf %248, %257 : vector<8x16x48xf32>
    %c3_i32_62 = arith.constant 3 : i32
    %259 = vector.broadcast %c3_i32_62 : i32 to vector<8x16x48xi32>
    %260 = arith.cmpi eq, %204, %259 : vector<8x16x48xi32>
    %cst_63 = arith.constant 0.000000e+00 : f32
    %261 = vector.broadcast %cst_63 : f32 to vector<8x16x48xf32>
    %262 = arith.select %260, %255, %261 : vector<8x16x48xi1>, vector<8x16x48xf32>
    %263 = arith.addf %253, %262 : vector<8x16x48xf32>
    %264 = vector.extract_strided_slice %202 {offsets = [0, 4, 0, 0], sizes = [8, 1, 16, 48], strides = [1, 1, 1, 1]} : vector<8x6x16x48xf32> to vector<8x1x16x48xf32>
    %265 = vector.shape_cast %264 : vector<8x1x16x48xf32> to vector<8x16x48xf32>
    %266 = arith.subf %265, %221 : vector<8x16x48xf32>
    %267 = math.exp %266 : vector<8x16x48xf32>
    %268 = arith.addf %258, %267 : vector<8x16x48xf32>
    %c4_i32_64 = arith.constant 4 : i32
    %269 = vector.broadcast %c4_i32_64 : i32 to vector<8x16x48xi32>
    %270 = arith.cmpi eq, %204, %269 : vector<8x16x48xi32>
    %cst_65 = arith.constant 0.000000e+00 : f32
    %271 = vector.broadcast %cst_65 : f32 to vector<8x16x48xf32>
    %272 = arith.select %270, %265, %271 : vector<8x16x48xi1>, vector<8x16x48xf32>
    %273 = arith.addf %263, %272 : vector<8x16x48xf32>
    %274 = vector.extract_strided_slice %202 {offsets = [0, 5, 0, 0], sizes = [8, 1, 16, 48], strides = [1, 1, 1, 1]} : vector<8x6x16x48xf32> to vector<8x1x16x48xf32>
    %275 = vector.shape_cast %274 : vector<8x1x16x48xf32> to vector<8x16x48xf32>
    %276 = arith.subf %275, %221 : vector<8x16x48xf32>
    %277 = math.exp %276 : vector<8x16x48xf32>
    %278 = arith.addf %268, %277 : vector<8x16x48xf32>
    %c5_i32_66 = arith.constant 5 : i32
    %279 = vector.broadcast %c5_i32_66 : i32 to vector<8x16x48xi32>
    %280 = arith.cmpi eq, %204, %279 : vector<8x16x48xi32>
    %cst_67 = arith.constant 0.000000e+00 : f32
    %281 = vector.broadcast %cst_67 : f32 to vector<8x16x48xf32>
    %282 = arith.select %280, %275, %281 : vector<8x16x48xi1>, vector<8x16x48xf32>
    %283 = arith.addf %273, %282 : vector<8x16x48xf32>
    %284 = math.log %278 : vector<8x16x48xf32>
    %285 = arith.addf %221, %284 : vector<8x16x48xf32>
    %286 = arith.subf %285, %283 : vector<8x16x48xf32>
    %cst_68 = arith.constant dense<0.000000e+00> : vector<8x16xf32>
    %287 = vector.multi_reduction <add>, %286, %cst_68 [2] : vector<8x16x48xf32> to vector<8x16xf32>
    %cst_69 = arith.constant dense<0.000000e+00> : vector<8xf32>
    %288 = vector.multi_reduction <add>, %287, %cst_69 [1] : vector<8x16xf32> to vector<8xf32>
    %289 = vector.shape_cast %288 : vector<8xf32> to vector<8x1xf32>
    %290 = arith.addf %197, %289 : vector<8x1xf32>
    %c3_i32_70 = arith.constant 3 : i32
    %cst_71 = arith.constant 4.34027781E-4 : f32
    %291 = vector.broadcast %cst_71 : f32 to vector<8x1xf32>
    %292 = arith.mulf %290, %291 : vector<8x1xf32>
    %c0_72 = arith.constant 0 : index
    %c0_73 = arith.constant 0 : index
    %293 = vector.load %arg7[%c0_72, %c0_73] : memref<8x1xf32, #tpu.memory_space<vmem>>, vector<8x1xf32>
    %294 = tpu.iota {dimensions = array<i32: 1>} : vector<8x128xi32>
    %c4_i32_74 = arith.constant 4 : i32
    %295 = vector.broadcast %c4_i32_74 : i32 to vector<8x128xi32>
    %296 = arith.cmpi slt, %294, %295 : vector<8x128xi32>
    %cst_75 = arith.constant 0.000000e+00 : f32
    %297 = vector.broadcast %cst_75 : f32 to vector<8x128xf32>
    %298 = arith.select %296, %5, %297 : vector<8x128xi1>, vector<8x128xf32>
    %c4_i32_76 = arith.constant 4 : i32
    %299 = vector.broadcast %c4_i32_76 : i32 to vector<8x128xi32>
    %300 = arith.cmpi eq, %294, %299 : vector<8x128xi32>
    %301 = arith.mulf %292, %293 : vector<8x1xf32>
    %302 = vector.shape_cast %301 : vector<8x1xf32> to vector<8x1xf32>
    %303 = vector.broadcast %302 : vector<8x1xf32> to vector<8x128xf32>
    %304 = arith.select %300, %303, %298 : vector<8x128xi1>, vector<8x128xf32>
    %c5_i32_77 = arith.constant 5 : i32
    %305 = vector.broadcast %c5_i32_77 : i32 to vector<8x128xi32>
    %306 = arith.cmpi eq, %294, %305 : vector<8x128xi32>
    %307 = arith.mulf %10, %293 : vector<8x1xf32>
    %308 = vector.shape_cast %307 : vector<8x1xf32> to vector<8x1xf32>
    %309 = vector.broadcast %308 : vector<8x1xf32> to vector<8x128xf32>
    %310 = arith.select %306, %309, %304 : vector<8x128xi1>, vector<8x128xf32>
    %c6_i32 = arith.constant 6 : i32
    %311 = vector.broadcast %c6_i32 : i32 to vector<8x128xi32>
    %312 = arith.cmpi eq, %294, %311 : vector<8x128xi32>
    %313 = vector.shape_cast %293 : vector<8x1xf32> to vector<8x1xf32>
    %314 = vector.broadcast %313 : vector<8x1xf32> to vector<8x128xf32>
    %315 = arith.select %312, %314, %310 : vector<8x128xi1>, vector<8x128xf32>
    %c0_78 = arith.constant 0 : index
    %c0_79 = arith.constant 0 : index
    %316 = vector.load %arg8[%c0_78, %c0_79] : memref<8x128xf32, #tpu.memory_space<vmem>>, vector<8x128xf32>
    tpu.vector_store %arg8[%c0_78, %c0_79], %315 {strides = array<i32>} : memref<8x128xf32, #tpu.memory_space<vmem>>, vector<8x128xf32>,
    return
  }
  func.func @transform_0(%arg0: i32) -> (i32, i32) {
    %c0_i32 = arith.constant 0 : i32
    %c0_i32_0 = arith.constant 0 : i32
    return %arg0, %c0_i32 : i32, i32
  }
  func.func @transform_1(%arg0: i32) -> (i32, i32) {
    %c0_i32 = arith.constant 0 : i32
    %c0_i32_0 = arith.constant 0 : i32
    %c0_i32_1 = arith.constant 0 : i32
    return %c0_i32, %c0_i32_0 : i32, i32
  }
  func.func @transform_2(%arg0: i32) -> (i32, i32) {
    %c0_i32 = arith.constant 0 : i32
    %c0_i32_0 = arith.constant 0 : i32
    %c0_i32_1 = arith.constant 0 : i32
    return %c0_i32, %c0_i32_0 : i32, i32
  }
  func.func @transform_3(%arg0: i32) -> (i32, i32) {
    %c0_i32 = arith.constant 0 : i32
    %c0_i32_0 = arith.constant 0 : i32
    return %arg0, %c0_i32 : i32, i32
  }
  func.func @transform_4(%arg0: i32) -> (i32, i32, i32, i32) {
    %c0_i32 = arith.constant 0 : i32
    %c0_i32_0 = arith.constant 0 : i32
    %c0_i32_1 = arith.constant 0 : i32
    %c0_i32_2 = arith.constant 0 : i32
    return %arg0, %c0_i32, %c0_i32_0, %c0_i32_1 : i32, i32, i32, i32
  }
  func.func @transform_5(%arg0: i32) -> (i32, i32, i32) {
    %c0_i32 = arith.constant 0 : i32
    %c0_i32_0 = arith.constant 0 : i32
    %c0_i32_1 = arith.constant 0 : i32
    return %arg0, %c0_i32, %c0_i32_0 : i32, i32, i32
  }
  func.func @transform_6(%arg0: i32) -> (i32, i32) {
    %c0_i32 = arith.constant 0 : i32
    %c0_i32_0 = arith.constant 0 : i32
    return %arg0, %c0_i32 : i32, i32
  }
  func.func @transform_7(%arg0: i32) -> (i32, i32) {
    %c0_i32 = arith.constant 0 : i32
    %c0_i32_0 = arith.constant 0 : i32
    return %arg0, %c0_i32 : i32, i32
  }
}

</mosaic_0001>

<bundles_post_ra>
// kernel: tpu_custom_call.1
= control target key start
LH: loop header
LB: loop body
LE: loop exit
PB: predicated region body
PF: predicated region fallthrough
CT: control target
= control target key end

     0   :  { %s10248_s0 = inlined_call_operand.hbm [shape: bf16[16,32], index: 0, kind: input, shape index: {}]   ;;  %s10249_s1 = inlined_call_operand.hbm [shape: bf16[32,128], index: 1, kind: input, shape index: {}]   ;;  %s10250_s2 = inlined_call_operand.hbm [shape: f32[1,128], index: 2, kind: input, shape index: {}]   ;;  %s10251_s3 = inlined_call_operand.vmem [shape: f32[16,1], index: 3, kind: input, shape index: {}]   ;;  %s10252_s4 = inlined_call_operand.hbm [shape: bf16[16,6,48,48], index: 4, kind: input, shape index: {}]   ;;  %s10253_s5 = inlined_call_operand.hbm [shape: s32[16,48,48], index: 5, kind: input, shape index: {}]   ;;  %s10254_s6 = inlined_call_operand.vmem [shape: f32[16,1], index: 6, kind: input, shape index: {}]   ;;  %s10255_s7 = inlined_call_operand.hbm [shape: f32[16,128], index: 7, kind: output, shape index: {}]  }
   0x1   :  { %10268 = sst [smem:[#allocation21_spill]] %s10249_s1 }
   0x2   :  { %12 = vsyncpa [#allocation3], 0 }
   0x3   :  { %14 = vsyncpa [#allocation3 + $0x1], 0 }
   0x4   :  { %15 = vsyncpa [#allocation6], 0 }
   0x5   :  { %16 = vsyncpa [#allocation9], 0 }
   0x6   :  { %18 = vsyncpa [#allocation9 + $0x1], 0 }
   0x7   :  { %19 = vsyncpa [#allocation4], 0 }
   0x8   :  { %21 = vsyncpa [#allocation4 + $0x1], 0  ;;  %s6277_s24 = smov 0   ;;  %s6279_s25 = smov 0  }
   0x9   :  { %s6281_s26 = smov 0   ;;  %s6283_s27 = smov 0  }
   0xa LB: > { %10269 = sst [smem:[#allocation16_spill]] %s6216_s26  ;;  %s6298_s28 = sadd.s32 4294967295, %s6220_s27   ;;  %s6220_s27 = sphi %s6283_s27, %s10299_s27   ;;  %s6216_s26 = sphi %s6281_s26, %s10301_s26   ;;  %s6212_s25 = sphi %s6279_s25, %s10303_s25   ;;  %s6208_s24 = sphi %s6277_s24, %s10302_s24  }
   0xb   : > { %s4247_s29 = sadd.s32 4294967294, %s6220_s27   ;;  %s6302_s30 = sadd.s32 1, %s6220_s27  }
   0xc   : > { %10270 = sst [smem:[#allocation17_spill]] %s6302_s30  ;;  %s34_s8 = sadd.s32 1, %s6216_s26 }
   0xd   : > { %s31_s9 = ssub.s32 %s6220_s27, %s6302_s30  ;;  %p41_p0 = scmp.ne.s32.totalorder %s6216_s26, %s6212_s25 }
   0xe   : > { %p32_p1 = scmp.eq.s32.totalorder %s31_s9, 0  ;;  %p42_p2 = scmp.eq.s32.totalorder %s6220_s27, 0 }
   0xf   : > { %p47_p3 = scmp.ne.s32.totalorder %s6212_s25, %s6208_s24  ;;  %p10256_p4 = scmp.eq.s32.totalorder %s6298_s28, 0 }
  0x10   : > { %s6314_s10 = scalar_select %p32_p1, %s6216_s26, %s34_s8  }
  0x11   : > { %p6316_p5 = por %p42_p2, %p41_p0  ;;  %p6322_p6 = por %p10256_p4, %p47_p3 }
  0x12   : > { %10271 = sst [smem:[#allocation18_spill]] %s6314_s10  ;;  %p217_p7 = scmp.eq.s32.totalorder %s6298_s28, 1 }
  0x13   : > { %s10272_s11 = scalar_select %p6316_p5, 1, 0 }
  0x14   : > { %s10273_s12 = scalar_select %p6322_p6, 1, 0 }
  0x15   : > { %p223_p8 = scmp.eq.s32.totalorder %s4247_s29, 1  ;;  %p4248_p9 = scmp.ge.s32.totalorder %s6220_s27, 1 }
  0x16   : > { %p230_p10 = scmp.lt.s32.totalorder %s6220_s27, 3  ;;  %p6329_p11 = por %p217_p7, %p41_p0 }
  0x17   : > { %p6333_p12 = por %p223_p8, %p47_p3  ;;  %s6222_s16 = smov [#allocation5]  }
  0x18   : > { %s10274_s13 = scalar_select %p6329_p11, 1, 0 }
  0x19   : > { %s10275_s14 = scalar_select %p6333_p12, 1, 0 }
  0x1a   : > { %p6337_p13 = pnand %p4248_p9, %p230_p10  ;;  %s242_s17 = sshll.u32 %s6222_s16, 4  ;;  %s243_s17 = int_to_ptr.vmem [resolvable:$true] %s242_s17 }
  0x1b   : > { %10276 = sst [smem:[#allocation19_spill]] %s10275_s14  ;;  %s6352_s19 = sand.u32 1, %s6216_s26  }
  0x1c   : > { %s10277_s15 = scalar_select %p6337_p13, 1, 0 }
  0x1d   : > { %p5251_p1 = pneg %p6337_p13  ;;  %s10279_s1 = sld [smem:[#allocation21_spill]] }
  0x1f   : > { %p6345_p2 = pnand %p5251_p1, %p10256_p4 }
  0x21   : > { %s10278_s18 = scalar_select %p6345_p2, 1, 0 }
  0x22   : > { %p10265_p8 = pneg %p6345_p2 }
  0x23   : > { %s6000_s23 = scalar_lea.hbm %s10279_s1, 256 }
  0x24   : > { %p6001_p7 = scmp.ne.s32.totalorder %s10279_s1, %s6000_s23  ;;  %p6007_p1 = scmp.lt.u32.totalorder %s6000_s23, %s10279_s1 }
  0x26   : > { %p6003_p9 = pnand %p10265_p8, %p6001_p7 }
  0x28   : > { %p6004_p10 = pneg %p6003_p9 }
  0x2a   : > { %p6009_p0 = pnand %p6007_p1, %p6004_p10 }
  0x2c   : > { %6012 = shalt.err (!%p6009_p0)
}
  0x2d   : > { %s6013_s20 = scalar_lea.vmem %s243_s17, 256  ;;  %p6021_p11 = scmp.lt.s32.totalorder %s243_s17, %s243_s17 }
  0x2e   : > { %p6014_p4 = scmp.ne.s32.totalorder %s243_s17, %s6013_s20  ;;  %p6022_p6 = scmp.lt.s32.totalorder %s6013_s20, %s6013_s20 }
  0x30   : > { %p6016_p3 = pnand %p6014_p4, %p10265_p8  ;;  %p6023_p13 = por %p6022_p6, %p6021_p11 }
  0x32   : > { %p6017_p12 = pneg %p6016_p3 }
  0x34   : > { %p6024_p5 = pnand %p6023_p13, %p6017_p12 }
  0x36   : > { %6027 = shalt.err (!%p6024_p5)
}
  0x37   : > { %s10264_s21 = smov 64   ;;  %s6224_s22 = smov 4  }
  0x38   : > { %5254 = dma.hbm_to_vmem [thread:$0]  (!%p6345_p2), %s10279_s1, 256, %s243_s17, [#allocation6], %s10264_s21, %s10264_s21, %s6224_s22  }
  0x39   : > { %p10280_p4 = scmp.ne.s32.totalorder %s10272_s11, 0  ;;  %p10281_p6 = scmp.lt.s32.totalorder %s6220_s27, 2 }
  0x3a   : > { %s5229_s8 = smul.u32 1152, %s6352_s19  ;;  %s6225_s16 = smov [#allocation7]  }
  0x3b   : > { %p6384_p11 = pnand %p10281_p6, %p10280_p4  ;;  %s5230_s9 = smul.u32 18432, %s6220_s27 }
  0x3c   : > { %s256_s10 = sshll.u32 %s6225_s16, 4  ;;  %s296_s11 = scalar_lea.vmem [#allocation8], %s5229_s8  ;;  %s6397_s10 = int_to_ptr.vmem [resolvable:$true] %s256_s10 }
  0x3d   : > { %s6393_s14 = scalar_lea.hbm %s10252_s4, %s5230_s9  ;;  %s304_s17 = sshll.u32 %s296_s11, 4  ;;  %s6395_s17 = int_to_ptr.vmem [resolvable:$true] %s304_s17 }
  0x3e   : > { %s10283_s23 = sand.u32 1, %s6220_s27   ;;  %s6028_s21 = scalar_lea.hbm %s6393_s14, 18432 }
  0x3f   : > { %s6401_s29 = scalar_lea.sflag [#allocation9], %s10283_s23  ;;  %p6029_p5 = scmp.ne.s32.totalorder %s6393_s14, %s6028_s21 }
  0x40   : > { %p6407_p12 = pneg %p6384_p11  ;;  %s6033_s9 = scalar_lea.hbm %s10252_s4, 36864 }
  0x41   : > { %p6034_p3 = scmp.lt.u32.totalorder %s6393_s14, %s10252_s4  ;;  %p6035_p7 = scmp.lt.u32.totalorder %s6033_s9, %s6028_s21 }
  0x42   : > { %p6031_p13 = pnand %p6407_p12, %p6029_p5  ;;  %p6037_p10 = scmp.lt.u32.totalorder %s6028_s21, %s6393_s14 }
  0x43   : > { %p6036_p9 = por %p6035_p7, %p6034_p3 }
  0x44   : > { %p6032_p0 = pneg %p6031_p13 }
  0x45   : > { %p6038_p1 = por %p6037_p10, %p6036_p9 }
  0x47   : > { %p6039_p4 = pnand %p6038_p1, %p6032_p0 }
  0x49   : > { %6042 = shalt.err (!%p6039_p4)
}
  0x4a   : > { %s6043_s23 = scalar_lea.vmem %s6395_s17, 18432  ;;  %s6226_s30 = smov [#allocation8]  }
  0x4b   : > { %p6044_p6 = scmp.ne.s32.totalorder %s6395_s17, %s6043_s23  ;;  %s6048_s8 = sshll.u32 %s6226_s30, 4  ;;  %s6049_s8 = int_to_ptr.vmem [resolvable:$false] %s6048_s8 }
  0x4c   : > { %s6050_s16 = scalar_lea.vmem %s6049_s8, 36864  ;;  %p6051_p8 = scmp.lt.s32.totalorder %s6395_s17, %s6049_s8 }
  0x4d   : > { %p6046_p5 = pnand %p6044_p6, %p6407_p12  ;;  %p6052_p2 = scmp.lt.s32.totalorder %s6050_s16, %s6043_s23 }
  0x4f   : > { %p6047_p13 = pneg %p6046_p5  ;;  %p6053_p3 = por %p6052_p2, %p6051_p8 }
  0x51   : > { %p6054_p7 = pnand %p6053_p3, %p6047_p13 }
  0x53   : > { %6057 = shalt.err (!%p6054_p7)
}
  0x54   : > { %s10285_s21 = smov 64   ;;  %s6058_s30 = scalar_lea.hbm %s10250_s2, 16 }
  0x55   : > { %5264 = dma.hbm_to_vmem [thread:$0]  (!%p6384_p11), %s6393_s14, 18432, %s6395_s17, %s6401_s29, %s10285_s21, %s10285_s21, %s6224_s22  }
  0x56   : > { %p6059_p2 = scmp.ne.s32.totalorder %s10250_s2, %s6058_s30  ;;  %p10286_p8 = scmp.ne.s32.totalorder %s10278_s18, 0 }
  0x57   : > { %p6065_p1 = scmp.lt.u32.totalorder %s6058_s30, %s10250_s2 }
  0x58   : > { %p10287_p0 = pneg %p10286_p8 }
  0x5a   : > { %p6061_p9 = pnand %p6059_p2, %p10287_p0 }
  0x5c   : > { %p6062_p10 = pneg %p6061_p9 }
  0x5e   : > { %p6067_p4 = pnand %p6065_p1, %p6062_p10 }
  0x60   : > { %6070 = shalt.err (!%p6067_p4)
}
  0x61   : > { %s6071_s14 = scalar_lea.vmem %s6397_s10, 16  ;;  %p10288_p5 = pmov %p10287_p0 }
  0x62   : > { %p6072_p6 = scmp.ne.s32.totalorder %s6397_s10, %s6071_s14  ;;  %s6078_s1 = scalar_lea.vmem %s6397_s10, 32 }
  0x63   : > { %p6079_p7 = scmp.lt.s32.totalorder %s6397_s10, %s6397_s10  ;;  %p6080_p2 = scmp.lt.s32.totalorder %s6078_s1, %s6071_s14 }
  0x64   : > { %p6074_p13 = pnand %p6072_p6, %p10288_p5 }
  0x65   : > { %p6081_p0 = por %p6080_p2, %p6079_p7 }
  0x66   : > { %p6075_p3 = pneg %p6074_p13 }
  0x68   : > { %p6082_p9 = pnand %p6081_p0, %p6075_p3 }
  0x6a   : > { %6085 = shalt.err (!%p6082_p9)
}
  0x6b   : > { %5257 = dma.hbm_to_vmem [thread:$0]  (!%p10286_p8), %s10250_s2, 16, %s6397_s10, [#allocation6]  }
  0x6c   : > { %s4252_s21 = sshll.u32 %s6352_s19, 2  ;;  %s4253_s9 = sshll.u32 %s6220_s27, 6 }
  0x6d   : > { %s6465_s8 = scalar_lea.hbm %s10248_s0, %s4253_s9  ;;  %s271_s18 = scalar_lea.vmem [#allocation2], %s4252_s21 }
  0x6e   : > { %s278_s23 = sshll.u32 %s271_s18, 4  ;;  %s5231_s16 = smul.u32 384, %s6352_s19  ;;  %s6467_s23 = int_to_ptr.vmem [resolvable:$true] %s278_s23 }
  0x6f   : > { %s268_s14 = scalar_lea.sflag [#allocation3], %s6352_s19  ;;  %s6086_s1 = scalar_lea.hbm %s6465_s8, 64 }
  0x70   : > { %p6087_p10 = scmp.ne.s32.totalorder %s6465_s8, %s6086_s1  ;;  %s6091_s17 = scalar_lea.hbm %s10248_s0, 128 }
  0x71   : > { %p6092_p4 = scmp.lt.u32.totalorder %s6465_s8, %s10248_s0  ;;  %p6093_p6 = scmp.lt.u32.totalorder %s6091_s17, %s6086_s1 }
  0x72   : > { %p6089_p8 = pnand %p6087_p10, %p6407_p12  ;;  %p6095_p13 = scmp.lt.u32.totalorder %s6086_s1, %s6465_s8 }
  0x73   : > { %p6094_p5 = por %p6093_p6, %p6092_p4 }
  0x74   : > { %p6090_p1 = pneg %p6089_p8 }
  0x75   : > { %p6096_p3 = por %p6095_p13, %p6094_p5 }
  0x77   : > { %p6097_p7 = pnand %p6096_p3, %p6090_p1 }
  0x79   : > { %6100 = shalt.err (!%p6097_p7)
}
  0x7a   : > { %s6101_s21 = scalar_lea.vmem %s6467_s23, 64  ;;  %s6227_s30 = smov [#allocation2]  }
  0x7b   : > { %p6102_p2 = scmp.ne.s32.totalorder %s6467_s23, %s6101_s21  ;;  %s6106_s18 = sshll.u32 %s6227_s30, 4  ;;  %s6107_s18 = int_to_ptr.vmem [resolvable:$false] %s6106_s18 }
  0x7c   : > { %s6108_s10 = scalar_lea.vmem %s6107_s18, 128  ;;  %p6109_p10 = scmp.lt.s32.totalorder %s6467_s23, %s6107_s18 }
  0x7d   : > { %p6104_p0 = pnand %p6102_p2, %p6407_p12  ;;  %p6110_p8 = scmp.lt.s32.totalorder %s6108_s10, %s6101_s21 }
  0x7f   : > { %p6105_p9 = pneg %p6104_p0  ;;  %p6111_p4 = por %p6110_p8, %p6109_p10 }
  0x81   : > { %p6112_p6 = pnand %p6111_p4, %p6105_p9 }
  0x83   : > { %6115 = shalt.err (!%p6112_p6)
}
  0x84   : > { %5261 = dma.hbm_to_vmem [thread:$0]  (!%p6384_p11), %s6465_s8, 64, %s6467_s23, %s268_s14  }
  0x85   : > { %s5232_s1 = smul.u32 6144, %s6220_s27  ;;  %s318_s22 = scalar_lea.vmem [#allocation10], %s5231_s16 }
  0x86   : > { %s326_s17 = sshll.u32 %s318_s22, 4  ;;  %s6121_s23 = scalar_lea.hbm %s10253_s5, 12288  ;;  %s6500_s17 = int_to_ptr.vmem [resolvable:$true] %s326_s17 }
  0x87   : > { %s6498_s30 = scalar_lea.hbm %s10253_s5, %s5232_s1 }
  0x88   : > { %s6116_s21 = scalar_lea.hbm %s6498_s30, 6144  ;;  %p6122_p3 = scmp.lt.u32.totalorder %s6498_s30, %s10253_s5 }
  0x89   : > { %p6117_p1 = scmp.ne.s32.totalorder %s6498_s30, %s6116_s21  ;;  %p6123_p7 = scmp.lt.u32.totalorder %s6121_s23, %s6116_s21 }
  0x8a   : > { %p6125_p0 = scmp.lt.u32.totalorder %s6116_s21, %s6498_s30 }
  0x8b   : > { %p6119_p5 = pnand %p6117_p1, %p6407_p12  ;;  %p6124_p2 = por %p6123_p7, %p6122_p3 }
  0x8d   : > { %p6120_p13 = pneg %p6119_p5  ;;  %p6126_p9 = por %p6125_p0, %p6124_p2 }
  0x8f   : > { %p6127_p10 = pnand %p6126_p9, %p6120_p13 }
  0x91   : > { %6130 = shalt.err (!%p6127_p10)
}
  0x92   : > { %s6131_s18 = scalar_lea.vmem %s6500_s17, 6144  ;;  %s6228_s10 = smov [#allocation10]  }
  0x93   : > { %p6132_p8 = scmp.ne.s32.totalorder %s6500_s17, %s6131_s18  ;;  %s6136_s1 = sshll.u32 %s6228_s10, 4  ;;  %s6137_s1 = int_to_ptr.vmem [resolvable:$false] %s6136_s1 }
  0x94   : > { %s6138_s22 = scalar_lea.vmem %s6137_s1, 12288  ;;  %p6139_p1 = scmp.lt.s32.totalorder %s6500_s17, %s6137_s1 }
  0x95   : > { %p6134_p4 = pnand %p6132_p8, %p6407_p12  ;;  %p6140_p5 = scmp.lt.s32.totalorder %s6138_s22, %s6131_s18 }
  0x97   : > { %p6135_p6 = pneg %p6134_p4  ;;  %p6141_p3 = por %p6140_p5, %p6139_p1 }
  0x99   : > { %p6142_p7 = pnand %p6141_p3, %p6135_p6 }
  0x9b   : > { %6145 = shalt.err (!%p6142_p7)
}
  0x9c   : > { %s6229_s9 = smov 128   ;;  %s6230_s11 = smov 8  }
  0x9d   : > { %5267 = dma.hbm_to_vmem [thread:$0]  (!%p6384_p11), %s6498_s30, 6144, %s6500_s17, %s6401_s29, %s6229_s9, %s6229_s9, %s6230_s11  }
  0x9e   : > { %p10289_p12 = scmp.ne.s32.totalorder %s10277_s15, 0 }
  0xa0   : > { %345 = sbr.rel (%p10289_p12) target bundleno = 1325 (0x52d), region = 48 }
  0xa7   : > { %s6527_s26 = sand.u32 1, %s6212_s25   ;;  %p10290_p13 = scmp.ne.s32.totalorder %s10273_s12, 0 }
  0xa8   : > { %s4261_s21 = sshll.u32 %s6527_s26, 2  ;;  %s348_s8 = scalar_lea.sflag [#allocation3], %s6527_s26 }
  0xa9   : > { %s6531_s19 = scalar_lea.vmem [#allocation2], %s4261_s21 }
  0xaa   : > { %6191 = dma.done.wait (%p10290_p13), %s348_s8, 64  }
  0xab   : > { %6193 = vsyncadd (%p10290_p13), %s348_s8, 4294967232  ;;  %p10291_p11 = scmp.eq.s32.totalorder %s6298_s28, 0 }
  0xad   : > { %6195 = dma.done.wait (%p10291_p11), [#allocation6], 272   ;;  %p10292_p2 = pmov %p10291_p11 }
  0xae   : > { %s364_s15 = sand.u32 1, %s6298_s28   ;;  %s5233_s20 = smul.u32 1152, %s6527_s26 }
  0xaf   : > { %6197 = vsyncadd (%p10292_p2), [#allocation6], 4294967024  ;;  %s365_s29 = scalar_lea.sflag [#allocation9], %s364_s15 }
  0xb0   : > { %s6543_s17 = scalar_lea.vmem [#allocation8], %s5233_s20 }
  0xb1   : > { %6199 = dma.done.wait (%p10290_p13), %s365_s29, 24576  }
  0xb2   : > { %6201 = vsyncadd (%p10290_p13), %s365_s29, 4294942720  ;;  %s5234_s30 = smul.u32 384, %s6527_s26  ;;  %v5080_v0 = vld [vmem:[%s6543_s17 + $0x90] sm:$0xff]   ;;  %v5081_v1 = vld [vmem:[%s6543_s17 + $0xa8] sm:$0xff]   ;;  %p426_p0 = scmp.lt.s32.totalorder %s6298_s28, 1 }
  0xb3   : > { %v6553_v2 = vld [vmem:[%s6543_s17 + $0xc0] sm:$0xff]   ;;  %v4525_v3 = vunpack.c.l.bf16 %v5080_v0  ;;  %v4529_v4 = vunpack.c.l.bf16 %v5081_v1  ;;  %v6557_v6 = vld [vmem:[%s6543_s17 + $0xd8] sm:$0xff]   ;;  %v6560_v7 = vld [vmem:[%s6543_s17 + $0xf0] sm:$0xff]   ;;  %v6609_v34 = vunpack.c.h.bf16 %v5080_v0  ;;  %v6626_v53 = vunpack.c.h.bf16 %v5081_v1  ;;  %s6233_s1 = smov 4   ;;  %s4264_s21 = sshll.u32 %s6527_s26, 3 }
  0xb4   : > { %v4533_v5 = vunpack.c.l.bf16 %v6553_v2  ;;  %s6562_s12 = scalar_lea.vmem [#allocation10], %s5234_s30  ;;  %v4537_v9 = vunpack.c.l.bf16 %v6557_v6  ;;  %v6569_v10 = vld [vmem:[%s6543_s17 + $0x108] sm:$0xff]   ;;  %v6572_v12 = vld [vmem:[%s6543_s17] sm:$0xff]   ;;  %v6575_v13 = vld [vmem:[%s6543_s17 + $0x18] sm:$0xff]   ;;  %v4541_v15 = vunpack.c.l.bf16 %v6560_v7  ;;  %s4496_s8 = sshll.u32 %s6298_s28, 7 }
  0xb5   : > { %v6565_v8 = vld [vmem:[%s6562_s12 + $0x30] sm:$0xff]  ;;  %v723_v11 = vmax.f32 %v4525_v3, %v4529_v4  ;;  %v6584_v17 = vld [vmem:[%s6543_s17 + $0x48] sm:$0xff]   ;;  %v6587_v18 = vunpack.c.l.bf16 %v6569_v10  ;;  %v4501_v19 = vunpack.c.l.bf16 %v6572_v12  ;;  %v4505_v20 = vunpack.c.l.bf16 %v6575_v13  ;;  %v6592_v21 = vld [vmem:[%s6562_s12] sm:$0xff]  ;;  %s427_s23 = scalar_select %p426_p0, %s6298_s28, 1 }
  0xb6   : > { %vm867_vm0 = vcmp.eq.s32.totalorder %v6565_v8, 0  ;;  %v6579_v14 = vld [vmem:[%s6543_s17 + $0x30] sm:$0xff]   ;;  %vm979_vm1 = vcmp.eq.s32.totalorder %v6565_v8, 1  ;;  %vm1091_vm2 = vcmp.eq.s32.totalorder %v6565_v8, 2  ;;  %v6597_v25 = vld [vmem:[%s6543_s17 + $0x60] sm:$0xff]   ;;  %vm1203_vm3 = vcmp.eq.s32.totalorder %v6565_v8, 3 }
  0xb7   : > { %v739_v16 = vmax.f32 %v723_v11, %v4533_v5  ;;  %v883_v23 = vsel %vm867_vm0, %v4525_v3, 0.0  ;;  %v4509_v24 = vunpack.c.l.bf16 %v6579_v14  ;;  %v995_v26 = vsel %vm979_vm1, %v4529_v4, 0.0  ;;  %v6603_v30 = vld [vmem:[%s6543_s17 + $0x78] sm:$0xff]   ;;  %s4265_s16 = sshll.u32 %s427_s23, 3  ;;  %s4078_s30 = scalar_lea.sflag [#allocation4], %s6527_s26 }
  0xb8   : > { %v4513_v27 = vunpack.c.l.bf16 %v6584_v17  ;;  %v721_v28 = vmax.f32 %v4501_v19, %v4505_v20  ;;  %vm1315_vm4 = vcmp.eq.s32.totalorder %v6565_v8, 4  ;;  %vm865_vm5 = vcmp.eq.s32.totalorder %v6592_v21, 0  ;;  %s429_s10 = scalar_lea.vmem %s10251_s3, %s4265_s16  ;;  %s435_s11 = scalar_lea.vmem %s10254_s6, %s4265_s16 }
  0xb9   : > { %v755_v22 = vmax.f32 %v739_v16, %v4537_v9  ;;  %v1107_v31 = vsel %vm1091_vm2, %v4533_v5, 0.0  ;;  %v6607_v32 = vunpack.c.l.bf16 %v6597_v25  ;;  %v1011_v36 = vadd.f32 %v995_v26, %v883_v23  ;;  %p10295_p10 = scmp.ne.s32.totalorder %s10274_s13, 0 }
  0xba   : > { %v737_v33 = vmax.f32 %v721_v28, %v4509_v24  ;;  %v1219_v37 = vsel %vm1203_vm3, %v4537_v9, 0.0  ;;  %vm977_vm6 = vcmp.eq.s32.totalorder %v6592_v21, 1  ;;  %v1331_v38 = vsel %vm1315_vm4, %v4541_v15, 0.0 }
  0xbb   : > { %v771_v29 = vmax.f32 %v755_v22, %v4541_v15  ;;  %v6616_v39 = vunpack.c.l.bf16 %v6603_v30  ;;  %v881_v41 = vsel %vm865_vm5, %v4501_v19, 0.0  ;;  %v993_v49 = vsel %vm977_vm6, %v4505_v20, 0.0 }
  0xbc   : > { %v753_v40 = vmax.f32 %v737_v33, %v4513_v27  ;;  %v1123_v54 = vadd.f32 %v1107_v31, %v1011_v36  ;;  %vm1089_vm7 = vcmp.eq.s32.totalorder %v6592_v21, 2  ;;  %v1009_v59 = vadd.f32 %v993_v49, %v881_v41 }
  0xbd   : > { %v6612_v35 = vmax.f32 %v771_v29, %v6587_v18  ;;  %v1105_v63 = vsel %vm1089_vm7, %v4509_v24, 0.0  ;;  %vm1201_vm8 = vcmp.eq.s32.totalorder %v6592_v21, 3  ;;  %vm1427_vm9 = vcmp.eq.s32.totalorder %v6565_v8, 5 }
  0xbe   : > { %v769_v48 = vmax.f32 %v753_v40, %v6607_v32  ;;  %v6643_v16 = vunpack.c.h.bf16 %v6553_v2  ;;  %v1217_v22 = vsel %vm1201_vm8, %v4513_v27, 0.0  ;;  %vm1313_vm10 = vcmp.eq.s32.totalorder %v6592_v21, 4 }
  0xbf   : > { %v803_v42 = vsub.f32 %v4525_v3, %v6612_v35  ;;  %v915_v43 = vsub.f32 %v4529_v4, %v6612_v35  ;;  %v1027_v44 = vsub.f32 %v4533_v5, %v6612_v35  ;;  %v1139_v45 = vsub.f32 %v4537_v9, %v6612_v35 }
  0xc0   : > { %v1251_v46 = vsub.f32 %v4541_v15, %v6612_v35  ;;  %v1363_v47 = vsub.f32 %v6587_v18, %v6612_v35  ;;  %v6629_v56 = vmax.f32 %v769_v48, %v6616_v39  ;;  %v1235_v5 = vadd.f32 %v1219_v37, %v1123_v54 }
  0xc1   : > { %v821_v50 = vmul.f32 1.442695, %v803_v42  ;;  %v933_v51 = vmul.f32 1.442695, %v915_v43  ;;  %v1045_v52 = vmul.f32 1.442695, %v1027_v44  ;;  %v6652_v23 = vunpack.c.h.bf16 %v6557_v6 }
  0xc2   : > { %v1157_v55 = vmul.f32 1.442695, %v1139_v45  ;;  %v1269_v57 = vmul.f32 1.442695, %v1251_v46  ;;  %v1381_v58 = vmul.f32 1.442695, %v1363_v47  ;;  %v801_v60 = vsub.f32 %v4501_v19, %v6629_v56 }
  0xc3   : > { %5326 = vpow2.f32 %v821_v50  ;;  %v913_v61 = vsub.f32 %v4505_v20, %v6629_v56  ;;  %v1025_v62 = vsub.f32 %v4509_v24, %v6629_v56  ;;  %v1137_v0 = vsub.f32 %v4513_v27, %v6629_v56  ;;  %v6646_v19 = vld [vmem:[%s6562_s12 + $0x38] sm:$0xff] }
  0xc4   : > { %5328 = vpow2.f32 %v933_v51  ;;  %v817_v1 = vmul.f32 1.442695, %v801_v60  ;;  %v1249_v4 = vsub.f32 %v6607_v32, %v6629_v56  ;;  %v1361_v15 = vsub.f32 %v6616_v39, %v6629_v56 }
  0xc5   : > { %5330 = vpow2.f32 %v1045_v52  ;;  %v929_v3 = vmul.f32 1.442695, %v913_v61  ;;  %v1041_v9 = vmul.f32 1.442695, %v1025_v62  ;;  %v1153_v11 = vmul.f32 1.442695, %v1137_v0 }
  0xc6   : > { %5332 = vpow2.f32 %v1157_v55  ;;  %v1121_v20 = vadd.f32 %v1105_v63, %v1009_v59  ;;  %v1265_v8 = vmul.f32 1.442695, %v1249_v4  ;;  %v724_v24 = vmax.f32 %v6609_v34, %v6626_v53  ;;  %v6707_v61 = vld [vmem:[%s6562_s12 + $0x8] sm:$0xff] }
  0xc7   : > { %5334 = vpow2.f32 %v1269_v57  ;;  %v1443_v2 = vsel %vm1427_vm9, %v6587_v18, 0.0  ;;  %v6658_v26 = vunpack.c.h.bf16 %v6560_v7  ;;  %vm868_vm11 = vcmp.eq.s32.totalorder %v6646_v19, 0 }
  0xc8   : > { %5336 = vpow2.f32 %v1381_v58  ;;  %v1377_v27 = vmul.f32 1.442695, %v1361_v15  ;;  %v740_v28 = vmax.f32 %v724_v24, %v6643_v16  ;;  %vm980_vm12 = vcmp.eq.s32.totalorder %v6646_v19, 1 }
  0xc9   : > { %5338 = vpow2.f32 %v817_v1  ;;  %v1347_v6 = vadd.f32 %v1331_v38, %v1235_v5  ;;  %v1233_v31 = vadd.f32 %v1217_v22, %v1121_v20  ;;  %v1329_v33 = vsel %vm1313_vm10, %v6607_v32, 0.0 }
  0xca   : > { %5340 = vpow2.f32 %v929_v3  ;;  %vm1425_vm13 = vcmp.eq.s32.totalorder %v6592_v21, 5  ;;  %v6668_v7 = vunpack.c.h.bf16 %v6569_v10  ;;  %v756_v36 = vmax.f32 %v740_v28, %v6652_v23 }
  0xcb   : > { %5342 = vpow2.f32 %v1041_v9  ;;  %v884_v37 = vsel %vm868_vm11, %v6609_v34, 0.0  ;;  %v996_v38 = vsel %vm980_vm12, %v6626_v53, 0.0  ;;  %vm1092_vm14 = vcmp.eq.s32.totalorder %v6646_v19, 2 }
  0xcc   : > { %5344 = vpow2.f32 %v1153_v11  ;;  %v6675_v42 = vunpack.c.h.bf16 %v6572_v12  ;;  %v772_v43 = vmax.f32 %v756_v36, %v6658_v26  ;;  %vm1204_vm15 = vcmp.eq.s32.totalorder %v6646_v19, 3 }
  0xcd   : > { %v5327_v29 = vpop.eup %5326  ;;  %5346 = vpow2.f32 %v1265_v8  ;;  %v6680_v10 = vunpack.c.h.bf16 %v6575_v13  ;;  %v6682_v46 = vadd.f32 %v1443_v2, %v1347_v6  ;;  %v1345_v47 = vadd.f32 %v1329_v33, %v1233_v31 }
  0xce   : > { %v5329_v18 = vpop.eup %5328  ;;  %5348 = vpow2.f32 %v1377_v27  ;;  %v1441_v48 = vsel %vm1425_vm13, %v6616_v39, 0.0  ;;  %v6688_v49 = vmax.f32 %v772_v43, %v6668_v7  ;;  %v1012_v50 = vadd.f32 %v996_v38, %v884_v37 }
  0xcf   : > { %v5331_v40 = vpop.eup %5330  ;;  %v963_v41 = vadd.f32 %v5329_v18, %v5327_v29  ;;  %v1108_v51 = vsel %vm1092_vm14, %v6643_v16, 0.0  ;;  %vm1316_vm0 = vcmp.eq.s32.totalorder %v6646_v19, 4  ;;  %v1220_v54 = vsel %vm1204_vm15, %v6652_v23, 0.0  ;;  %v6738_v18 = vld [vmem:[%s6543_s17 + $0x20] sm:$0xff]  }
  0xd0   : > { %v5333_v32 = vpop.eup %5332  ;;  %v6694_v55 = vunpack.c.h.bf16 %v6579_v14  ;;  %v722_v21 = vmax.f32 %v6675_v42, %v6680_v10  ;;  %v804_v57 = vsub.f32 %v6609_v34, %v6688_v49  ;;  %v916_v58 = vsub.f32 %v6626_v53, %v6688_v49 }
  0xd1   : > { %v5335_v44 = vpop.eup %5334  ;;  %v1075_v45 = vadd.f32 %v5331_v40, %v963_v41  ;;  %v1028_v59 = vsub.f32 %v6643_v16, %v6688_v49  ;;  %v1140_v60 = vsub.f32 %v6652_v23, %v6688_v49  ;;  %v1252_v0 = vsub.f32 %v6658_v26, %v6688_v49 }
  0xd2   : > { %v5337_v12 = vpop.eup %5336  ;;  %v6712_v1 = vunpack.c.h.bf16 %v6584_v17  ;;  %v823_v3 = vmul.f32 1.442695, %v804_v57  ;;  %v935_v53 = vmul.f32 1.442695, %v916_v58  ;;  %v1364_v4 = vsub.f32 %v6668_v7, %v6688_v49 }
  0xd3   : > { %v5339_v13 = vpop.eup %5338  ;;  %v1187_v52 = vadd.f32 %v5333_v32, %v1075_v45  ;;  %v6717_v5 = vunpack.c.h.bf16 %v6597_v25  ;;  %v1047_v15 = vmul.f32 1.442695, %v1028_v59  ;;  %vm866_vm1 = vcmp.eq.s32.totalorder %v6707_v61, 0 }
  0xd4   : > { %v5341_v39 = vpop.eup %5340  ;;  %5350 = vpow2.f32 %v823_v3  ;;  %v1159_v20 = vmul.f32 1.442695, %v1140_v60  ;;  %v738_v17 = vmax.f32 %v722_v21, %v6694_v55  ;;  %vm978_vm2 = vcmp.eq.s32.totalorder %v6707_v61, 1 }
  0xd5   : > { %v5343_v14 = vpop.eup %5342  ;;  %v1299_v62 = vadd.f32 %v5335_v44, %v1187_v52  ;;  %v961_v63 = vadd.f32 %v5341_v39, %v5339_v13  ;;  %v1124_v8 = vadd.f32 %v1108_v51, %v1012_v50  ;;  %v1271_v23 = vmul.f32 1.442695, %v1252_v0  ;;  %v6777_v13 = vld [vmem:[%s6543_s17 + $0x68] sm:$0xff]  }
  0xd6   : > { %v5345_v34 = vpop.eup %5344  ;;  %v1383_v24 = vmul.f32 1.442695, %v1364_v4  ;;  %v6723_v2 = vunpack.c.h.bf16 %v6603_v30  ;;  %v754_v27 = vmax.f32 %v738_v17, %v6712_v1  ;;  %v882_v29 = vsel %vm866_vm1, %v6675_v42, 0.0  ;;  %v6735_v30 = vld [vmem:[%s6543_s17 + $0x8] sm:$0xff]   ;;  %v6796_v4 = vld [vmem:[%s6543_s17 + $0x80] sm:$0xff]  }
  0xd7   : > { %v1411_v9 = vadd.f32 %v5337_v12, %v1299_v62  ;;  %v1073_v11 = vadd.f32 %v5343_v14, %v961_v63  ;;  %v5347_v16 = vpop.eup %5346  ;;  %v994_v6 = vsel %vm978_vm2, %v6680_v10, 0.0  ;;  %v6730_v31 = vadd.f32 %v1441_v48, %v1345_v47  ;;  %v6766_v12 = vld [vmem:[%s6543_s17 + $0x50] sm:$0xff]  }
  0xd8   : > { %v5349_v25 = vpop.eup %5348  ;;  %v770_v33 = vmax.f32 %v754_v27, %v6717_v5  ;;  %vm1090_vm3 = vcmp.eq.s32.totalorder %v6707_v61, 2  ;;  %v1236_v37 = vadd.f32 %v1220_v54, %v1124_v8  ;;  %v1332_v40 = vsel %vm1316_vm0, %v6658_v26, 0.0  ;;  %v6755_v26 = vld [vmem:[%s6543_s17 + $0x38] sm:$0xff]  }
  0xd9   : > { %5352 = vlog2.f32 %v1411_v9  ;;  %v1185_v22 = vadd.f32 %v5345_v34, %v1073_v11  ;;  %vm1428_vm4 = vcmp.eq.s32.totalorder %v6646_v19, 5  ;;  %v1010_v38 = vadd.f32 %v994_v6, %v882_v29 }
  0xda   : > { %5354 = vpow2.f32 %v935_v53  ;;  %v6745_v41 = vmax.f32 %v770_v33, %v6723_v2  ;;  %vm1537_vm5 = vcmask 392192   ;;  %v1106_v32 = vsel %vm1090_vm3, %v6694_v55, 0.0 }
  0xdb   : > { %v1297_v28 = vadd.f32 %v5347_v16, %v1185_v22  ;;  %5356 = vpow2.f32 %v1047_v15  ;;  %v6749_v43 = vunpack.c.h.bf16 %v6735_v30  ;;  %v6752_v44 = vunpack.c.h.bf16 %v6738_v18 }
  0xdc   : > { %5358 = vpow2.f32 %v1159_v20  ;;  %v802_v19 = vsub.f32 %v6675_v42, %v6745_v41  ;;  %v914_v45 = vsub.f32 %v6680_v10, %v6745_v41  ;;  %v1026_v47 = vsub.f32 %v6694_v55, %v6745_v41  ;;  %v6780_v10 = vld [vmem:[%s6562_s12 + $0x18] sm:$0xff] }
  0xdd   : > { %v1409_v36 = vadd.f32 %v5349_v25, %v1297_v28  ;;  %5360 = vpow2.f32 %v1271_v23  ;;  %v1138_v48 = vsub.f32 %v6712_v1, %v6745_v41  ;;  %v6768_v50 = vadd.f32 %v1332_v40, %v1236_v37 }
  0xde   : > { %5362 = vpow2.f32 %v1383_v24  ;;  %v6771_v51 = vsel %vm1428_vm4, %v6668_v7, 0.0  ;;  %vm1202_vm6 = vcmp.eq.s32.totalorder %v6707_v61, 3  ;;  %v1250_v42 = vsub.f32 %v6717_v5, %v6745_v41  ;;  %v5351_v52 = vpop.eup %5350 }
  0xdf   : > { %5364 = vlog2.f32 %v1409_v36  ;;  %v819_v54 = vmul.f32 1.442695, %v802_v19  ;;  %v931_v55 = vmul.f32 1.442695, %v914_v45  ;;  %v1043_v21 = vmul.f32 1.442695, %v1026_v47 }
  0xe0   : > { %v6783_v39 = vunpack.c.h.bf16 %v6755_v26  ;;  %v1122_v7 = vadd.f32 %v1106_v32, %v1010_v38  ;;  %v1155_v58 = vmul.f32 1.442695, %v1138_v48  ;;  %v1362_v59 = vsub.f32 %v6723_v2, %v6745_v41 }
  0xe1   : > { %v6788_v60 = vunpack.c.h.bf16 %v6766_v12  ;;  %5366 = vpow2.f32 %v819_v54  ;;  %v6791_v63 = vunpack.c.h.bf16 %v6777_v13  ;;  %v1909_v0 = vmax.f32 %v6749_v43, %v6752_v44 }
  0xe2   : > { %5368 = vpow2.f32 %v931_v55  ;;  %v1267_v53 = vmul.f32 1.442695, %v1250_v42  ;;  %vm2053_vm7 = vcmp.eq.s32.totalorder %v6780_v10, 0  ;;  %vm2165_vm8 = vcmp.eq.s32.totalorder %v6780_v10, 1 }
  0xe3   : > { %v5353_v57 = vpop.eup %5352  ;;  %5370 = vpow2.f32 %v1043_v21  ;;  %v1925_v15 = vmax.f32 %v1909_v0, %v6783_v39  ;;  %v1218_v17 = vsel %vm1202_vm6, %v6712_v1, 0.0  ;;  %v1379_v22 = vmul.f32 1.442695, %v1362_v59 }
  0xe4   : > { %v5355_v14 = vpop.eup %5354  ;;  %v1478_v62 = vmul.f32 0.6931472, %v5353_v57  ;;  %5372 = vpow2.f32 %v1155_v58  ;;  %vm1314_vm9 = vcmp.eq.s32.totalorder %v6707_v61, 4  ;;  %v2069_v28 = vsel %vm2053_vm7, %v6749_v43, 0.0 }
  0xe5   : > { %v5357_v34 = vpop.eup %5356  ;;  %v964_v3 = vadd.f32 %v5355_v14, %v5351_v52  ;;  %v1941_v25 = vmax.f32 %v1925_v15, %v6788_v60  ;;  %5374 = vpow2.f32 %v1267_v53  ;;  %v2181_v1 = vsel %vm2165_vm8, %v6752_v44, 0.0 }
  0xe6   : > { %v5359_v9 = vpop.eup %5358  ;;  %v1507_v11 = vadd.f32 %v1478_v62, %v6612_v35  ;;  %v6808_v35 = vunpack.c.h.bf16 %v6796_v4  ;;  %vm2277_vm10 = vcmp.eq.s32.totalorder %v6780_v10, 2  ;;  %v1234_v36 = vadd.f32 %v1218_v17, %v1122_v7 }
  0xe7   : > { %v5361_v16 = vpop.eup %5360  ;;  %v1076_v20 = vadd.f32 %v5357_v34, %v964_v3  ;;  %5376 = vpow2.f32 %v1379_v22  ;;  %vm1426_vm11 = vcmp.eq.s32.totalorder %v6707_v61, 5  ;;  %v1330_v40 = vsel %vm1314_vm9, %v6717_v5, 0.0  ;;  %v6855_v3 = vld [vmem:[%s6562_s12 + $0x10] sm:$0xff] }
  0xe8   : > { %v5363_v8 = vpop.eup %5362  ;;  %v1523_v23 = vsub.f32 %v1507_v11, %v6682_v46  ;;  %v1957_v46 = vmax.f32 %v1941_v25, %v6791_v63  ;;  %v2197_v32 = vadd.f32 %v2181_v1, %v2069_v28  ;;  %v2293_v45 = vsel %vm2277_vm10, %v6783_v39, 0.0  ;;  %v6885_v28 = vld [vmem:[%s6543_s17 + $0xb0] sm:$0xff]  }
  0xe9   : > { %v5365_v24 = vpop.eup %5364  ;;  %v1188_v27 = vadd.f32 %v5359_v9, %v1076_v20  ;;  %vm2389_vm12 = vcmp.eq.s32.totalorder %v6780_v10, 3  ;;  %v6829_v47 = vunpack.c.l.bf16 %v6735_v30  ;;  %v6843_v21 = vunpack.c.l.bf16 %v6738_v18 }
  0xea   : > { %v1544_v29 = vsel %vm1537_vm5, %v1523_v23, 0.0  ;;  %v1474_v6 = vmul.f32 0.6931472, %v5365_v24  ;;  %v6824_v38 = vmax.f32 %v1957_v46, %v6808_v35  ;;  %v2309_v0 = vadd.f32 %v2293_v45, %v2197_v32 }
  0xeb   : > { %1545 = vadd.xlane.f32.xlu1 %v1544_v29  ;;  %v1300_v33 = vadd.f32 %v5361_v16, %v1188_v27  ;;  %v5367_v48 = vpop.eup %5366  ;;  %v6852_v34 = vunpack.c.l.bf16 %v6755_v26  ;;  %v2405_v61 = vsel %vm2389_vm12, %v6788_v60, 0.0  ;;  %vm2501_vm13 = vcmp.eq.s32.totalorder %v6780_v10, 4 }
  0xec   : > { %v1505_v37 = vadd.f32 %v1474_v6, %v6629_v56  ;;  %v1989_v56 = vsub.f32 %v6749_v43, %v6824_v38  ;;  %v2101_v5 = vsub.f32 %v6752_v44, %v6824_v38  ;;  %v2213_v52 = vsub.f32 %v6783_v39, %v6824_v38  ;;  %v5369_v54 = vpop.eup %5368 }
  0xed   : > { %v1412_v19 = vadd.f32 %v5363_v8, %v1300_v33  ;;  %v2325_v55 = vsub.f32 %v6788_v60, %v6824_v38  ;;  %v2437_v30 = vsub.f32 %v6791_v63, %v6824_v38  ;;  %v962_v57 = vadd.f32 %v5369_v54, %v5367_v48  ;;  %v6896_v33 = vld [vmem:[%s6543_s17 + $0xc8] sm:$0xff]  }
  0xee   : > { %v1521_v42 = vsub.f32 %v1505_v37, %v6730_v31  ;;  %v5371_v31 = vpop.eup %5370  ;;  %v2006_v44 = vmul.f32 1.442695, %v1989_v56  ;;  %v2118_v7 = vmul.f32 1.442695, %v2101_v5  ;;  %v1442_v39 = vsel %vm1426_vm11, %v6723_v2, 0.0 }
  0xef   : > { %5378 = vlog2.f32 %v1412_v19  ;;  %v5373_v58 = vpop.eup %5372  ;;  %v2230_v59 = vmul.f32 1.442695, %v2213_v52  ;;  %v2342_v14 = vmul.f32 1.442695, %v2325_v55  ;;  %v2549_v62 = vsub.f32 %v6808_v35, %v6824_v38 }
  0xf0   : > { %v1538_v43 = vsel %vm1537_vm5, %v1521_v42, 0.0  ;;  %v1074_v18 = vadd.f32 %v5371_v31, %v962_v57  ;;  %5380 = vpow2.f32 %v2006_v44  ;;  %v5375_v53 = vpop.eup %5374  ;;  %v2454_v2 = vmul.f32 1.442695, %v2437_v30  ;;  %v6934_v31 = vld [vmem:[%s6543_s17 + $0xf8] sm:$0xff]  }
  0xf1   : > { %1539 = vadd.xlane.f32.xlu0 %v1538_v43  ;;  %5382 = vpow2.f32 %v2118_v7  ;;  %v6862_v11 = vunpack.c.l.bf16 %v6766_v12  ;;  %v1908_v26 = vmax.f32 %v6829_v47, %v6843_v21  ;;  %v5377_v15 = vpop.eup %5376  ;;  %v1346_v16 = vadd.f32 %v1330_v40, %v1234_v36  ;;  %v6873_v12 = vld [vmem:[%s6543_s17 + $0x98] sm:$0xff]   ;;  %v6899_v36 = vld [vmem:[%s6543_s17 + $0xe0] sm:$0xff]   ;;  %v6937_v43 = vld [vmem:[%s6562_s12 + $0x48] sm:$0xff] }
  0xf2   : > { %v1186_v9 = vadd.f32 %v5373_v58, %v1074_v18  ;;  %5384 = vpow2.f32 %v2230_v59  ;;  %v2566_v20 = vmul.f32 1.442695, %v2549_v62  ;;  %vm2052_vm14 = vcmp.eq.s32.totalorder %v6855_v3, 0  ;;  %v6949_v62 = vld [vmem:[%s6543_s17 + $0x110] sm:$0xff]  }
  0xf3   : > { %5386 = vpow2.f32 %v2342_v14  ;;  %v6868_v17 = vunpack.c.l.bf16 %v6777_v13  ;;  %v1924_v22 = vmax.f32 %v1908_v26, %v6852_v34  ;;  %vm2164_vm15 = vcmp.eq.s32.totalorder %v6855_v3, 1 }
  0xf4   : > { %v1298_v60 = vadd.f32 %v5375_v53, %v1186_v9  ;;  %v2421_v8 = vadd.f32 %v2405_v61, %v2309_v0  ;;  %5388 = vpow2.f32 %v2454_v2  ;;  %v2517_v23 = vsel %vm2501_vm13, %v6791_v63, 0.0 }
  0xf5   : > { %vm2613_vm0 = vcmp.eq.s32.totalorder %v6780_v10, 5  ;;  %v6880_v13 = vunpack.c.l.bf16 %v6796_v4  ;;  %v1940_v24 = vmax.f32 %v1924_v22, %v6862_v11  ;;  %v2068_v27 = vsel %vm2052_vm14, %v6829_v47, 0.0 }
  0xf6   : > { %v1410_v25 = vadd.f32 %v5377_v15, %v1298_v60  ;;  %5390 = vpow2.f32 %v2566_v20  ;;  %v2180_v29 = vsel %vm2164_vm15, %v6843_v21, 0.0  ;;  %vm2276_vm1 = vcmp.eq.s32.totalorder %v6855_v3, 2 }
  0xf7   : > { %v6890_v63 = vunpack.c.h.bf16 %v6873_v12  ;;  %v1460_v6 = vadd.f32 %v6771_v51, %v6768_v50  ;;  %v1956_v46 = vmax.f32 %v1940_v24, %v6868_v17  ;;  %v6901_v37 = vadd.f32 %v1442_v39, %v1346_v16 }
  0xf8   : > { %5392 = vlog2.f32 %v1410_v25  ;;  %v6903_v40 = vadd.f32 %v2517_v23, %v2421_v8  ;;  %v6908_v32 = vsel %vm2613_vm0, %v6808_v35, 0.0  ;;  %v6911_v19 = vunpack.c.h.bf16 %v6885_v28 }
  0xf9   : > { %v5379_v1 = vpop.eup %5378  ;;  %v6915_v45 = vmax.f32 %v1956_v46, %v6880_v13  ;;  %v2196_v48 = vadd.f32 %v2180_v29, %v2068_v27  ;;  %v2292_v42 = vsel %vm2276_vm1, %v6852_v34, 0.0  ;;  %vm2388_vm2 = vcmp.eq.s32.totalorder %v6855_v3, 3 }
  0xfa   : > { %v1480_v4 = vmul.f32 0.6931472, %v5379_v1  ;;  %v5381_v50 = vpop.eup %5380  ;;  %v6922_v10 = vunpack.c.h.bf16 %v6896_v33  ;;  %v6925_v35 = vunpack.c.h.bf16 %v6899_v36  ;;  %v6952_v53 = vunpack.c.h.bf16 %v6934_v31 }
  0xfb   : > { %v5383_v56 = vpop.eup %5382  ;;  %v1988_v55 = vsub.f32 %v6829_v47, %v6915_v45  ;;  %v2100_v30 = vsub.f32 %v6843_v21, %v6915_v45  ;;  %v2212_v44 = vsub.f32 %v6852_v34, %v6915_v45  ;;  %v2324_v7 = vsub.f32 %v6862_v11, %v6915_v45 }
  0xfc   : > { %v1508_v51 = vadd.f32 %v1480_v4, %v6688_v49  ;;  %v1911_v49 = vmax.f32 %v6890_v63, %v6911_v19  ;;  %v5385_v5 = vpop.eup %5384  ;;  %v2149_v54 = vadd.f32 %v5383_v56, %v5381_v50  ;;  %v2436_v58 = vsub.f32 %v6868_v17, %v6915_v45 }
  0xfd   : > { %v5387_v57 = vpop.eup %5386  ;;  %v2548_v47 = vsub.f32 %v6880_v13, %v6915_v45  ;;  %v2004_v59 = vmul.f32 1.442695, %v1988_v55  ;;  %v2116_v14 = vmul.f32 1.442695, %v2100_v30  ;;  %v2228_v0 = vmul.f32 1.442695, %v2212_v44 }
  0xfe   : > { %v1524_v52 = vsub.f32 %v1508_v51, %v1460_v6  ;;  %v2261_v21 = vadd.f32 %v5385_v5, %v2149_v54  ;;  %v5389_v18 = vpop.eup %5388  ;;  %v2340_v34 = vmul.f32 1.442695, %v2324_v7  ;;  %vm2055_vm3 = vcmp.eq.s32.totalorder %v6937_v43, 0 }
  0xff   : > { %5394 = vpow2.f32 %v2004_v59  ;;  %v1927_v2 = vmax.f32 %v1911_v49, %v6922_v10  ;;  %vm2167_vm4 = vcmp.eq.s32.totalorder %v6937_v43, 1  ;;  %v2452_v26 = vmul.f32 1.442695, %v2436_v58 }
 0x100   : > { %v1547_v39 = vsel %vm1537_vm5, %v1524_v52, 0.0  ;;  %v2373_v61 = vadd.f32 %v5387_v57, %v2261_v21  ;;  %v5391_v9 = vpop.eup %5390  ;;  %5396 = vpow2.f32 %v2116_v14  ;;  %vm2500_vm6 = vcmp.eq.s32.totalorder %v6855_v3, 4 }
 0x101   : > { %1548 = vadd.xlane.f32.xlu1 %v1547_v39  ;;  %v6959_v15 = vunpack.c.h.bf16 %v6949_v62  ;;  %5398 = vpow2.f32 %v2228_v0  ;;  %v2564_v60 = vmul.f32 1.442695, %v2548_v47  ;;  %v1943_v22 = vmax.f32 %v1927_v2, %v6925_v35 }
 0x102   : > { %v5393_v16 = vpop.eup %5392  ;;  %v2485_v20 = vadd.f32 %v5389_v18, %v2373_v61  ;;  %5400 = vpow2.f32 %v2340_v34  ;;  %v2071_v23 = vsel %vm2055_vm3, %v6890_v63, 0.0  ;;  %v2183_v25 = vsel %vm2167_vm4, %v6911_v19, 0.0 }
 0x103   : > { %v1476_v8 = vmul.f32 0.6931472, %v5393_v16  ;;  %v2404_v27 = vsel %vm2388_vm2, %v6862_v11, 0.0  ;;  %v1959_v1 = vmax.f32 %v1943_v22, %v6952_v53  ;;  %vm2279_vm7 = vcmp.eq.s32.totalorder %v6937_v43, 2 }
 0x104   : > { %v2597_v24 = vadd.f32 %v5391_v9, %v2485_v20  ;;  %v2308_v6 = vadd.f32 %v2292_v42, %v2196_v48  ;;  %5402 = vpow2.f32 %v2452_v26  ;;  %v2516_v4 = vsel %vm2500_vm6, %v6868_v17, 0.0 }
 0x105   : > { %v1506_v29 = vadd.f32 %v1476_v8, %v6745_v41  ;;  %vm2612_vm8 = vcmp.eq.s32.totalorder %v6855_v3, 5  ;;  %v6977_v46 = vmax.f32 %v1959_v1, %v6959_v15  ;;  %v2199_v50 = vadd.f32 %v2183_v25, %v2071_v23  ;;  %v7040_v8 = vld [vmem:[%s6543_s17 + $0x138] sm:$0xff]  }
 0x106   : > { %5404 = vlog2.f32 %v2597_v24  ;;  %v2295_v51 = vsel %vm2279_vm7, %v6922_v10, 0.0  ;;  %vm2391_vm9 = vcmp.eq.s32.totalorder %v6937_v43, 3  ;;  %v6994_v49 = vunpack.c.l.bf16 %v6873_v12 }
 0x107   : > { %v1522_v11 = vsub.f32 %v1506_v29, %v6901_v37  ;;  %5406 = vpow2.f32 %v2564_v60  ;;  %v1991_v41 = vsub.f32 %v6890_v63, %v6977_v46  ;;  %v2103_v17 = vsub.f32 %v6911_v19, %v6977_v46 }
 0x108   : > { %v2215_v48 = vsub.f32 %v6922_v10, %v6977_v46  ;;  %v2327_v42 = vsub.f32 %v6925_v35, %v6977_v46  ;;  %v2439_v37 = vsub.f32 %v6952_v53, %v6977_v46  ;;  %v6997_v5 = vunpack.c.l.bf16 %v6885_v28 }
 0x109   : > { %v1541_v56 = vsel %vm1537_vm5, %v1522_v11, 0.0  ;;  %v5395_v63 = vpop.eup %5394  ;;  %v2420_v19 = vadd.f32 %v2404_v27, %v2308_v6  ;;  %v2010_v52 = vmul.f32 1.442695, %v1991_v41  ;;  %v2122_v54 = vmul.f32 1.442695, %v2103_v17 }
 0x10a   : > { %1542 = vadd.xlane.f32.xlu0 %v1541_v56  ;;  %v2234_v10 = vmul.f32 1.442695, %v2215_v48  ;;  %v5397_v55 = vpop.eup %5396  ;;  %v2311_v30 = vadd.f32 %v2295_v51, %v2199_v50  ;;  %v2346_v57 = vmul.f32 1.442695, %v2327_v42  ;;  %v2551_v44 = vsub.f32 %v6959_v15, %v6977_v46  ;;  %v7060_v50 = vld [vmem:[%s6543_s17 + $0x150] sm:$0xff]  }
 0x10b   : > { %v7002_v7 = vunpack.c.l.bf16 %v6896_v33  ;;  %v5399_v12 = vpop.eup %5398  ;;  %v2148_v58 = vadd.f32 %v5397_v55, %v5395_v63  ;;  %5408 = vpow2.f32 %v2010_v52  ;;  %v2407_v28 = vsel %vm2391_vm9, %v6925_v35, 0.0 }
 0x10c   : > { %vm2503_vm10 = vcmp.eq.s32.totalorder %v6937_v43, 4  ;;  %v5401_v47 = vpop.eup %5400  ;;  %5410 = vpow2.f32 %v2122_v54  ;;  %v2458_v39 = vmul.f32 1.442695, %v2439_v37  ;;  %v7009_v21 = vunpack.c.l.bf16 %v6899_v36  ;;  %v7022_v36 = vld [vmem:[%s6562_s12 + $0x40] sm:$0xff] }
 0x10d   : > { %v1910_v33 = vmax.f32 %v6994_v49, %v6997_v5  ;;  %v2645_v59 = vadd.f32 %v6908_v32, %v6903_v40  ;;  %v2260_v14 = vadd.f32 %v5399_v12, %v2148_v58  ;;  %v2628_v18 = vsel %vm2612_vm8, %v6880_v13, 0.0  ;;  %v7085_v58 = vld [vmem:[%s6543_s17 + $0x180] sm:$0xff]  }
 0x10e   : > { %5412 = vpow2.f32 %v2234_v10  ;;  %v5403_v35 = vpop.eup %5402  ;;  %v2570_v0 = vmul.f32 1.442695, %v2551_v44  ;;  %v7019_v34 = vunpack.c.l.bf16 %v6934_v31  ;;  %v2532_v40 = vadd.f32 %v2516_v4, %v2420_v19  ;;  %v7076_v19 = vld [vmem:[%s6543_s17 + $0x168] sm:$0xff]  }
 0x10f   : > { %5414 = vpow2.f32 %v2346_v57  ;;  %v1926_v61 = vmax.f32 %v1910_v33, %v7002_v7  ;;  %v2372_v9 = vadd.f32 %v5401_v47, %v2260_v14  ;;  %v2423_v32 = vadd.f32 %v2407_v28, %v2311_v30  ;;  %v7088_v28 = vld [vmem:[%s6562_s12 + $0x68] sm:$0xff] }
 0x110   : > { %v5405_v2 = vpop.eup %5404  ;;  %v2519_v3 = vsel %vm2503_vm10, %v6952_v53, 0.0  ;;  %5416 = vpow2.f32 %v2458_v39  ;;  %v7029_v31 = vunpack.c.l.bf16 %v6949_v62  ;;  %vm2054_vm11 = vcmp.eq.s32.totalorder %v7022_v36, 0  ;;  %v7037_v53 = vld [vmem:[%s6543_s17 + $0x120] sm:$0xff]  }
 0x111   : > { %v5407_v13 = vpop.eup %5406  ;;  %v2663_v26 = vmul.f32 0.6931472, %v5405_v2  ;;  %v1942_v16 = vmax.f32 %v1926_v61, %v7009_v21  ;;  %v2484_v20 = vadd.f32 %v5403_v35, %v2372_v9  ;;  %vm2166_vm12 = vcmp.eq.s32.totalorder %v7022_v36, 1 }
 0x112   : > { %5418 = vpow2.f32 %v2570_v0  ;;  %v7042_v62 = vadd.f32 %v2628_v18, %v2532_v40  ;;  %v7044_v25 = vadd.f32 %v2519_v3, %v2423_v32  ;;  %vm2615_vm13 = vcmp.eq.s32.totalorder %v6937_v43, 5 }
 0x113   : > { %v2693_v60 = vadd.f32 %v2663_v26, %v6824_v38  ;;  %v1958_v22 = vmax.f32 %v1942_v16, %v7019_v34  ;;  %v2596_v23 = vadd.f32 %v5407_v13, %v2484_v20  ;;  %v2070_v38 = vsel %vm2054_vm11, %v6994_v49, 0.0 }
 0x114   : > { %v2182_v1 = vsel %vm2166_vm12, %v6997_v5, 0.0  ;;  %vm2278_vm14 = vcmp.eq.s32.totalorder %v7022_v36, 2  ;;  %v7054_v6 = vunpack.c.h.bf16 %v7037_v53  ;;  %v7057_v4 = vunpack.c.h.bf16 %v7040_v8 }
 0x115   : > { %v2709_v24 = vsub.f32 %v2693_v60, %v2645_v59  ;;  %v7048_v27 = vmax.f32 %v1958_v22, %v7029_v31  ;;  %v5409_v29 = vpop.eup %5408  ;;  %5420 = vlog2.f32 %v2596_v23  ;;  %v7079_v55 = vunpack.c.h.bf16 %v7060_v50 }
 0x116   : > { %v5411_v11 = vpop.eup %5410  ;;  %v2198_v57 = vadd.f32 %v2182_v1, %v2070_v38  ;;  %v2294_v44 = vsel %vm2278_vm14, %v7002_v7, 0.0  ;;  %vm2390_vm15 = vcmp.eq.s32.totalorder %v7022_v36, 3  ;;  %v7092_v39 = vunpack.c.h.bf16 %v7076_v19 }
 0x117   : > { %v2727_v51 = vsel %vm1537_vm5, %v2709_v24, 0.0  ;;  %v1990_v41 = vsub.f32 %v6994_v49, %v7048_v27  ;;  %v2102_v17 = vsub.f32 %v6997_v5, %v7048_v27  ;;  %v2214_v48 = vsub.f32 %v7002_v7, %v7048_v27  ;;  %v7097_v7 = vld [vmem:[%s6543_s17 + $0x198] sm:$0xff]  }
 0x118   : > { %v5413_v42 = vpop.eup %5412  ;;  %2728 = vadd.xlane.f32.xlu1 %v2727_v51  ;;  %v2151_v56 = vadd.f32 %v5411_v11, %v5409_v29  ;;  %v2326_v37 = vsub.f32 %v7009_v21, %v7048_v27  ;;  %v2438_v63 = vsub.f32 %v7019_v34, %v7048_v27  ;;  %v2550_v49 = vsub.f32 %v7029_v31, %v7048_v27 }
 0x119   : > { %v5415_v5 = vpop.eup %5414  ;;  %v2008_v52 = vmul.f32 1.442695, %v1990_v41  ;;  %v2120_v54 = vmul.f32 1.442695, %v2102_v17  ;;  %v2232_v10 = vmul.f32 1.442695, %v2214_v48  ;;  %v726_v33 = vmax.f32 %v7054_v6, %v7057_v4 }
 0x11a   : > { %v2263_v30 = vadd.f32 %v5413_v42, %v2151_v56  ;;  %v2344_v12 = vmul.f32 1.442695, %v2326_v37  ;;  %v5417_v47 = vpop.eup %5416  ;;  %v2456_v14 = vmul.f32 1.442695, %v2438_v63  ;;  %v2568_v18 = vmul.f32 1.442695, %v2550_v49 }
 0x11b   : > { %5422 = vpow2.f32 %v2008_v52  ;;  %v7100_v0 = vunpack.c.h.bf16 %v7085_v58  ;;  %v742_v61 = vmax.f32 %v726_v33, %v7079_v55  ;;  %vm870_vm0 = vcmp.eq.s32.totalorder %v7088_v28, 0  ;;  %v7163_v33 = vld [vmem:[%s6562_s12 + $0x60] sm:$0xff] }
 0x11c   : > { %v2375_v59 = vadd.f32 %v5415_v5, %v2263_v30  ;;  %5424 = vpow2.f32 %v2120_v54  ;;  %v5419_v35 = vpop.eup %5418  ;;  %v2631_v9 = vsel %vm2615_vm13, %v6959_v15, 0.0  ;;  %vm982_vm1 = vcmp.eq.s32.totalorder %v7088_v28, 1 }
 0x11d   : > { %5426 = vpow2.f32 %v2232_v10  ;;  %v2310_v40 = vadd.f32 %v2294_v44, %v2198_v57  ;;  %vm2502_vm2 = vcmp.eq.s32.totalorder %v7022_v36, 4  ;;  %v7110_v32 = vunpack.c.h.bf16 %v7097_v7 }
 0x11e   : > { %v2487_v2 = vadd.f32 %v5417_v47, %v2375_v59  ;;  %5428 = vpow2.f32 %v2344_v12  ;;  %v758_v3 = vmax.f32 %v742_v61, %v7092_v39  ;;  %v2406_v16 = vsel %vm2390_vm15, %v7009_v21, 0.0 }
 0x11f   : > { %v5421_v13 = vpop.eup %5420  ;;  %5430 = vpow2.f32 %v2456_v14  ;;  %v886_v43 = vsel %vm870_vm0, %v7054_v6, 0.0  ;;  %v998_v60 = vsel %vm982_vm1, %v7057_v4, 0.0  ;;  %v7120_v22 = vadd.f32 %v2631_v9, %v7044_v25 }
 0x120   : > { %v2599_v26 = vadd.f32 %v5419_v35, %v2487_v2  ;;  %v2661_v15 = vmul.f32 0.6931472, %v5421_v13  ;;  %5432 = vpow2.f32 %v2568_v18  ;;  %v774_v20 = vmax.f32 %v758_v3, %v7100_v0 }
 0x121   : > { %v2518_v24 = vsel %vm2502_vm2, %v7019_v34, 0.0  ;;  %vm1094_vm3 = vcmp.eq.s32.totalorder %v7088_v28, 2  ;;  %v2422_v21 = vadd.f32 %v2406_v16, %v2310_v40  ;;  %v1014_v1 = vadd.f32 %v998_v60, %v886_v43  ;;  %v7201_v43 = vld [vmem:[%s6543_s17 + $0x158] sm:$0xff]  }
 0x122   : > { %5434 = vlog2.f32 %v2599_v26  ;;  %v2692_v23 = vadd.f32 %v2661_v15, %v6915_v45  ;;  %v7125_v38 = vmax.f32 %v774_v20, %v7110_v32  ;;  %v7129_v29 = vunpack.c.l.bf16 %v7037_v53  ;;  %v7189_v26 = vld [vmem:[%s6543_s17 + $0x140] sm:$0xff]  }
 0x123   : > { %v7132_v11 = vunpack.c.l.bf16 %v7040_v8  ;;  %v1110_v48 = vsel %vm1094_vm3, %v7079_v55, 0.0  ;;  %vm1206_vm4 = vcmp.eq.s32.totalorder %v7088_v28, 3  ;;  %vm2614_vm6 = vcmp.eq.s32.totalorder %v7022_v36, 5 }
 0x124   : > { %v2708_v51 = vsub.f32 %v2692_v23, %v7042_v62  ;;  %v806_v45 = vsub.f32 %v7054_v6, %v7125_v38  ;;  %v918_v34 = vsub.f32 %v7057_v4, %v7125_v38  ;;  %v1030_v41 = vsub.f32 %v7079_v55, %v7125_v38 }
 0x125   : > { %v5423_v25 = vpop.eup %5422  ;;  %v1142_v53 = vsub.f32 %v7092_v39, %v7125_v38  ;;  %v1254_v8 = vsub.f32 %v7100_v0, %v7125_v38  ;;  %v7147_v62 = vunpack.c.l.bf16 %v7060_v50  ;;  %v1366_v52 = vsub.f32 %v7110_v32, %v7125_v38 }
 0x126   : > { %v5425_v17 = vpop.eup %5424  ;;  %v2724_v6 = vsel %vm1537_vm5, %v2708_v51, 0.0  ;;  %v827_v4 = vmul.f32 1.442695, %v806_v45  ;;  %v939_v37 = vmul.f32 1.442695, %v918_v34  ;;  %v7154_v50 = vunpack.c.l.bf16 %v7076_v19 }
 0x127   : > { %v5427_v42 = vpop.eup %5426  ;;  %v2150_v56 = vadd.f32 %v5425_v17, %v5423_v25  ;;  %2725 = vadd.xlane.f32.xlu0 %v2724_v6  ;;  %v1051_v49 = vmul.f32 1.442695, %v1030_v41  ;;  %v1163_v5 = vmul.f32 1.442695, %v1142_v53  ;;  %v725_v10 = vmax.f32 %v7129_v29, %v7132_v11 }
 0x128   : > { %v5429_v63 = vpop.eup %5428  ;;  %5436 = vpow2.f32 %v827_v4  ;;  %v1126_v30 = vadd.f32 %v1110_v48, %v1014_v1  ;;  %v1275_v57 = vmul.f32 1.442695, %v1254_v8  ;;  %v7160_v47 = vunpack.c.l.bf16 %v7085_v58  ;;  %v7239_v4 = vld [vmem:[%s6543_s17 + $0x188] sm:$0xff]  }
 0x129   : > { %v2262_v54 = vadd.f32 %v5427_v42, %v2150_v56  ;;  %v5431_v55 = vpop.eup %5430  ;;  %5438 = vpow2.f32 %v939_v37  ;;  %v741_v19 = vmax.f32 %v725_v10, %v7147_v62  ;;  %v1222_v14 = vsel %vm1206_vm4, %v7092_v39, 0.0 }
 0x12a   : > { %v5433_v44 = vpop.eup %5432  ;;  %5440 = vpow2.f32 %v1051_v49  ;;  %vm1318_vm7 = vcmp.eq.s32.totalorder %v7088_v28, 4  ;;  %v1387_v18 = vmul.f32 1.442695, %v1366_v52  ;;  %v7171_v58 = vunpack.c.l.bf16 %v7097_v7  ;;  %v7186_v7 = vld [vmem:[%s6543_s17 + $0x128] sm:$0xff]  }
 0x12b   : > { %v2374_v12 = vadd.f32 %v5429_v63, %v2262_v54  ;;  %5442 = vpow2.f32 %v1163_v5  ;;  %v757_v2 = vmax.f32 %v741_v19, %v7154_v50  ;;  %v7174_v9 = vadd.f32 %v2518_v24, %v2422_v21  ;;  %v7248_v54 = vld [vmem:[%s6543_s17 + $0x1a0] sm:$0xff]   ;;  %v7256_v19 = vld [vmem:[%s6562_s12 + $0x78] sm:$0xff] }
 0x12c   : > { %v5435_v59 = vpop.eup %5434  ;;  %v7179_v40 = vsel %vm2614_vm6, %v7029_v31, 0.0  ;;  %5444 = vpow2.f32 %v1275_v57  ;;  %vm869_vm8 = vcmp.eq.s32.totalorder %v7163_v33, 0  ;;  %vm981_vm9 = vcmp.eq.s32.totalorder %v7163_v33, 1 }
 0x12d   : > { %v2667_v35 = vmul.f32 0.6931472, %v5435_v59  ;;  %v2486_v61 = vadd.f32 %v5431_v55, %v2374_v12  ;;  %v773_v13 = vmax.f32 %v757_v2, %v7160_v47  ;;  %v1238_v16 = vadd.f32 %v1222_v14, %v1126_v30 }
 0x12e   : > { %v1334_v36 = vsel %vm1318_vm7, %v7100_v0, 0.0  ;;  %5446 = vpow2.f32 %v1387_v18  ;;  %vm1430_vm10 = vcmp.eq.s32.totalorder %v7088_v28, 5  ;;  %vm1093_vm11 = vcmp.eq.s32.totalorder %v7163_v33, 2 }
 0x12f   : > { %v2695_v39 = vadd.f32 %v2667_v35, %v6977_v46  ;;  %v2598_v3 = vadd.f32 %v5433_v44, %v2486_v61  ;;  %v7197_v46 = vmax.f32 %v773_v13, %v7171_v58  ;;  %v885_v15 = vsel %vm869_vm8, %v7129_v29, 0.0 }
 0x130   : > { %v997_v0 = vsel %vm981_vm9, %v7132_v11, 0.0  ;;  %v7208_v20 = vunpack.c.h.bf16 %v7186_v7  ;;  %v7211_v60 = vunpack.c.h.bf16 %v7189_v26  ;;  %v1446_v51 = vsel %vm1430_vm10, %v7110_v32, 0.0 }
 0x131   : > { %v2711_v31 = vsub.f32 %v2695_v39, %v7120_v22  ;;  %5448 = vlog2.f32 %v2598_v3  ;;  %v805_v24 = vsub.f32 %v7129_v29, %v7197_v46  ;;  %v917_v21 = vsub.f32 %v7132_v11, %v7197_v46  ;;  %v7231_v11 = vld [vmem:[%s6543_s17 + $0x170] sm:$0xff]  }
 0x132   : > { %v5437_v22 = vpop.eup %5436  ;;  %v1029_v1 = vsub.f32 %v7147_v62, %v7197_v46  ;;  %v1141_v45 = vsub.f32 %v7154_v50, %v7197_v46  ;;  %v1253_v34 = vsub.f32 %v7160_v47, %v7197_v46  ;;  %v7228_v29 = vunpack.c.h.bf16 %v7201_v43 }
 0x133   : > { %v2733_v23 = vsel %vm1537_vm5, %v2711_v31, 0.0  ;;  %v5439_v25 = vpop.eup %5438  ;;  %v825_v48 = vmul.f32 1.442695, %v805_v24  ;;  %v937_v53 = vmul.f32 1.442695, %v917_v21  ;;  %v1013_v42 = vadd.f32 %v997_v0, %v885_v15 }
 0x134   : > { %2734 = vadd.xlane.f32.xlu1 %v2733_v23  ;;  %v5441_v41 = vpop.eup %5440  ;;  %v966_v17 = vadd.f32 %v5439_v25, %v5437_v22  ;;  %v1049_v8 = vmul.f32 1.442695, %v1029_v1  ;;  %v1109_v32 = vsel %vm1093_vm11, %v7147_v62, 0.0  ;;  %v1161_v6 = vmul.f32 1.442695, %v1141_v45 }
 0x135   : > { %v5443_v28 = vpop.eup %5442  ;;  %v1365_v56 = vsub.f32 %v7171_v58, %v7197_v46  ;;  %5450 = vpow2.f32 %v825_v48  ;;  %v7242_v63 = vunpack.c.h.bf16 %v7231_v11  ;;  %v1913_v49 = vmax.f32 %v7208_v20, %v7211_v60 }
 0x136   : > { %v1078_v37 = vadd.f32 %v5441_v41, %v966_v17  ;;  %v5445_v5 = vpop.eup %5444  ;;  %v1350_v52 = vadd.f32 %v1334_v36, %v1238_v16  ;;  %5452 = vpow2.f32 %v937_v53  ;;  %vm1205_vm12 = vcmp.eq.s32.totalorder %v7163_v33, 3 }
 0x137   : > { %v1273_v62 = vmul.f32 1.442695, %v1253_v34  ;;  %5454 = vpow2.f32 %v1049_v8  ;;  %v7251_v55 = vunpack.c.h.bf16 %v7239_v4  ;;  %v1929_v30 = vmax.f32 %v1913_v49, %v7228_v29  ;;  %v7316_v49 = vld [vmem:[%s6562_s12 + $0x70] sm:$0xff] }
 0x138   : > { %v1190_v10 = vadd.f32 %v5443_v28, %v1078_v37  ;;  %v5447_v57 = vpop.eup %5446  ;;  %v1125_v44 = vadd.f32 %v1109_v32, %v1013_v42  ;;  %5456 = vpow2.f32 %v1161_v6  ;;  %vm1317_vm13 = vcmp.eq.s32.totalorder %v7163_v33, 4 }
 0x139   : > { %v1385_v12 = vmul.f32 1.442695, %v1365_v56  ;;  %vm1429_vm14 = vcmp.eq.s32.totalorder %v7163_v33, 5  ;;  %v7260_v18 = vunpack.c.h.bf16 %v7248_v54  ;;  %v1945_v35 = vmax.f32 %v1929_v30, %v7242_v63 }
 0x13a   : > { %v1302_v14 = vadd.f32 %v5445_v5, %v1190_v10  ;;  %v2646_v61 = vadd.f32 %v7179_v40, %v7174_v9  ;;  %v1221_v39 = vsel %vm1205_vm12, %v7154_v50, 0.0  ;;  %5458 = vpow2.f32 %v1273_v62 }
 0x13b   : > { %v5449_v59 = vpop.eup %5448  ;;  %v7268_v13 = vadd.f32 %v1446_v51, %v1350_v52  ;;  %v1961_v16 = vmax.f32 %v1945_v35, %v7251_v55  ;;  %vm2057_vm15 = vcmp.eq.s32.totalorder %v7256_v19, 0  ;;  %v1333_v31 = vsel %vm1317_vm13, %v7160_v47, 0.0 }
 0x13c   : > { %v2665_v2 = vmul.f32 0.6931472, %v5449_v59  ;;  %v1414_v3 = vadd.f32 %v5447_v57, %v1302_v14  ;;  %5460 = vpow2.f32 %v1385_v12  ;;  %v1445_v9 = vsel %vm1429_vm14, %v7171_v58, 0.0 }
 0x13d   : > { %v1237_v40 = vadd.f32 %v1221_v39, %v1125_v44  ;;  %v7278_v50 = vmax.f32 %v1961_v16, %v7260_v18  ;;  %vm2169_vm0 = vcmp.eq.s32.totalorder %v7256_v19, 1  ;;  %v2073_v0 = vsel %vm2057_vm15, %v7208_v20, 0.0  ;;  %v7350_v16 = vld [vmem:[%s6543_s17 + $0x1e0] sm:$0xff]  }
 0x13e   : > { %v2694_v36 = vadd.f32 %v2665_v2, %v7048_v27  ;;  %5462 = vlog2.f32 %v1414_v3  ;;  %v7283_v22 = vunpack.c.l.bf16 %v7186_v7  ;;  %v7286_v27 = vunpack.c.l.bf16 %v7189_v26 }
 0x13f   : > { %v5451_v47 = vpop.eup %5450  ;;  %v1993_v33 = vsub.f32 %v7208_v20, %v7278_v50  ;;  %v2105_v58 = vsub.f32 %v7211_v60, %v7278_v50  ;;  %v2217_v23 = vsub.f32 %v7228_v29, %v7278_v50  ;;  %v2329_v24 = vsub.f32 %v7242_v63, %v7278_v50 }
 0x140   : > { %v2710_v15 = vsub.f32 %v2694_v36, %v2646_v61  ;;  %v5453_v21 = vpop.eup %5452  ;;  %v2185_v1 = vsel %vm2169_vm0, %v7211_v60, 0.0  ;;  %v2441_v26 = vsub.f32 %v7251_v55, %v7278_v50  ;;  %v7301_v25 = vunpack.c.l.bf16 %v7201_v43  ;;  %v7336_v61 = vld [vmem:[%s6543_s17 + $0x1b0] sm:$0xff]  }
 0x141   : > { %v5455_v20 = vpop.eup %5454  ;;  %v965_v51 = vadd.f32 %v5453_v21, %v5451_v47  ;;  %v2014_v45 = vmul.f32 1.442695, %v1993_v33  ;;  %v2126_v34 = vmul.f32 1.442695, %v2105_v58  ;;  %v2238_v41 = vmul.f32 1.442695, %v2217_v23 }
 0x142   : > { %v2730_v7 = vsel %vm1537_vm5, %v2710_v15, 0.0  ;;  %v5457_v17 = vpop.eup %5456  ;;  %v1349_v48 = vadd.f32 %v1333_v31, %v1237_v40  ;;  %vm2281_vm1 = vcmp.eq.s32.totalorder %v7256_v19, 2  ;;  %v2350_v53 = vmul.f32 1.442695, %v2329_v24 }
 0x143   : > { %2731 = vadd.xlane.f32.xlu0 %v2730_v7  ;;  %v2553_v60 = vsub.f32 %v7260_v18, %v7278_v50  ;;  %v1077_v8 = vadd.f32 %v5455_v20, %v965_v51  ;;  %5464 = vpow2.f32 %v2014_v45  ;;  %v7307_v43 = vunpack.c.l.bf16 %v7231_v11 }
 0x144   : > { %v1912_v28 = vmax.f32 %v7283_v22, %v7286_v27  ;;  %v5459_v42 = vpop.eup %5458  ;;  %5466 = vpow2.f32 %v2126_v34  ;;  %v2201_v32 = vadd.f32 %v2185_v1, %v2073_v0  ;;  %vm2393_vm2 = vcmp.eq.s32.totalorder %v7256_v19, 3 }
 0x145   : > { %v2462_v6 = vmul.f32 1.442695, %v2441_v26  ;;  %v1189_v56 = vadd.f32 %v5457_v17, %v1077_v8  ;;  %5468 = vpow2.f32 %v2238_v41  ;;  %v7313_v37 = vunpack.c.l.bf16 %v7239_v4  ;;  %v7383_v17 = vld [vmem:[%s6543_s17 + $0x210] sm:$0xff]  }
 0x146   : > { %v1928_v5 = vmax.f32 %v1912_v28, %v7301_v25  ;;  %v5461_v11 = vpop.eup %5460  ;;  %v7319_v52 = vadd.f32 %v1445_v9, %v1349_v48  ;;  %v2297_v62 = vsel %vm2281_vm1, %v7228_v29, 0.0  ;;  %5470 = vpow2.f32 %v2350_v53 }
 0x147   : > { %v2574_v10 = vmul.f32 1.442695, %v2553_v60  ;;  %v1301_v57 = vadd.f32 %v5459_v42, %v1189_v56  ;;  %vm2505_vm3 = vcmp.eq.s32.totalorder %v7256_v19, 4  ;;  %v7326_v4 = vunpack.c.l.bf16 %v7248_v54  ;;  %v7339_v54 = vld [vmem:[%s6543_s17 + $0x1c8] sm:$0xff]   ;;  %v7403_v56 = vld [vmem:[%s6562_s12 + $0x98] sm:$0xff] }
 0x148   : > { %v5463_v30 = vpop.eup %5462  ;;  %v1944_v44 = vmax.f32 %v1928_v5, %v7307_v43  ;;  %v2409_v59 = vsel %vm2393_vm2, %v7242_v63, 0.0  ;;  %5472 = vpow2.f32 %v2462_v6  ;;  %vm2056_vm4 = vcmp.eq.s32.totalorder %v7316_v49, 0  ;;  %v7397_v42 = vld [vmem:[%s6543_s17 + $0x228] sm:$0xff]  }
 0x149   : > { %v1484_v12 = vmul.f32 0.6931472, %v5463_v30  ;;  %v1413_v29 = vadd.f32 %v5461_v11, %v1301_v57  ;;  %v2313_v14 = vadd.f32 %v2297_v62, %v2201_v32  ;;  %vm2168_vm6 = vcmp.eq.s32.totalorder %v7316_v49, 1 }
 0x14a   : > { %v1960_v35 = vmax.f32 %v1944_v44, %v7313_v37  ;;  %v2521_v39 = vsel %vm2505_vm3, %v7251_v55, 0.0  ;;  %5474 = vpow2.f32 %v2574_v10  ;;  %vm2617_vm7 = vcmp.eq.s32.totalorder %v7256_v19, 5 }
 0x14b   : > { %v1510_v2 = vadd.f32 %v1484_v12, %v7125_v38  ;;  %5476 = vlog2.f32 %v1413_v29  ;;  %v2072_v3 = vsel %vm2056_vm4, %v7283_v22, 0.0  ;;  %vm2280_vm8 = vcmp.eq.s32.totalorder %v7316_v49, 2 }
 0x14c   : > { %v7345_v63 = vmax.f32 %v1960_v35, %v7326_v4  ;;  %v2184_v38 = vsel %vm2168_vm6, %v7286_v27, 0.0  ;;  %v7355_v55 = vunpack.c.h.bf16 %v7336_v61  ;;  %v7358_v31 = vunpack.c.h.bf16 %v7339_v54 }
 0x14d   : > { %v1526_v36 = vsub.f32 %v1510_v2, %v7268_v13  ;;  %v5465_v9 = vpop.eup %5464  ;;  %v2425_v58 = vadd.f32 %v2409_v59, %v2313_v14  ;;  %v7372_v24 = vunpack.c.h.bf16 %v7350_v16  ;;  %v2200_v51 = vadd.f32 %v2184_v38, %v2072_v3 }
 0x14e   : > { %v1992_v40 = vsub.f32 %v7283_v22, %v7345_v63  ;;  %v2104_v15 = vsub.f32 %v7286_v27, %v7345_v63  ;;  %v2216_v0 = vsub.f32 %v7301_v25, %v7345_v63  ;;  %v2328_v13 = vsub.f32 %v7307_v43, %v7345_v63  ;;  %v5467_v47 = vpop.eup %5466  ;;  %v7375_v22 = vld [vmem:[%s6543_s17 + $0x1f8] sm:$0xff]  }
 0x14f   : > { %v1553_v33 = vsel %vm1537_vm5, %v1526_v36, 0.0  ;;  %v2440_v23 = vsub.f32 %v7313_v37, %v7345_v63  ;;  %v5469_v27 = vpop.eup %5468  ;;  %v2153_v21 = vadd.f32 %v5467_v47, %v5465_v9  ;;  %v2296_v45 = vsel %vm2280_vm8, %v7301_v25, 0.0 }
 0x150   : > { %1554 = vadd.xlane.f32.xlu1 %v1553_v33  ;;  %v2012_v7 = vmul.f32 1.442695, %v1992_v40  ;;  %v2124_v1 = vmul.f32 1.442695, %v2104_v15  ;;  %v2236_v26 = vmul.f32 1.442695, %v2216_v0  ;;  %v5471_v20 = vpop.eup %5470  ;;  %v2552_v41 = vsub.f32 %v7326_v4, %v7345_v63 }
 0x151   : > { %v2348_v34 = vmul.f32 1.442695, %v2328_v13  ;;  %v2265_v48 = vadd.f32 %v5469_v27, %v2153_v21  ;;  %v7386_v53 = vunpack.c.h.bf16 %v7375_v22  ;;  %v728_v60 = vmax.f32 %v7355_v55, %v7358_v31 }
 0x152   : > { %5478 = vpow2.f32 %v2012_v7  ;;  %v5473_v8 = vpop.eup %5472  ;;  %v7393_v25 = vsel %vm2617_vm7, %v7260_v18, 0.0  ;;  %vm2392_vm9 = vcmp.eq.s32.totalorder %v7316_v49, 3  ;;  %v2460_v28 = vmul.f32 1.442695, %v2440_v23 }
 0x153   : > { %5480 = vpow2.f32 %v2124_v1  ;;  %v2377_v32 = vadd.f32 %v5471_v20, %v2265_v48  ;;  %v7400_v6 = vunpack.c.h.bf16 %v7383_v17  ;;  %v744_v5 = vmax.f32 %v728_v60, %v7372_v24 }
 0x154   : > { %5482 = vpow2.f32 %v2236_v26  ;;  %v5475_v11 = vpop.eup %5474  ;;  %v2312_v62 = vadd.f32 %v2296_v45, %v2200_v51  ;;  %vm2504_vm10 = vcmp.eq.s32.totalorder %v7316_v49, 4  ;;  %v2572_v19 = vmul.f32 1.442695, %v2552_v41 }
 0x155   : > { %5484 = vpow2.f32 %v2348_v34  ;;  %v5477_v18 = vpop.eup %5476  ;;  %v2489_v10 = vadd.f32 %v5473_v8, %v2377_v32  ;;  %v2408_v30 = vsel %vm2392_vm9, %v7307_v43, 0.0  ;;  %v7409_v57 = vunpack.c.h.bf16 %v7397_v42 }
 0x156   : > { %v760_v44 = vmax.f32 %v744_v5, %v7386_v53  ;;  %v1482_v12 = vmul.f32 0.6931472, %v5477_v18  ;;  %v7412_v59 = vadd.f32 %v2521_v39, %v2425_v58  ;;  %5486 = vpow2.f32 %v2460_v28 }
 0x157   : > { %vm872_vm11 = vcmp.eq.s32.totalorder %v7403_v56, 0  ;;  %v2601_v29 = vadd.f32 %v5475_v11, %v2489_v10  ;;  %v2520_v14 = vsel %vm2504_vm10, %v7313_v37, 0.0  ;;  %vm984_vm12 = vcmp.eq.s32.totalorder %v7403_v56, 1 }
 0x158   : > { %v776_v35 = vmax.f32 %v760_v44, %v7400_v6  ;;  %v1509_v43 = vadd.f32 %v1482_v12, %v7197_v46  ;;  %v2424_v2 = vadd.f32 %v2408_v30, %v2312_v62  ;;  %5488 = vpow2.f32 %v2572_v19  ;;  %v7482_v44 = vld [vmem:[%s6543_s17 + $0x1b8] sm:$0xff]  }
 0x159   : > { %vm2616_vm13 = vcmp.eq.s32.totalorder %v7316_v49, 5  ;;  %5490 = vlog2.f32 %v2601_v29  ;;  %v888_v3 = vsel %vm872_vm11, %v7355_v55, 0.0  ;;  %vm1096_vm14 = vcmp.eq.s32.totalorder %v7403_v56, 2  ;;  %v7467_v49 = vld [vmem:[%s6562_s12 + $0x90] sm:$0xff] }
 0x15a   : > { %v7421_v39 = vmax.f32 %v776_v35, %v7409_v57  ;;  %v1525_v37 = vsub.f32 %v1509_v43, %v7319_v52  ;;  %v1000_v36 = vsel %vm984_vm12, %v7358_v31, 0.0  ;;  %v7428_v38 = vunpack.c.l.bf16 %v7336_v61 }
 0x15b   : > { %v7431_v46 = vunpack.c.l.bf16 %v7339_v54  ;;  %v1112_v47 = vsel %vm1096_vm14, %v7372_v24, 0.0  ;;  %v7446_v33 = vunpack.c.l.bf16 %v7350_v16  ;;  %v1016_v7 = vadd.f32 %v1000_v36, %v888_v3 }
 0x15c   : > { %v5479_v9 = vpop.eup %5478  ;;  %v808_v40 = vsub.f32 %v7355_v55, %v7421_v39  ;;  %v920_v15 = vsub.f32 %v7358_v31, %v7421_v39  ;;  %v1032_v0 = vsub.f32 %v7372_v24, %v7421_v39  ;;  %v1144_v52 = vsub.f32 %v7386_v53, %v7421_v39 }
 0x15d   : > { %v5481_v13 = vpop.eup %5480  ;;  %v1550_v61 = vsel %vm1537_vm5, %v1525_v37, 0.0  ;;  %v1256_v54 = vsub.f32 %v7400_v6, %v7421_v39  ;;  %vm1208_vm15 = vcmp.eq.s32.totalorder %v7403_v56, 3  ;;  %v1368_v24 = vsub.f32 %v7409_v57, %v7421_v39 }
 0x15e   : > { %v5483_v55 = vpop.eup %5482  ;;  %1551 = vadd.xlane.f32.xlu0 %v1550_v61  ;;  %v2152_v31 = vadd.f32 %v5481_v13, %v5479_v9  ;;  %v831_v58 = vmul.f32 1.442695, %v808_v40  ;;  %v943_v23 = vmul.f32 1.442695, %v920_v15  ;;  %v1055_v27 = vmul.f32 1.442695, %v1032_v0 }
 0x15f   : > { %v5485_v21 = vpop.eup %5484  ;;  %v1167_v1 = vmul.f32 1.442695, %v1144_v52  ;;  %v7452_v20 = vunpack.c.l.bf16 %v7375_v22  ;;  %v727_v16 = vmax.f32 %v7428_v38, %v7431_v46  ;;  %v2536_v45 = vadd.f32 %v2520_v14, %v2424_v2  ;;  %v7495_v14 = vld [vmem:[%s6543_s17 + $0x1e8] sm:$0xff]   ;;  %v7520_v52 = vld [vmem:[%s6543_s17 + $0x200] sm:$0xff]  }
 0x160   : > { %v2264_v26 = vadd.f32 %v5483_v55, %v2152_v31  ;;  %5492 = vpow2.f32 %v831_v58  ;;  %v5487_v51 = vpop.eup %5486  ;;  %v2632_v34 = vsel %vm2616_vm13, %v7326_v4, 0.0  ;;  %v1279_v41 = vmul.f32 1.442695, %v1256_v54 }
 0x161   : > { %5494 = vpow2.f32 %v943_v23  ;;  %v7460_v60 = vunpack.c.l.bf16 %v7383_v17  ;;  %v743_v22 = vmax.f32 %v727_v16, %v7446_v33  ;;  %v1128_v28 = vadd.f32 %v1112_v47, %v1016_v7 }
 0x162   : > { %v2376_v48 = vadd.f32 %v5485_v21, %v2264_v26  ;;  %5496 = vpow2.f32 %v1055_v27  ;;  %v5489_v8 = vpop.eup %5488  ;;  %v1224_v32 = vsel %vm1208_vm15, %v7386_v53, 0.0  ;;  %v1391_v5 = vmul.f32 1.442695, %v1368_v24  ;;  %v7526_v27 = vld [vmem:[%s6543_s17 + $0x218] sm:$0xff]  }
 0x163   : > { %5498 = vpow2.f32 %v1167_v1  ;;  %v5491_v4 = vpop.eup %5490  ;;  %vm1320_vm0 = vcmp.eq.s32.totalorder %v7403_v56, 4  ;;  %v7471_v17 = vunpack.c.l.bf16 %v7397_v42  ;;  %v759_v62 = vmax.f32 %v743_v22, %v7452_v20  ;;  %v7485_v42 = vld [vmem:[%s6543_s17 + $0x1d0] sm:$0xff]  }
 0x164   : > { %v2488_v11 = vadd.f32 %v5487_v51, %v2376_v48  ;;  %v2649_v19 = vadd.f32 %v7393_v25, %v7412_v59  ;;  %v2671_v18 = vmul.f32 0.6931472, %v5491_v4  ;;  %5500 = vpow2.f32 %v1279_v41  ;;  %v7535_v51 = vld [vmem:[%s6543_s17 + $0x230] sm:$0xff]   ;;  %v7541_v41 = vld [vmem:[%s6562_s12 + $0xa8] sm:$0xff] }
 0x165   : > { %vm1432_vm1 = vcmp.eq.s32.totalorder %v7403_v56, 5  ;;  %v7477_v10 = vadd.f32 %v2632_v34, %v2536_v45  ;;  %v775_v30 = vmax.f32 %v759_v62, %v7460_v60  ;;  %vm871_vm2 = vcmp.eq.s32.totalorder %v7467_v49, 0 }
 0x166   : > { %v2600_v53 = vadd.f32 %v5489_v8, %v2488_v11  ;;  %v2697_v12 = vadd.f32 %v2671_v18, %v7278_v50  ;;  %v1240_v29 = vadd.f32 %v1224_v32, %v1128_v28  ;;  %v1336_v25 = vsel %vm1320_vm0, %v7400_v6, 0.0 }
 0x167   : > { %5502 = vpow2.f32 %v1391_v5  ;;  %v1448_v56 = vsel %vm1432_vm1, %v7409_v57, 0.0  ;;  %v7491_v59 = vmax.f32 %v775_v30, %v7471_v17  ;;  %vm983_vm3 = vcmp.eq.s32.totalorder %v7467_v49, 1 }
 0x168   : > { %5504 = vlog2.f32 %v2600_v53  ;;  %v2713_v35 = vsub.f32 %v2697_v12, %v2649_v19  ;;  %v887_v43 = vsel %vm871_vm2, %v7428_v38, 0.0  ;;  %v7499_v50 = vunpack.c.h.bf16 %v7482_v44 }
 0x169   : > { %v7502_v6 = vunpack.c.h.bf16 %v7485_v42  ;;  %v807_v57 = vsub.f32 %v7428_v38, %v7491_v59  ;;  %v919_v3 = vsub.f32 %v7431_v46, %v7491_v59  ;;  %v1031_v37 = vsub.f32 %v7446_v33, %v7491_v59 }
 0x16a   : > { %v5493_v2 = vpop.eup %5492  ;;  %v1143_v36 = vsub.f32 %v7452_v20, %v7491_v59  ;;  %v2739_v40 = vsel %vm1537_vm5, %v2713_v35, 0.0  ;;  %v999_v15 = vsel %vm983_vm3, %v7431_v46, 0.0  ;;  %v1255_v0 = vsub.f32 %v7460_v60, %v7491_v59 }
 0x16b   : > { %v5495_v9 = vpop.eup %5494  ;;  %v7517_v38 = vunpack.c.h.bf16 %v7495_v14  ;;  %2740 = vadd.xlane.f32.xlu1 %v2739_v40  ;;  %v829_v47 = vmul.f32 1.442695, %v807_v57  ;;  %v941_v54 = vmul.f32 1.442695, %v919_v3  ;;  %v1053_v55 = vmul.f32 1.442695, %v1031_v37 }
 0x16c   : > { %v5497_v13 = vpop.eup %5496  ;;  %v968_v61 = vadd.f32 %v5495_v9, %v5493_v2  ;;  %v1352_v58 = vadd.f32 %v1336_v25, %v1240_v29  ;;  %vm1095_vm4 = vcmp.eq.s32.totalorder %v7467_v49, 2  ;;  %v1165_v46 = vmul.f32 1.442695, %v1143_v36 }
 0x16d   : > { %v5499_v31 = vpop.eup %5498  ;;  %v1367_v23 = vsub.f32 %v7471_v17, %v7491_v59  ;;  %5506 = vpow2.f32 %v829_v47  ;;  %v7529_v7 = vunpack.c.h.bf16 %v7520_v52  ;;  %v1915_v1 = vmax.f32 %v7499_v50, %v7502_v6 }
 0x16e   : > { %v1080_v21 = vadd.f32 %v5497_v13, %v968_v61  ;;  %v5501_v24 = vpop.eup %5500  ;;  %5508 = vpow2.f32 %v941_v54  ;;  %v1015_v26 = vadd.f32 %v999_v15, %v887_v43  ;;  %vm1207_vm6 = vcmp.eq.s32.totalorder %v7467_v49, 3 }
 0x16f   : > { %v1277_v16 = vmul.f32 1.442695, %v1255_v0  ;;  %5510 = vpow2.f32 %v1053_v55  ;;  %v7538_v34 = vunpack.c.h.bf16 %v7526_v27  ;;  %v1931_v48 = vmax.f32 %v1915_v1, %v7517_v38 }
 0x170   : > { %v1192_v45 = vadd.f32 %v5499_v31, %v1080_v21  ;;  %v7544_v8 = vadd.f32 %v1448_v56, %v1352_v58  ;;  %v1111_v28 = vsel %vm1095_vm4, %v7446_v33, 0.0  ;;  %5512 = vpow2.f32 %v1165_v46 }
 0x171   : > { %v5503_v22 = vpop.eup %5502  ;;  %v1389_v32 = vmul.f32 1.442695, %v1367_v23  ;;  %vm1319_vm7 = vcmp.eq.s32.totalorder %v7467_v49, 4  ;;  %v7551_v11 = vunpack.c.h.bf16 %v7535_v51  ;;  %v1947_v62 = vmax.f32 %v1931_v48, %v7529_v7 }
 0x172   : > { %v5505_v5 = vpop.eup %5504  ;;  %v1304_v4 = vadd.f32 %v5501_v24, %v1192_v45  ;;  %v1223_v18 = vsel %vm1207_vm6, %v7452_v20, 0.0  ;;  %5514 = vpow2.f32 %v1277_v16  ;;  %vm2059_vm8 = vcmp.eq.s32.totalorder %v7541_v41, 0 }
 0x173   : > { %v2669_v19 = vmul.f32 0.6931472, %v5505_v5  ;;  %v1127_v53 = vadd.f32 %v1111_v28, %v1015_v26  ;;  %v1963_v30 = vmax.f32 %v1947_v62, %v7538_v34  ;;  %vm2171_vm9 = vcmp.eq.s32.totalorder %v7541_v41, 1 }
 0x174   : > { %v1416_v33 = vadd.f32 %v5503_v22, %v1304_v4  ;;  %v1335_v29 = vsel %vm1319_vm7, %v7460_v60, 0.0  ;;  %5516 = vpow2.f32 %v1389_v32  ;;  %vm1431_vm10 = vcmp.eq.s32.totalorder %v7467_v49, 5 }
 0x175   : > { %v2696_v12 = vadd.f32 %v2669_v19, %v7345_v63  ;;  %v7564_v25 = vmax.f32 %v1963_v30, %v7551_v11  ;;  %v2075_v20 = vsel %vm2059_vm8, %v7499_v50, 0.0  ;;  %vm2283_vm11 = vcmp.eq.s32.totalorder %v7541_v41, 2 }
 0x176   : > { %5518 = vlog2.f32 %v1416_v33  ;;  %v2187_v35 = vsel %vm2171_vm9, %v7502_v6, 0.0  ;;  %v7571_v43 = vunpack.c.l.bf16 %v7482_v44  ;;  %v7574_v63 = vunpack.c.l.bf16 %v7485_v42 }
 0x177   : > { %v2712_v56 = vsub.f32 %v2696_v12, %v7477_v10  ;;  %v5507_v60 = vpop.eup %5506  ;;  %v1995_v2 = vsub.f32 %v7499_v50, %v7564_v25  ;;  %v2107_v57 = vsub.f32 %v7502_v6, %v7564_v25  ;;  %v2219_v3 = vsub.f32 %v7517_v38, %v7564_v25 }
 0x178   : > { %v2331_v10 = vsub.f32 %v7529_v7, %v7564_v25  ;;  %v5509_v37 = vpop.eup %5508  ;;  %v1239_v36 = vadd.f32 %v1223_v18, %v1127_v53  ;;  %v2443_v42 = vsub.f32 %v7538_v34, %v7564_v25  ;;  %v7588_v9 = vunpack.c.l.bf16 %v7495_v14  ;;  %v7639_v53 = vld [vmem:[%s6543_s17 + $0x40] sm:$0xff]  }
 0x179   : > { %v2736_v44 = vsel %vm1537_vm5, %v2712_v56, 0.0  ;;  %v5511_v50 = vpop.eup %5510  ;;  %v967_v40 = vadd.f32 %v5509_v37, %v5507_v60  ;;  %v2018_v6 = vmul.f32 1.442695, %v1995_v2  ;;  %v2130_v15 = vmul.f32 1.442695, %v2107_v57  ;;  %v7665_v37 = vld [vmem:[%s6543_s17 + $0x58] sm:$0xff]  }
 0x17a   : > { %2737 = vadd.xlane.f32.xlu0 %v2736_v44  ;;  %v2242_v0 = vmul.f32 1.442695, %v2219_v3  ;;  %v5513_v13 = vpop.eup %5512  ;;  %v2203_v61 = vadd.f32 %v2187_v35, %v2075_v20  ;;  %v2299_v47 = vsel %vm2283_vm11, %v7517_v38, 0.0  ;;  %v2354_v54 = vmul.f32 1.442695, %v2331_v10 }
 0x17b   : > { %v2555_v55 = vsub.f32 %v7551_v11, %v7564_v25  ;;  %v1079_v31 = vadd.f32 %v5511_v50, %v967_v40  ;;  %5520 = vpow2.f32 %v2018_v6  ;;  %v7596_v14 = vunpack.c.l.bf16 %v7520_v52  ;;  %v7610_v52 = vld [vmem:[%s6562_s12 + $0xa0] sm:$0xff] }
 0x17c   : > { %v1914_v58 = vmax.f32 %v7571_v43, %v7574_v63  ;;  %v5515_v46 = vpop.eup %5514  ;;  %v7603_v23 = vsel %vm1431_vm10, %v7471_v17, 0.0  ;;  %5522 = vpow2.f32 %v2130_v15  ;;  %vm2395_vm12 = vcmp.eq.s32.totalorder %v7541_v41, 3 }
 0x17d   : > { %v2466_v38 = vmul.f32 1.442695, %v2443_v42  ;;  %v1191_v21 = vadd.f32 %v5513_v13, %v1079_v31  ;;  %5524 = vpow2.f32 %v2242_v0  ;;  %v7607_v1 = vunpack.c.l.bf16 %v7526_v27  ;;  %v7671_v0 = vld [vmem:[%s6543_s17 + $0x70] sm:$0xff]  }
 0x17e   : > { %v1930_v24 = vmax.f32 %v1914_v58, %v7588_v9  ;;  %v5517_v26 = vpop.eup %5516  ;;  %v2315_v16 = vadd.f32 %v2299_v47, %v2203_v61  ;;  %5526 = vpow2.f32 %v2354_v54  ;;  %vm2507_vm13 = vcmp.eq.s32.totalorder %v7541_v41, 4 }
 0x17f   : > { %v2578_v49 = vmul.f32 1.442695, %v2555_v55  ;;  %v1303_v45 = vadd.f32 %v5515_v46, %v1191_v21  ;;  %v2411_v48 = vsel %vm2395_vm12, %v7529_v7, 0.0  ;;  %v7616_v22 = vunpack.c.l.bf16 %v7535_v51  ;;  %v7626_v7 = vld [vmem:[%s6543_s17 + $0x10] sm:$0xff]   ;;  %v7629_v51 = vld [vmem:[%s6543_s17 + $0x28] sm:$0xff]  }
 0x180   : > { %v5519_v17 = vpop.eup %5518  ;;  %v1946_v27 = vmax.f32 %v1930_v24, %v7596_v14  ;;  %v7619_v32 = vadd.f32 %v1335_v29, %v1239_v36  ;;  %5528 = vpow2.f32 %v2466_v38  ;;  %vm2058_vm14 = vcmp.eq.s32.totalorder %v7610_v52, 0  ;;  %v7682_v46 = vld [vmem:[%s6543_s17 + $0x88] sm:$0xff]  }
 0x181   : > { %v1488_v28 = vmul.f32 0.6931472, %v5519_v17  ;;  %v1415_v5 = vadd.f32 %v5517_v26, %v1303_v45  ;;  %v2523_v4 = vsel %vm2507_vm13, %v7538_v34, 0.0  ;;  %vm2170_vm15 = vcmp.eq.s32.totalorder %v7610_v52, 1 }
 0x182   : > { %v1962_v62 = vmax.f32 %v1946_v27, %v7607_v1  ;;  %v2427_v18 = vadd.f32 %v2411_v48, %v2315_v16  ;;  %5530 = vpow2.f32 %v2578_v49  ;;  %vm2619_vm0 = vcmp.eq.s32.totalorder %v7541_v41, 5 }
 0x183   : > { %v1512_v19 = vadd.f32 %v1488_v28, %v7421_v39  ;;  %5532 = vlog2.f32 %v1415_v5  ;;  %v2074_v34 = vsel %vm2058_vm14, %v7571_v43, 0.0  ;;  %vm2282_vm1 = vcmp.eq.s32.totalorder %v7610_v52, 2 }
 0x184   : > { %v7634_v33 = vmax.f32 %v1962_v62, %v7616_v22  ;;  %v2186_v12 = vsel %vm2170_vm15, %v7574_v63, 0.0  ;;  %v7644_v39 = vunpack.c.h.bf16 %v7626_v7  ;;  %v7647_v29 = vunpack.c.h.bf16 %v7629_v51 }
 0x185   : > { %v1528_v30 = vsub.f32 %v1512_v19, %v7544_v8  ;;  %v5521_v20 = vpop.eup %5520  ;;  %v2298_v3 = vsel %vm2282_vm1, %v7588_v9, 0.0  ;;  %v2202_v6 = vadd.f32 %v2186_v12, %v2074_v34  ;;  %vm2394_vm2 = vcmp.eq.s32.totalorder %v7610_v52, 3 }
 0x186   : > { %v1994_v56 = vsub.f32 %v7571_v43, %v7634_v33  ;;  %v2106_v35 = vsub.f32 %v7574_v63, %v7634_v33  ;;  %v2218_v60 = vsub.f32 %v7588_v9, %v7634_v33  ;;  %v2330_v8 = vsub.f32 %v7596_v14, %v7634_v33  ;;  %v5523_v2 = vpop.eup %5522 }
 0x187   : > { %v1559_v57 = vsel %vm1537_vm5, %v1528_v30, 0.0  ;;  %v2442_v10 = vsub.f32 %v7607_v1, %v7634_v33  ;;  %v7662_v43 = vunpack.c.h.bf16 %v7639_v53  ;;  %v5525_v63 = vpop.eup %5524  ;;  %v2155_v44 = vadd.f32 %v5523_v2, %v5521_v20 }
 0x188   : > { %1560 = vadd.xlane.f32.xlu1 %v1559_v57  ;;  %v2016_v36 = vmul.f32 1.442695, %v1994_v56  ;;  %v2128_v42 = vmul.f32 1.442695, %v2106_v35  ;;  %v2240_v50 = vmul.f32 1.442695, %v2218_v60  ;;  %v5527_v40 = vpop.eup %5526  ;;  %v2554_v9 = vsub.f32 %v7616_v22, %v7634_v33 }
 0x189   : > { %v2352_v15 = vmul.f32 1.442695, %v2330_v8  ;;  %v2267_v13 = vadd.f32 %v5525_v63, %v2155_v44  ;;  %v7674_v61 = vunpack.c.h.bf16 %v7665_v37  ;;  %v3083_v47 = vmax.f32 %v7644_v39, %v7647_v29 }
 0x18a   : > { %5534 = vpow2.f32 %v2016_v36  ;;  %v5529_v54 = vpop.eup %5528  ;;  %v2539_v55 = vadd.f32 %v2523_v4, %v2427_v18  ;;  %v2635_v31 = vsel %vm2619_vm0, %v7551_v11, 0.0  ;;  %v2464_v58 = vmul.f32 1.442695, %v2442_v10  ;;  %v7692_v11 = vld [vmem:[%s6562_s12 + $0x28] sm:$0xff] }
 0x18b   : > { %5536 = vpow2.f32 %v2128_v42  ;;  %v2379_v38 = vadd.f32 %v5527_v40, %v2267_v13  ;;  %v7685_v21 = vunpack.c.h.bf16 %v7671_v0  ;;  %v3099_v24 = vmax.f32 %v3083_v47, %v7662_v43 }
 0x18c   : > { %5538 = vpow2.f32 %v2240_v50  ;;  %v5531_v26 = vpop.eup %5530  ;;  %v2314_v16 = vadd.f32 %v2298_v3, %v2202_v6  ;;  %v2410_v49 = vsel %vm2394_vm2, %v7596_v14, 0.0  ;;  %v2576_v41 = vmul.f32 1.442695, %v2554_v9 }
 0x18d   : > { %5540 = vpow2.f32 %v2352_v15  ;;  %v5533_v17 = vpop.eup %5532  ;;  %v2491_v45 = vadd.f32 %v5529_v54, %v2379_v38  ;;  %vm2506_vm3 = vcmp.eq.s32.totalorder %v7610_v52, 4  ;;  %v7696_v48 = vunpack.c.h.bf16 %v7682_v46  ;;  %v7748_v54 = vld [vmem:[%s6562_s12 + $0x20] sm:$0xff] }
 0x18e   : > { %v3115_v27 = vmax.f32 %v3099_v24, %v7674_v61  ;;  %v1463_v28 = vadd.f32 %v7603_v23, %v7619_v32  ;;  %v1486_v5 = vmul.f32 0.6931472, %v5533_v17  ;;  %5542 = vpow2.f32 %v2464_v58 }
 0x18f   : > { %vm2618_vm4 = vcmp.eq.s32.totalorder %v7610_v52, 5  ;;  %v2603_v14 = vadd.f32 %v5531_v26, %v2491_v45  ;;  %v7702_v4 = vadd.f32 %v2635_v31, %v2539_v55  ;;  %vm3227_vm6 = vcmp.eq.s32.totalorder %v7692_v11, 0 }
 0x190   : > { %v3131_v62 = vmax.f32 %v3115_v27, %v7685_v21  ;;  %v1511_v19 = vadd.f32 %v1486_v5, %v7491_v59  ;;  %v2426_v18 = vadd.f32 %v2410_v49, %v2314_v16  ;;  %v2522_v34 = vsel %vm2506_vm3, %v7607_v1, 0.0  ;;  %v7768_v27 = vld [vmem:[%s6543_s17 + $0xa0] sm:$0xff]  }
 0x191   : > { %5544 = vpow2.f32 %v2576_v41  ;;  %v2634_v23 = vsel %vm2618_vm4, %v7616_v22, 0.0  ;;  %vm3339_vm7 = vcmp.eq.s32.totalorder %v7692_v11, 1  ;;  %v3243_v30 = vsel %vm3227_vm6, %v7644_v39, 0.0 }
 0x192   : > { %5546 = vlog2.f32 %v2603_v14  ;;  %v7710_v32 = vmax.f32 %v3131_v62, %v7696_v48  ;;  %v1527_v52 = vsub.f32 %v1511_v19, %v1463_v28  ;;  %v7715_v12 = vunpack.c.l.bf16 %v7626_v7  ;;  %v7782_v62 = vld [vmem:[%s6543_s17 + $0xd0] sm:$0xff]  }
 0x193   : > { %v7718_v59 = vunpack.c.l.bf16 %v7629_v51  ;;  %v3355_v8 = vsel %vm3339_vm7, %v7647_v29, 0.0  ;;  %v7733_v2 = vunpack.c.l.bf16 %v7639_v53  ;;  %v2538_v36 = vadd.f32 %v2522_v34, %v2426_v18 }
 0x194   : > { %v5535_v20 = vpop.eup %5534  ;;  %v3163_v1 = vsub.f32 %v7644_v39, %v7710_v32  ;;  %v3275_v22 = vsub.f32 %v7647_v29, %v7710_v32  ;;  %v3387_v56 = vsub.f32 %v7662_v43, %v7710_v32  ;;  %v3499_v35 = vsub.f32 %v7674_v61, %v7710_v32 }
 0x195   : > { %v5537_v60 = vpop.eup %5536  ;;  %v1556_v7 = vsel %vm1537_vm5, %v1527_v52, 0.0  ;;  %v3611_v51 = vsub.f32 %v7685_v21, %v7710_v32  ;;  %vm3451_vm8 = vcmp.eq.s32.totalorder %v7692_v11, 2  ;;  %v3723_v29 = vsub.f32 %v7696_v48, %v7710_v32 }
 0x196   : > { %v5539_v39 = vpop.eup %5538  ;;  %1557 = vadd.xlane.f32.xlu0 %v1556_v7  ;;  %v2154_v57 = vadd.f32 %v5537_v60, %v5535_v20  ;;  %v3180_v3 = vmul.f32 1.442695, %v3163_v1  ;;  %v3292_v10 = vmul.f32 1.442695, %v3275_v22  ;;  %v3404_v63 = vmul.f32 1.442695, %v3387_v56 }
 0x197   : > { %v5541_v44 = vpop.eup %5540  ;;  %v3516_v42 = vmul.f32 1.442695, %v3499_v35  ;;  %v7739_v53 = vunpack.c.l.bf16 %v7665_v37  ;;  %v3082_v40 = vmax.f32 %v7715_v12, %v7718_v59  ;;  %v3371_v15 = vadd.f32 %v3355_v8, %v3243_v30 }
 0x198   : > { %v2266_v50 = vadd.f32 %v5539_v39, %v2154_v57  ;;  %5548 = vpow2.f32 %v3180_v3  ;;  %v5543_v6 = vpop.eup %5542  ;;  %vm3563_vm9 = vcmp.eq.s32.totalorder %v7692_v11, 3  ;;  %v3628_v9 = vmul.f32 1.442695, %v3611_v51 }
 0x199   : > { %5550 = vpow2.f32 %v3292_v10  ;;  %v7745_v47 = vunpack.c.l.bf16 %v7671_v0  ;;  %v3098_v55 = vmax.f32 %v3082_v40, %v7733_v2  ;;  %v7751_v31 = vadd.f32 %v2634_v23, %v2538_v36 }
 0x19a   : > { %v2378_v13 = vadd.f32 %v5541_v44, %v2266_v50  ;;  %5552 = vpow2.f32 %v3404_v63  ;;  %v3467_v58 = vsel %vm3451_vm8, %v7662_v43, 0.0  ;;  %v3740_v38 = vmul.f32 1.442695, %v3723_v29  ;;  %v7815_v44 = vld [vmem:[%s6543_s17 + $0x100] sm:$0xff]  }
 0x19b   : > { %v5545_v37 = vpop.eup %5544  ;;  %5554 = vpow2.f32 %v3516_v42  ;;  %vm3675_vm10 = vcmp.eq.s32.totalorder %v7692_v11, 4  ;;  %v7758_v0 = vunpack.c.l.bf16 %v7682_v46  ;;  %v3114_v16 = vmax.f32 %v3098_v55, %v7739_v53  ;;  %v7771_v46 = vld [vmem:[%s6543_s17 + $0xb8] sm:$0xff]  }
 0x19c   : > { %v5547_v24 = vpop.eup %5546  ;;  %v2490_v26 = vadd.f32 %v5543_v6, %v2378_v13  ;;  %v3579_v41 = vsel %vm3563_vm9, %v7674_v61, 0.0  ;;  %5556 = vpow2.f32 %v3628_v9  ;;  %vm3226_vm11 = vcmp.eq.s32.totalorder %v7748_v54, 0  ;;  %v7829_v6 = vld [vmem:[%s6543_s17 + $0x118] sm:$0xff]  }
 0x19d   : > { %v2675_v49 = vmul.f32 0.6931472, %v5547_v24  ;;  %v3483_v17 = vadd.f32 %v3467_v58, %v3371_v15  ;;  %v3130_v45 = vmax.f32 %v3114_v16, %v7745_v47  ;;  %vm3338_vm12 = vcmp.eq.s32.totalorder %v7748_v54, 1  ;;  %v7835_v13 = vld [vmem:[%s6562_s12 + $0x58] sm:$0xff] }
 0x19e   : > { %v2602_v43 = vadd.f32 %v5545_v37, %v2490_v26  ;;  %v3691_v5 = vsel %vm3675_vm10, %v7685_v21, 0.0  ;;  %5558 = vpow2.f32 %v3740_v38  ;;  %vm3787_vm13 = vcmp.eq.s32.totalorder %v7692_v11, 5 }
 0x19f   : > { %v2699_v28 = vadd.f32 %v2675_v49, %v7564_v25  ;;  %v7777_v61 = vmax.f32 %v3130_v45, %v7758_v0  ;;  %v3242_v14 = vsel %vm3226_vm11, %v7715_v12, 0.0  ;;  %vm3450_vm14 = vcmp.eq.s32.totalorder %v7748_v54, 2 }
 0x1a0   : > { %5560 = vlog2.f32 %v2602_v43  ;;  %v3354_v25 = vsel %vm3338_vm12, %v7718_v59, 0.0  ;;  %v7787_v21 = vunpack.c.h.bf16 %v7768_v27  ;;  %v7790_v18 = vunpack.c.h.bf16 %v7771_v46 }
 0x1a1   : > { %v2715_v19 = vsub.f32 %v2699_v28, %v7702_v4  ;;  %v3162_v23 = vsub.f32 %v7715_v12, %v7777_v61  ;;  %v3274_v52 = vsub.f32 %v7718_v59, %v7777_v61  ;;  %v3386_v30 = vsub.f32 %v7733_v2, %v7777_v61  ;;  %v7807_v12 = vld [vmem:[%s6543_s17 + $0xe8] sm:$0xff]  }
 0x1a2   : > { %v5549_v34 = vpop.eup %5548  ;;  %v3498_v4 = vsub.f32 %v7739_v53, %v7777_v61  ;;  %v3595_v22 = vadd.f32 %v3579_v41, %v3483_v17  ;;  %v3610_v56 = vsub.f32 %v7745_v47, %v7777_v61  ;;  %v7804_v35 = vunpack.c.h.bf16 %v7782_v62 }
 0x1a3   : > { %v5551_v20 = vpop.eup %5550  ;;  %v2745_v1 = vsel %vm1537_vm5, %v2715_v19, 0.0  ;;  %v3178_v7 = vmul.f32 1.442695, %v3162_v23  ;;  %v3290_v8 = vmul.f32 1.442695, %v3274_v52  ;;  %v3370_v57 = vadd.f32 %v3354_v25, %v3242_v14 }
 0x1a4   : > { %v5553_v59 = vpop.eup %5552  ;;  %2746 = vadd.xlane.f32.xlu1 %v2745_v1  ;;  %v3323_v60 = vadd.f32 %v5551_v20, %v5549_v34  ;;  %v3402_v51 = vmul.f32 1.442695, %v3386_v30  ;;  %v3466_v3 = vsel %vm3450_vm14, %v7733_v2, 0.0  ;;  %v3514_v10 = vmul.f32 1.442695, %v3498_v4 }
 0x1a5   : > { %v5555_v39 = vpop.eup %5554  ;;  %v3722_v63 = vsub.f32 %v7758_v0, %v7777_v61  ;;  %5562 = vpow2.f32 %v3178_v7  ;;  %v7818_v42 = vunpack.c.h.bf16 %v7807_v12  ;;  %v3085_v29 = vmax.f32 %v7787_v21, %v7790_v18 }
 0x1a6   : > { %v3435_v36 = vadd.f32 %v5553_v59, %v3323_v60  ;;  %v5557_v50 = vpop.eup %5556  ;;  %v7825_v2 = vsel %vm3787_vm13, %v7696_v48, 0.0  ;;  %5564 = vpow2.f32 %v3290_v8  ;;  %vm3562_vm15 = vcmp.eq.s32.totalorder %v7748_v54, 3 }
 0x1a7   : > { %v3626_v40 = vmul.f32 1.442695, %v3610_v56  ;;  %5566 = vpow2.f32 %v3402_v51  ;;  %v7832_v9 = vunpack.c.h.bf16 %v7815_v44  ;;  %v3101_v55 = vmax.f32 %v3085_v29, %v7804_v35 }
 0x1a8   : > { %v3547_v15 = vadd.f32 %v5555_v39, %v3435_v36  ;;  %v5559_v37 = vpop.eup %5558  ;;  %v3482_v58 = vadd.f32 %v3466_v3, %v3370_v57  ;;  %5568 = vpow2.f32 %v3514_v10  ;;  %vm3674_vm0 = vcmp.eq.s32.totalorder %v7748_v54, 4 }
 0x1a9   : > { %v3738_v11 = vmul.f32 1.442695, %v3722_v63  ;;  %v3578_v24 = vsel %vm3562_vm15, %v7739_v53, 0.0  ;;  %v7841_v26 = vunpack.c.h.bf16 %v7829_v6  ;;  %v3117_v16 = vmax.f32 %v3101_v55, %v7818_v42 }
 0x1aa   : > { %v5561_v48 = vpop.eup %5560  ;;  %v3659_v38 = vadd.f32 %v5557_v50, %v3547_v15  ;;  %v7844_v41 = vadd.f32 %v3691_v5, %v3595_v22  ;;  %5570 = vpow2.f32 %v3626_v40  ;;  %vm3229_vm1 = vcmp.eq.s32.totalorder %v7835_v13, 0 }
 0x1ab   : > { %v2673_v49 = vmul.f32 0.6931472, %v5561_v48  ;;  %v3690_v17 = vsel %vm3674_vm0, %v7745_v47, 0.0  ;;  %v3133_v45 = vmax.f32 %v3117_v16, %v7832_v9  ;;  %vm3341_vm2 = vcmp.eq.s32.totalorder %v7835_v13, 1  ;;  %v7914_v16 = vld [vmem:[%s6543_s17 + $0x240] sm:$0xff]  }
 0x1ac   : > { %v3771_v43 = vadd.f32 %v5559_v37, %v3659_v38  ;;  %v3594_v28 = vadd.f32 %v3578_v24, %v3482_v58  ;;  %5572 = vpow2.f32 %v3738_v11  ;;  %vm3786_vm3 = vcmp.eq.s32.totalorder %v7748_v54, 5  ;;  %v7899_v54 = vld [vmem:[%s6562_s12 + $0x50] sm:$0xff] }
 0x1ad   : > { %v2698_v53 = vadd.f32 %v2673_v49, %v7634_v33  ;;  %v7853_v5 = vmax.f32 %v3133_v45, %v7841_v26  ;;  %v3245_v14 = vsel %vm3229_vm1, %v7787_v21, 0.0  ;;  %vm3453_vm4 = vcmp.eq.s32.totalorder %v7835_v13, 2 }
 0x1ae   : > { %5574 = vlog2.f32 %v3771_v43  ;;  %v3357_v19 = vsel %vm3341_vm2, %v7790_v18, 0.0  ;;  %v7860_v25 = vunpack.c.l.bf16 %v7768_v27  ;;  %v7863_v33 = vunpack.c.l.bf16 %v7771_v46 }
 0x1af   : > { %v2714_v47 = vsub.f32 %v2698_v53, %v7751_v31  ;;  %v5563_v34 = vpop.eup %5562  ;;  %v3165_v23 = vsub.f32 %v7787_v21, %v7853_v5  ;;  %v3277_v52 = vsub.f32 %v7790_v18, %v7853_v5  ;;  %v3389_v30 = vsub.f32 %v7804_v35, %v7853_v5 }
 0x1b0   : > { %v3501_v31 = vsub.f32 %v7818_v42, %v7853_v5  ;;  %v5565_v4 = vpop.eup %5564  ;;  %v3469_v20 = vsel %vm3453_vm4, %v7804_v35, 0.0  ;;  %v3613_v46 = vsub.f32 %v7832_v9, %v7853_v5  ;;  %v7878_v1 = vunpack.c.l.bf16 %v7782_v62 }
 0x1b1   : > { %v2742_v27 = vsel %vm1537_vm5, %v2714_v47, 0.0  ;;  %v5567_v21 = vpop.eup %5566  ;;  %v3322_v18 = vadd.f32 %v5565_v4, %v5563_v34  ;;  %v3184_v22 = vmul.f32 1.442695, %v3165_v23  ;;  %v3296_v56 = vmul.f32 1.442695, %v3277_v52 }
 0x1b2   : > { %2743 = vadd.xlane.f32.xlu0 %v2742_v27  ;;  %v3408_v59 = vmul.f32 1.442695, %v3389_v30  ;;  %v5569_v60 = vpop.eup %5568  ;;  %v3373_v7 = vadd.f32 %v3357_v19, %v3245_v14  ;;  %v3520_v8 = vmul.f32 1.442695, %v3501_v31  ;;  %vm3565_vm6 = vcmp.eq.s32.totalorder %v7835_v13, 3  ;;  %v7952_v31 = vld [vmem:[%s6543_s17 + $0x288] sm:$0xff]  }
 0x1b3   : > { %v3725_v35 = vsub.f32 %v7841_v26, %v7853_v5  ;;  %v3434_v51 = vadd.f32 %v5567_v21, %v3322_v18  ;;  %5576 = vpow2.f32 %v3184_v22  ;;  %v7884_v39 = vunpack.c.l.bf16 %v7807_v12 }
 0x1b4   : > { %v3084_v62 = vmax.f32 %v7860_v25, %v7863_v33  ;;  %v5571_v57 = vpop.eup %5570  ;;  %v3706_v3 = vadd.f32 %v3690_v17, %v3594_v28  ;;  %v3802_v10 = vsel %vm3786_vm3, %v7758_v0, 0.0  ;;  %5578 = vpow2.f32 %v3296_v56  ;;  %v7927_v17 = vld [vmem:[%s6543_s17 + $0x270] sm:$0xff]  }
 0x1b5   : > { %v3632_v63 = vmul.f32 1.442695, %v3613_v46  ;;  %v3546_v36 = vadd.f32 %v5569_v60, %v3434_v51  ;;  %5580 = vpow2.f32 %v3408_v59  ;;  %v7892_v29 = vunpack.c.l.bf16 %v7815_v44  ;;  %v7958_v59 = vld [vmem:[%s6543_s17 + $0x2a0] sm:$0xff]  }
 0x1b6   : > { %v3100_v12 = vmax.f32 %v3084_v62, %v7878_v1  ;;  %v5573_v50 = vpop.eup %5572  ;;  %v3485_v40 = vadd.f32 %v3469_v20, %v3373_v7  ;;  %5582 = vpow2.f32 %v3520_v8  ;;  %v3581_v15 = vsel %vm3565_vm6, %v7818_v42, 0.0 }
 0x1b7   : > { %v3744_v55 = vmul.f32 1.442695, %v3725_v35  ;;  %v3658_v37 = vadd.f32 %v5571_v57, %v3546_v36  ;;  %vm3677_vm7 = vcmp.eq.s32.totalorder %v7835_v13, 4  ;;  %v7903_v44 = vunpack.c.l.bf16 %v7829_v6  ;;  %v7917_v6 = vld [vmem:[%s6543_s17 + $0x258] sm:$0xff]  }
 0x1b8   : > { %v5575_v0 = vpop.eup %5574  ;;  %v3116_v58 = vmax.f32 %v3100_v12, %v7884_v39  ;;  %v3819_v11 = vadd.f32 %v7825_v2, %v7844_v41  ;;  %5584 = vpow2.f32 %v3632_v63  ;;  %vm3789_vm8 = vcmp.eq.s32.totalorder %v7835_v13, 5  ;;  %v7967_v57 = vld [vmem:[%s6543_s17 + $0x2b8] sm:$0xff]   ;;  %v7973_v63 = vld [vmem:[%s6562_s12 + $0xc8] sm:$0xff] }
 0x1b9   : > { %v3837_v48 = vmul.f32 0.6931472, %v5575_v0  ;;  %v3770_v42 = vadd.f32 %v5573_v50, %v3658_v37  ;;  %v7909_v38 = vadd.f32 %v3802_v10, %v3706_v3  ;;  %vm3228_vm9 = vcmp.eq.s32.totalorder %v7899_v54, 0 }
 0x1ba   : > { %v3132_v24 = vmax.f32 %v3116_v58, %v7892_v29  ;;  %v3597_v43 = vadd.f32 %v3581_v15, %v3485_v40  ;;  %v3693_v2 = vsel %vm3677_vm7, %v7832_v9, 0.0  ;;  %5586 = vpow2.f32 %v3744_v55 }
 0x1bb   : > { %v3867_v49 = vadd.f32 %v3837_v48, %v7710_v32  ;;  %5588 = vlog2.f32 %v3770_v42  ;;  %v3805_v13 = vsel %vm3789_vm8, %v7841_v26, 0.0  ;;  %vm3340_vm10 = vcmp.eq.s32.totalorder %v7899_v54, 1 }
 0x1bc   : > { %v7923_v41 = vmax.f32 %v3132_v24, %v7903_v44  ;;  %v3244_v53 = vsel %vm3228_vm9, %v7860_v25, 0.0  ;;  %v7931_v32 = vunpack.c.h.bf16 %v7914_v16  ;;  %v7934_v9 = vunpack.c.h.bf16 %v7917_v6 }
 0x1bd   : > { %v3883_v45 = vsub.f32 %v3867_v49, %v3819_v11  ;;  %v5577_v28 = vpop.eup %5576  ;;  %v3356_v52 = vsel %vm3340_vm10, %v7863_v33, 0.0  ;;  %v3709_v22 = vadd.f32 %v3693_v2, %v3597_v43  ;;  %vm3452_vm11 = vcmp.eq.s32.totalorder %v7899_v54, 2 }
 0x1be   : > { %v3164_v26 = vsub.f32 %v7860_v25, %v7923_v41  ;;  %v3276_v14 = vsub.f32 %v7863_v33, %v7923_v41  ;;  %v3388_v47 = vsub.f32 %v7878_v1, %v7923_v41  ;;  %v3500_v19 = vsub.f32 %v7884_v39, %v7923_v41  ;;  %v5579_v34 = vpop.eup %5578 }
 0x1bf   : > { %v3901_v23 = vsel %vm1537_vm5, %v3883_v45, 0.0  ;;  %v3612_v30 = vsub.f32 %v7892_v29, %v7923_v41  ;;  %v7949_v25 = vunpack.c.h.bf16 %v7927_v17  ;;  %v5581_v4 = vpop.eup %5580  ;;  %v3325_v27 = vadd.f32 %v5579_v34, %v5577_v28 }
 0x1c0   : > { %3902 = vadd.xlane.f32.xlu1 %v3901_v23  ;;  %v3182_v20 = vmul.f32 1.442695, %v3164_v26  ;;  %v3294_v46 = vmul.f32 1.442695, %v3276_v14  ;;  %v3406_v21 = vmul.f32 1.442695, %v3388_v47  ;;  %v5583_v18 = vpop.eup %5582  ;;  %v3724_v56 = vsub.f32 %v7903_v44, %v7923_v41 }
 0x1c1   : > { %v3518_v33 = vmul.f32 1.442695, %v3500_v19  ;;  %v3437_v60 = vadd.f32 %v5581_v4, %v3325_v27  ;;  %v7961_v7 = vunpack.c.h.bf16 %v7952_v31  ;;  %v730_v8 = vmax.f32 %v7931_v32, %v7934_v9 }
 0x1c2   : > { %5590 = vpow2.f32 %v3182_v20  ;;  %v5585_v35 = vpop.eup %5584  ;;  %v3372_v51 = vadd.f32 %v3356_v52, %v3244_v53  ;;  %vm3564_vm12 = vcmp.eq.s32.totalorder %v7899_v54, 3  ;;  %v3630_v62 = vmul.f32 1.442695, %v3612_v30 }
 0x1c3   : > { %5592 = vpow2.f32 %v3294_v46  ;;  %v3549_v3 = vadd.f32 %v5583_v18, %v3437_v60  ;;  %v7970_v10 = vunpack.c.h.bf16 %v7958_v59  ;;  %v746_v36 = vmax.f32 %v730_v8, %v7949_v25 }
 0x1c4   : > { %5594 = vpow2.f32 %v3406_v21  ;;  %v5587_v12 = vpop.eup %5586  ;;  %v7976_v50 = vadd.f32 %v3805_v13, %v3709_v22  ;;  %v3468_v40 = vsel %vm3452_vm11, %v7878_v1, 0.0  ;;  %v3742_v15 = vmul.f32 1.442695, %v3724_v56 }
 0x1c5   : > { %5596 = vpow2.f32 %v3518_v33  ;;  %v5589_v55 = vpop.eup %5588  ;;  %v3661_v0 = vadd.f32 %v5585_v35, %v3549_v3  ;;  %vm3676_vm13 = vcmp.eq.s32.totalorder %v7899_v54, 4  ;;  %v7983_v37 = vunpack.c.h.bf16 %v7967_v57 }
 0x1c6   : > { %v762_v58 = vmax.f32 %v746_v36, %v7961_v7  ;;  %v3835_v11 = vmul.f32 0.6931472, %v5589_v55  ;;  %v3580_v48 = vsel %vm3564_vm12, %v7884_v39, 0.0  ;;  %5598 = vpow2.f32 %v3630_v62 }
 0x1c7   : > { %vm874_vm14 = vcmp.eq.s32.totalorder %v7973_v63, 0  ;;  %v3773_v1 = vadd.f32 %v5587_v12, %v3661_v0  ;;  %v3484_v42 = vadd.f32 %v3468_v40, %v3372_v51  ;;  %vm986_vm15 = vcmp.eq.s32.totalorder %v7973_v63, 1 }
 0x1c8   : > { %v778_v24 = vmax.f32 %v762_v58, %v7970_v10  ;;  %v3866_v49 = vadd.f32 %v3835_v11, %v7777_v61  ;;  %v3692_v43 = vsel %vm3676_vm13, %v7892_v29, 0.0  ;;  %5600 = vpow2.f32 %v3742_v15 }
 0x1c9   : > { %vm3788_vm0 = vcmp.eq.s32.totalorder %v7899_v54, 5  ;;  %5602 = vlog2.f32 %v3773_v1  ;;  %v890_v39 = vsel %vm874_vm14, %v7931_v32, 0.0  ;;  %vm1098_vm1 = vcmp.eq.s32.totalorder %v7973_v63, 2 }
 0x1ca   : > { %v7996_v2 = vmax.f32 %v778_v24, %v7983_v37  ;;  %v3882_v13 = vsub.f32 %v3866_v49, %v7909_v38  ;;  %v1002_v45 = vsel %vm986_vm15, %v7934_v9, 0.0  ;;  %v8003_v53 = vunpack.c.l.bf16 %v7914_v16 }
 0x1cb   : > { %v8006_v61 = vunpack.c.l.bf16 %v7917_v6  ;;  %v3596_v19 = vadd.f32 %v3580_v48, %v3484_v42  ;;  %v8020_v34 = vunpack.c.l.bf16 %v7927_v17  ;;  %v1018_v27 = vadd.f32 %v1002_v45, %v890_v39  ;;  %v8071_v42 = vld [vmem:[%s6543_s17 + $0x278] sm:$0xff]  }
 0x1cc   : > { %v5591_v29 = vpop.eup %5590  ;;  %v810_v28 = vsub.f32 %v7931_v32, %v7996_v2  ;;  %v922_v26 = vsub.f32 %v7934_v9, %v7996_v2  ;;  %v1034_v14 = vsub.f32 %v7949_v25, %v7996_v2  ;;  %v1146_v38 = vsub.f32 %v7961_v7, %v7996_v2 }
 0x1cd   : > { %v5593_v47 = vpop.eup %5592  ;;  %v3898_v16 = vsel %vm1537_vm5, %v3882_v13, 0.0  ;;  %v1258_v6 = vsub.f32 %v7970_v10, %v7996_v2  ;;  %v1114_v20 = vsel %vm1098_vm1, %v7949_v25, 0.0  ;;  %v1370_v21 = vsub.f32 %v7983_v37, %v7996_v2 }
 0x1ce   : > { %v5595_v32 = vpop.eup %5594  ;;  %3899 = vadd.xlane.f32.xlu0 %v3898_v16  ;;  %v3324_v23 = vadd.f32 %v5593_v47, %v5591_v29  ;;  %v835_v9 = vmul.f32 1.442695, %v810_v28  ;;  %v947_v52 = vmul.f32 1.442695, %v922_v26  ;;  %v1059_v30 = vmul.f32 1.442695, %v1034_v14 }
 0x1cf   : > { %v5597_v4 = vpop.eup %5596  ;;  %v1171_v46 = vmul.f32 1.442695, %v1146_v38  ;;  %v8028_v17 = vunpack.c.l.bf16 %v7952_v31  ;;  %v729_v22 = vmax.f32 %v8003_v53, %v8006_v61  ;;  %v8035_v56 = vsel %vm3788_vm0, %v7903_v44, 0.0  ;;  %v8042_v31 = vld [vmem:[%s6562_s12 + $0xc0] sm:$0xff]  ;;  %v8097_v47 = vld [vmem:[%s6543_s17 + $0x290] sm:$0xff]  }
 0x1d0   : > { %v3436_v18 = vadd.f32 %v5595_v32, %v3324_v23  ;;  %5604 = vpow2.f32 %v835_v9  ;;  %v5599_v33 = vpop.eup %5598  ;;  %vm1210_vm2 = vcmp.eq.s32.totalorder %v7973_v63, 3  ;;  %v1283_v25 = vmul.f32 1.442695, %v1258_v6 }
 0x1d1   : > { %5606 = vpow2.f32 %v947_v52  ;;  %v8039_v8 = vunpack.c.l.bf16 %v7958_v59  ;;  %v745_v35 = vmax.f32 %v729_v22, %v8020_v34  ;;  %v1130_v62 = vadd.f32 %v1114_v20, %v1018_v27 }
 0x1d2   : > { %v3548_v60 = vadd.f32 %v5597_v4, %v3436_v18  ;;  %5608 = vpow2.f32 %v1059_v30  ;;  %v5601_v51 = vpop.eup %5600  ;;  %vm1322_vm3 = vcmp.eq.s32.totalorder %v7973_v63, 4  ;;  %v1395_v54 = vmul.f32 1.442695, %v1370_v21  ;;  %v8103_v30 = vld [vmem:[%s6543_s17 + $0x2a8] sm:$0xff]  }
 0x1d3   : > { %5610 = vpow2.f32 %v1171_v46  ;;  %v5603_v44 = vpop.eup %5602  ;;  %v1226_v36 = vsel %vm1210_vm2, %v7961_v7, 0.0  ;;  %v8048_v12 = vunpack.c.l.bf16 %v7967_v57  ;;  %v761_v59 = vmax.f32 %v745_v35, %v8028_v17  ;;  %v8058_v7 = vld [vmem:[%s6543_s17 + $0x248] sm:$0xff]   ;;  %v8061_v57 = vld [vmem:[%s6543_s17 + $0x260] sm:$0xff]  }
 0x1d4   : > { %v3660_v3 = vadd.f32 %v5599_v33, %v3548_v60  ;;  %v3841_v40 = vmul.f32 0.6931472, %v5603_v44  ;;  %v8051_v15 = vadd.f32 %v3692_v43, %v3596_v19  ;;  %5612 = vpow2.f32 %v1283_v25  ;;  %v8114_v33 = vld [vmem:[%s6543_s17 + $0x2c0] sm:$0xff]  }
 0x1d5   : > { %vm873_vm4 = vcmp.eq.s32.totalorder %v8042_v31, 0  ;;  %v1338_v0 = vsel %vm1322_vm3, %v7970_v10, 0.0  ;;  %v777_v58 = vmax.f32 %v761_v59, %v8039_v8  ;;  %vm985_vm6 = vcmp.eq.s32.totalorder %v8042_v31, 1 }
 0x1d6   : > { %v3772_v55 = vadd.f32 %v5601_v51, %v3660_v3  ;;  %v3869_v11 = vadd.f32 %v3841_v40, %v7853_v5  ;;  %v1242_v48 = vadd.f32 %v1226_v36, %v1130_v62  ;;  %5614 = vpow2.f32 %v1395_v54 }
 0x1d7   : > { %vm1434_vm7 = vcmp.eq.s32.totalorder %v7973_v63, 5  ;;  %v8066_v1 = vmax.f32 %v777_v58, %v8048_v12  ;;  %v889_v10 = vsel %vm873_vm4, %v8003_v53, 0.0  ;;  %vm1097_vm8 = vcmp.eq.s32.totalorder %v8042_v31, 2 }
 0x1d8   : > { %5616 = vlog2.f32 %v3772_v55  ;;  %v3885_v24 = vsub.f32 %v3869_v11, %v7976_v50  ;;  %v1001_v49 = vsel %vm985_vm6, %v8006_v61, 0.0  ;;  %v8076_v5 = vunpack.c.h.bf16 %v8058_v7 }
 0x1d9   : > { %v8079_v43 = vunpack.c.h.bf16 %v8061_v57  ;;  %v809_v13 = vsub.f32 %v8003_v53, %v8066_v1  ;;  %v921_v45 = vsub.f32 %v8006_v61, %v8066_v1  ;;  %v1033_v29 = vsub.f32 %v8020_v34, %v8066_v1 }
 0x1da   : > { %v5605_v39 = vpop.eup %5604  ;;  %v1145_v50 = vsub.f32 %v8028_v17, %v8066_v1  ;;  %v3907_v26 = vsel %vm1537_vm5, %v3885_v24, 0.0  ;;  %v1113_v14 = vsel %vm1097_vm8, %v8020_v34, 0.0  ;;  %v1257_v38 = vsub.f32 %v8039_v8, %v8066_v1 }
 0x1db   : > { %v5607_v28 = vpop.eup %5606  ;;  %v8094_v53 = vunpack.c.h.bf16 %v8071_v42  ;;  %3908 = vadd.xlane.f32.xlu1 %v3907_v26  ;;  %v833_v19 = vmul.f32 1.442695, %v809_v13  ;;  %v945_v6 = vmul.f32 1.442695, %v921_v45  ;;  %v1057_v32 = vmul.f32 1.442695, %v1033_v29 }
 0x1dc   : > { %v5609_v61 = vpop.eup %5608  ;;  %v970_v16 = vadd.f32 %v5607_v28, %v5605_v39  ;;  %v1017_v9 = vadd.f32 %v1001_v49, %v889_v10  ;;  %v1169_v52 = vmul.f32 1.442695, %v1145_v50  ;;  %vm1209_vm9 = vcmp.eq.s32.totalorder %v8042_v31, 3 }
 0x1dd   : > { %v5611_v23 = vpop.eup %5610  ;;  %v1369_v34 = vsub.f32 %v8048_v12, %v8066_v1  ;;  %5618 = vpow2.f32 %v833_v19  ;;  %v8106_v27 = vunpack.c.h.bf16 %v8097_v47  ;;  %v1917_v20 = vmax.f32 %v8076_v5, %v8079_v43 }
 0x1de   : > { %v1082_v4 = vadd.f32 %v5609_v61, %v970_v16  ;;  %v5613_v46 = vpop.eup %5612  ;;  %v1354_v21 = vadd.f32 %v1338_v0, %v1242_v48  ;;  %v1450_v18 = vsel %vm1434_vm7, %v7983_v37, 0.0  ;;  %5620 = vpow2.f32 %v945_v6  ;;  %v8124_v37 = vld [vmem:[%s6562_s12 + $0xd8] sm:$0xff] }
 0x1df   : > { %v1281_v22 = vmul.f32 1.442695, %v1257_v38  ;;  %5622 = vpow2.f32 %v1057_v32  ;;  %v8117_v60 = vunpack.c.h.bf16 %v8103_v30  ;;  %v1933_v35 = vmax.f32 %v1917_v20, %v8094_v53 }
 0x1e0   : > { %v1194_v25 = vadd.f32 %v5611_v23, %v1082_v4  ;;  %v5615_v51 = vpop.eup %5614  ;;  %v1129_v62 = vadd.f32 %v1113_v14, %v1017_v9  ;;  %5624 = vpow2.f32 %v1169_v52  ;;  %v1225_v54 = vsel %vm1209_vm9, %v8028_v17, 0.0 }
 0x1e1   : > { %v1393_v63 = vmul.f32 1.442695, %v1369_v34  ;;  %vm1321_vm10 = vcmp.eq.s32.totalorder %v8042_v31, 4  ;;  %v8128_v36 = vunpack.c.h.bf16 %v8114_v33  ;;  %v1949_v59 = vmax.f32 %v1933_v35, %v8106_v27 }
 0x1e2   : > { %v5617_v44 = vpop.eup %5616  ;;  %v1306_v3 = vadd.f32 %v5613_v46, %v1194_v25  ;;  %v3820_v40 = vadd.f32 %v8035_v56, %v8051_v15  ;;  %5626 = vpow2.f32 %v1281_v22  ;;  %vm1433_vm11 = vcmp.eq.s32.totalorder %v8042_v31, 5  ;;  %v8180_v46 = vld [vmem:[%s6562_s12 + $0xd0] sm:$0xff] }
 0x1e3   : > { %v3839_v55 = vmul.f32 0.6931472, %v5617_v44  ;;  %v8134_v0 = vadd.f32 %v1450_v18, %v1354_v21  ;;  %v1965_v58 = vmax.f32 %v1949_v59, %v8117_v60  ;;  %vm2061_vm12 = vcmp.eq.s32.totalorder %v8124_v37, 0  ;;  %v8200_v59 = vld [vmem:[%s6543_s17 + $0x130] sm:$0xff]  }
 0x1e4   : > { %v1418_v17 = vadd.f32 %v5615_v51, %v1306_v3  ;;  %v1241_v48 = vadd.f32 %v1225_v54, %v1129_v62  ;;  %v1337_v10 = vsel %vm1321_vm10, %v8039_v8, 0.0  ;;  %5628 = vpow2.f32 %v1393_v63 }
 0x1e5   : > { %v3868_v11 = vadd.f32 %v3839_v55, %v7923_v41  ;;  %v1449_v56 = vsel %vm1433_vm11, %v8048_v12, 0.0  ;;  %v8142_v15 = vmax.f32 %v1965_v58, %v8128_v36  ;;  %vm2173_vm13 = vcmp.eq.s32.totalorder %v8124_v37, 1  ;;  %v8214_v58 = vld [vmem:[%s6543_s17 + $0x160] sm:$0xff]  }
 0x1e6   : > { %5630 = vlog2.f32 %v1418_v17  ;;  %v2077_v24 = vsel %vm2061_vm12, %v8076_v5, 0.0  ;;  %v8147_v49 = vunpack.c.l.bf16 %v8058_v7  ;;  %v8150_v41 = vunpack.c.l.bf16 %v8061_v57 }
 0x1e7   : > { %v3884_v31 = vsub.f32 %v3868_v11, %v3820_v40  ;;  %v5619_v39 = vpop.eup %5618  ;;  %v1997_v8 = vsub.f32 %v8076_v5, %v8142_v15  ;;  %v2109_v12 = vsub.f32 %v8079_v43, %v8142_v15  ;;  %v2221_v13 = vsub.f32 %v8094_v53, %v8142_v15 }
 0x1e8   : > { %v2333_v45 = vsub.f32 %v8106_v27, %v8142_v15  ;;  %v5621_v29 = vpop.eup %5620  ;;  %v2189_v50 = vsel %vm2173_vm13, %v8079_v43, 0.0  ;;  %v2445_v57 = vsub.f32 %v8117_v60, %v8142_v15  ;;  %v8165_v28 = vunpack.c.l.bf16 %v8071_v42 }
 0x1e9   : > { %v3904_v7 = vsel %vm1537_vm5, %v3884_v31, 0.0  ;;  %v5623_v5 = vpop.eup %5622  ;;  %v969_v26 = vadd.f32 %v5621_v29, %v5619_v39  ;;  %v2022_v14 = vmul.f32 1.442695, %v1997_v8  ;;  %v2134_v38 = vmul.f32 1.442695, %v2109_v12 }
 0x1ea   : > { %3905 = vadd.xlane.f32.xlu0 %v3904_v7  ;;  %v2246_v61 = vmul.f32 1.442695, %v2221_v13  ;;  %v5625_v16 = vpop.eup %5624  ;;  %v1353_v19 = vadd.f32 %v1337_v10, %v1241_v48  ;;  %vm2285_vm14 = vcmp.eq.s32.totalorder %v8124_v37, 2  ;;  %v2358_v6 = vmul.f32 1.442695, %v2333_v45 }
 0x1eb   : > { %v2557_v43 = vsub.f32 %v8128_v36, %v8142_v15  ;;  %v1081_v32 = vadd.f32 %v5623_v5, %v969_v26  ;;  %5632 = vpow2.f32 %v2022_v14  ;;  %v8171_v42 = vunpack.c.l.bf16 %v8097_v47 }
 0x1ec   : > { %v1916_v23 = vmax.f32 %v8147_v49, %v8150_v41  ;;  %v5627_v9 = vpop.eup %5626  ;;  %5634 = vpow2.f32 %v2134_v38  ;;  %v2205_v52 = vadd.f32 %v2189_v50, %v2077_v24  ;;  %vm2397_vm15 = vcmp.eq.s32.totalorder %v8124_v37, 3 }
 0x1ed   : > { %v2470_v34 = vmul.f32 1.442695, %v2445_v57  ;;  %v1193_v4 = vadd.f32 %v5625_v16, %v1081_v32  ;;  %5636 = vpow2.f32 %v2246_v61  ;;  %v8177_v20 = vunpack.c.l.bf16 %v8103_v30  ;;  %v8247_v16 = vld [vmem:[%s6543_s17 + $0x190] sm:$0xff]  }
 0x1ee   : > { %v1932_v21 = vmax.f32 %v1916_v23, %v8165_v28  ;;  %v5629_v47 = vpop.eup %5628  ;;  %v8183_v18 = vadd.f32 %v1449_v56, %v1353_v19  ;;  %v2301_v22 = vsel %vm2285_vm14, %v8094_v53, 0.0  ;;  %5638 = vpow2.f32 %v2358_v6 }
 0x1ef   : > { %v2582_v25 = vmul.f32 1.442695, %v2557_v43  ;;  %v1305_v51 = vadd.f32 %v5627_v9, %v1193_v4  ;;  %vm2509_vm0 = vcmp.eq.s32.totalorder %v8124_v37, 4  ;;  %v8190_v30 = vunpack.c.l.bf16 %v8114_v33  ;;  %v8203_v33 = vld [vmem:[%s6543_s17 + $0x148] sm:$0xff]  }
 0x1f0   : > { %v5631_v35 = vpop.eup %5630  ;;  %v1948_v62 = vmax.f32 %v1932_v21, %v8171_v42  ;;  %v2413_v63 = vsel %vm2397_vm15, %v8106_v27, 0.0  ;;  %5640 = vpow2.f32 %v2470_v34  ;;  %vm2060_vm1 = vcmp.eq.s32.totalorder %v8180_v46, 0  ;;  %v8261_v9 = vld [vmem:[%s6543_s17 + $0x1a8] sm:$0xff]  }
 0x1f1   : > { %v1492_v54 = vmul.f32 0.6931472, %v5631_v35  ;;  %v1417_v53 = vadd.f32 %v5629_v47, %v1305_v51  ;;  %v2317_v44 = vadd.f32 %v2301_v22, %v2205_v52  ;;  %vm2172_vm2 = vcmp.eq.s32.totalorder %v8180_v46, 1  ;;  %v8267_v4 = vld [vmem:[%s6562_s12 + $0x88] sm:$0xff] }
 0x1f2   : > { %v1964_v3 = vmax.f32 %v1948_v62, %v8177_v20  ;;  %v2525_v55 = vsel %vm2509_vm0, %v8117_v60, 0.0  ;;  %5642 = vpow2.f32 %v2582_v25  ;;  %vm2621_vm3 = vcmp.eq.s32.totalorder %v8124_v37, 5 }
 0x1f3   : > { %v1514_v40 = vadd.f32 %v1492_v54, %v7996_v2  ;;  %5644 = vlog2.f32 %v1417_v53  ;;  %v2076_v17 = vsel %vm2060_vm1, %v8147_v49, 0.0  ;;  %vm2284_vm4 = vcmp.eq.s32.totalorder %v8180_v46, 2 }
 0x1f4   : > { %v8209_v27 = vmax.f32 %v1964_v3, %v8190_v30  ;;  %v2188_v2 = vsel %vm2172_vm2, %v8150_v41, 0.0  ;;  %v8219_v60 = vunpack.c.h.bf16 %v8200_v59  ;;  %v8222_v48 = vunpack.c.h.bf16 %v8203_v33 }
 0x1f5   : > { %v1530_v11 = vsub.f32 %v1514_v40, %v8134_v0  ;;  %v5633_v10 = vpop.eup %5632  ;;  %v2429_v12 = vadd.f32 %v2413_v63, %v2317_v44  ;;  %v8236_v45 = vunpack.c.h.bf16 %v8214_v58  ;;  %v2204_v26 = vadd.f32 %v2188_v2, %v2076_v17 }
 0x1f6   : > { %v1996_v56 = vsub.f32 %v8147_v49, %v8209_v27  ;;  %v2108_v31 = vsub.f32 %v8150_v41, %v8209_v27  ;;  %v2220_v24 = vsub.f32 %v8165_v28, %v8209_v27  ;;  %v2332_v0 = vsub.f32 %v8171_v42, %v8209_v27  ;;  %v5635_v39 = vpop.eup %5634  ;;  %v8239_v49 = vld [vmem:[%s6543_s17 + $0x178] sm:$0xff]  }
 0x1f7   : > { %v1565_v8 = vsel %vm1537_vm5, %v1530_v11, 0.0  ;;  %v2444_v13 = vsub.f32 %v8177_v20, %v8209_v27  ;;  %v5637_v41 = vpop.eup %5636  ;;  %v2157_v29 = vadd.f32 %v5635_v39, %v5633_v10  ;;  %v2300_v14 = vsel %vm2284_vm4, %v8165_v28, 0.0 }
 0x1f8   : > { %1566 = vadd.xlane.f32.xlu1 %v1565_v8  ;;  %v2020_v7 = vmul.f32 1.442695, %v1996_v56  ;;  %v2132_v50 = vmul.f32 1.442695, %v2108_v31  ;;  %v2244_v57 = vmul.f32 1.442695, %v2220_v24  ;;  %v5639_v5 = vpop.eup %5638  ;;  %v2556_v61 = vsub.f32 %v8190_v30, %v8209_v27 }
 0x1f9   : > { %v2356_v38 = vmul.f32 1.442695, %v2332_v0  ;;  %v2269_v19 = vadd.f32 %v5637_v41, %v2157_v29  ;;  %v8250_v6 = vunpack.c.h.bf16 %v8239_v49  ;;  %v3087_v43 = vmax.f32 %v8219_v60, %v8222_v48 }
 0x1fa   : > { %5646 = vpow2.f32 %v2020_v7  ;;  %v5641_v32 = vpop.eup %5640  ;;  %v8257_v28 = vsel %vm2621_vm3, %v8128_v36, 0.0  ;;  %vm2396_vm6 = vcmp.eq.s32.totalorder %v8180_v46, 3  ;;  %v2468_v23 = vmul.f32 1.442695, %v2444_v13 }
 0x1fb   : > { %5648 = vpow2.f32 %v2132_v50  ;;  %v2381_v52 = vadd.f32 %v5639_v5, %v2269_v19  ;;  %v8264_v34 = vunpack.c.h.bf16 %v8247_v16  ;;  %v3103_v21 = vmax.f32 %v3087_v43, %v8236_v45 }
 0x1fc   : > { %5650 = vpow2.f32 %v2244_v57  ;;  %v5643_v47 = vpop.eup %5642  ;;  %v2316_v22 = vadd.f32 %v2300_v14, %v2204_v26  ;;  %vm2508_vm7 = vcmp.eq.s32.totalorder %v8180_v46, 4  ;;  %v2580_v37 = vmul.f32 1.442695, %v2556_v61 }
 0x1fd   : > { %5652 = vpow2.f32 %v2356_v38  ;;  %v5645_v36 = vpop.eup %5644  ;;  %v2493_v25 = vadd.f32 %v5641_v32, %v2381_v52  ;;  %v2412_v35 = vsel %vm2396_vm6, %v8171_v42, 0.0  ;;  %v8273_v51 = vunpack.c.h.bf16 %v8261_v9 }
 0x1fe   : > { %v3119_v62 = vmax.f32 %v3103_v21, %v8250_v6  ;;  %v1490_v54 = vmul.f32 0.6931472, %v5645_v36  ;;  %v8276_v63 = vadd.f32 %v2525_v55, %v2429_v12  ;;  %5654 = vpow2.f32 %v2468_v23 }
 0x1ff   : > { %vm3231_vm8 = vcmp.eq.s32.totalorder %v8267_v4, 0  ;;  %v2605_v53 = vadd.f32 %v5643_v47, %v2493_v25  ;;  %v2524_v44 = vsel %vm2508_vm7, %v8177_v20, 0.0  ;;  %vm3343_vm9 = vcmp.eq.s32.totalorder %v8267_v4, 1 }
 0x200   : > { %v3135_v3 = vmax.f32 %v3119_v62, %v8264_v34  ;;  %v1513_v42 = vadd.f32 %v1490_v54, %v8066_v1  ;;  %v2428_v40 = vadd.f32 %v2412_v35, %v2316_v22  ;;  %5656 = vpow2.f32 %v2580_v37  ;;  %v8346_v62 = vld [vmem:[%s6543_s17 + $0x2d0] sm:$0xff]  }
 0x201   : > { %vm2620_vm10 = vcmp.eq.s32.totalorder %v8180_v46, 5  ;;  %5658 = vlog2.f32 %v2605_v53  ;;  %v3247_v17 = vsel %vm3231_vm8, %v8219_v60, 0.0  ;;  %vm3455_vm11 = vcmp.eq.s32.totalorder %v8267_v4, 2  ;;  %v8331_v46 = vld [vmem:[%s6562_s12 + $0x80] sm:$0xff] }
 0x202   : > { %v8285_v55 = vmax.f32 %v3135_v3, %v8273_v51  ;;  %v1529_v20 = vsub.f32 %v1513_v42, %v8183_v18  ;;  %v3359_v11 = vsel %vm3343_vm9, %v8222_v48, 0.0  ;;  %v8292_v2 = vunpack.c.l.bf16 %v8200_v59 }
 0x203   : > { %v8295_v1 = vunpack.c.l.bf16 %v8203_v33  ;;  %v3471_v39 = vsel %vm3455_vm11, %v8236_v45, 0.0  ;;  %v8310_v8 = vunpack.c.l.bf16 %v8214_v58  ;;  %v3375_v7 = vadd.f32 %v3359_v11, %v3247_v17 }
 0x204   : > { %v5647_v10 = vpop.eup %5646  ;;  %v3167_v56 = vsub.f32 %v8219_v60, %v8285_v55  ;;  %v3279_v31 = vsub.f32 %v8222_v48, %v8285_v55  ;;  %v3391_v24 = vsub.f32 %v8236_v45, %v8285_v55  ;;  %v3503_v18 = vsub.f32 %v8250_v6, %v8285_v55 }
 0x205   : > { %v5649_v0 = vpop.eup %5648  ;;  %v1562_v59 = vsel %vm1537_vm5, %v1529_v20, 0.0  ;;  %v3615_v33 = vsub.f32 %v8264_v34, %v8285_v55  ;;  %vm3567_vm12 = vcmp.eq.s32.totalorder %v8267_v4, 3  ;;  %v3727_v45 = vsub.f32 %v8273_v51, %v8285_v55 }
 0x206   : > { %v5651_v60 = vpop.eup %5650  ;;  %1563 = vadd.xlane.f32.xlu0 %v1562_v59  ;;  %v2156_v48 = vadd.f32 %v5649_v0, %v5647_v10  ;;  %v3188_v12 = vmul.f32 1.442695, %v3167_v56  ;;  %v3300_v13 = vmul.f32 1.442695, %v3279_v31  ;;  %v3412_v41 = vmul.f32 1.442695, %v3391_v24 }
 0x207   : > { %v5653_v29 = vpop.eup %5652  ;;  %v3524_v50 = vmul.f32 1.442695, %v3503_v18  ;;  %v8316_v5 = vunpack.c.l.bf16 %v8239_v49  ;;  %v3086_v58 = vmax.f32 %v8292_v2, %v8295_v1  ;;  %v2540_v14 = vadd.f32 %v2524_v44, %v2428_v40  ;;  %v8359_v44 = vld [vmem:[%s6543_s17 + $0x300] sm:$0xff]   ;;  %v8384_v18 = vld [vmem:[%s6543_s17 + $0x318] sm:$0xff]  }
 0x208   : > { %v2268_v57 = vadd.f32 %v5651_v60, %v2156_v48  ;;  %5660 = vpow2.f32 %v3188_v12  ;;  %v5655_v26 = vpop.eup %5654  ;;  %v2636_v38 = vsel %vm2620_vm10, %v8190_v30, 0.0  ;;  %v3636_v61 = vmul.f32 1.442695, %v3615_v33 }
 0x209   : > { %5662 = vpow2.f32 %v3300_v13  ;;  %v8324_v43 = vunpack.c.l.bf16 %v8247_v16  ;;  %v3102_v49 = vmax.f32 %v3086_v58, %v8310_v8  ;;  %v3487_v23 = vadd.f32 %v3471_v39, %v3375_v7 }
 0x20a   : > { %v2380_v19 = vadd.f32 %v5653_v29, %v2268_v57  ;;  %5664 = vpow2.f32 %v3412_v41  ;;  %v5657_v32 = vpop.eup %5656  ;;  %v3583_v52 = vsel %vm3567_vm12, %v8250_v6, 0.0  ;;  %v3748_v21 = vmul.f32 1.442695, %v3727_v45  ;;  %v8390_v41 = vld [vmem:[%s6543_s17 + $0x330] sm:$0xff]  }
 0x20b   : > { %5666 = vpow2.f32 %v3524_v50  ;;  %v5659_v30 = vpop.eup %5658  ;;  %vm3679_vm13 = vcmp.eq.s32.totalorder %v8267_v4, 4  ;;  %v8335_v16 = vunpack.c.l.bf16 %v8261_v9  ;;  %v3118_v22 = vmax.f32 %v3102_v49, %v8316_v5  ;;  %v8349_v9 = vld [vmem:[%s6543_s17 + $0x2e8] sm:$0xff]  }
 0x20c   : > { %v2492_v47 = vadd.f32 %v5655_v26, %v2380_v19  ;;  %v2653_v37 = vadd.f32 %v8257_v28, %v8276_v63  ;;  %v2679_v36 = vmul.f32 0.6931472, %v5659_v30  ;;  %5668 = vpow2.f32 %v3636_v61  ;;  %v8399_v26 = vld [vmem:[%s6543_s17 + $0x348] sm:$0xff]   ;;  %v8405_v61 = vld [vmem:[%s6562_s12 + $0xf8] sm:$0xff] }
 0x20d   : > { %vm3791_vm14 = vcmp.eq.s32.totalorder %v8267_v4, 5  ;;  %v8341_v25 = vadd.f32 %v2636_v38, %v2540_v14  ;;  %v3134_v35 = vmax.f32 %v3118_v22, %v8324_v43  ;;  %vm3230_vm15 = vcmp.eq.s32.totalorder %v8331_v46, 0 }
 0x20e   : > { %v2604_v6 = vadd.f32 %v5657_v32, %v2492_v47  ;;  %v2701_v54 = vadd.f32 %v2679_v36, %v8142_v15  ;;  %v3599_v53 = vadd.f32 %v3583_v52, %v3487_v23  ;;  %v3695_v28 = vsel %vm3679_vm13, %v8264_v34, 0.0 }
 0x20f   : > { %5670 = vpow2.f32 %v3748_v21  ;;  %v3807_v4 = vsel %vm3791_vm14, %v8273_v51, 0.0  ;;  %v8355_v63 = vmax.f32 %v3134_v35, %v8335_v16  ;;  %vm3342_vm0 = vcmp.eq.s32.totalorder %v8331_v46, 1 }
 0x210   : > { %5672 = vlog2.f32 %v2604_v6  ;;  %v2717_v3 = vsub.f32 %v2701_v54, %v2653_v37  ;;  %v3246_v42 = vsel %vm3230_vm15, %v8292_v2, 0.0  ;;  %v8363_v15 = vunpack.c.h.bf16 %v8346_v62 }
 0x211   : > { %v8366_v34 = vunpack.c.h.bf16 %v8349_v9  ;;  %v3166_v51 = vsub.f32 %v8292_v2, %v8355_v63  ;;  %v3278_v17 = vsub.f32 %v8295_v1, %v8355_v63  ;;  %v3390_v20 = vsub.f32 %v8310_v8, %v8355_v63 }
 0x212   : > { %v5661_v40 = vpop.eup %5660  ;;  %v3502_v11 = vsub.f32 %v8316_v5, %v8355_v63  ;;  %v2751_v56 = vsel %vm1537_vm5, %v2717_v3, 0.0  ;;  %v3358_v31 = vsel %vm3342_vm0, %v8295_v1, 0.0  ;;  %v3614_v24 = vsub.f32 %v8324_v43, %v8355_v63 }
 0x213   : > { %v5663_v10 = vpop.eup %5662  ;;  %v8381_v2 = vunpack.c.h.bf16 %v8359_v44  ;;  %2752 = vadd.xlane.f32.xlu1 %v2751_v56  ;;  %v3186_v39 = vmul.f32 1.442695, %v3166_v51  ;;  %v3298_v33 = vmul.f32 1.442695, %v3278_v17  ;;  %v3410_v60 = vmul.f32 1.442695, %v3390_v20 }
 0x214   : > { %v5665_v0 = vpop.eup %5664  ;;  %v3327_v59 = vadd.f32 %v5663_v10, %v5661_v40  ;;  %v3711_v12 = vadd.f32 %v3695_v28, %v3599_v53  ;;  %vm3454_vm1 = vcmp.eq.s32.totalorder %v8331_v46, 2  ;;  %v3522_v1 = vmul.f32 1.442695, %v3502_v11 }
 0x215   : > { %v5667_v48 = vpop.eup %5666  ;;  %v3726_v13 = vsub.f32 %v8335_v16, %v8355_v63  ;;  %5674 = vpow2.f32 %v3186_v39  ;;  %v8393_v7 = vunpack.c.h.bf16 %v8384_v18  ;;  %v732_v50 = vmax.f32 %v8363_v15, %v8366_v34 }
 0x216   : > { %v3439_v29 = vadd.f32 %v5665_v0, %v3327_v59  ;;  %v5669_v45 = vpop.eup %5668  ;;  %5676 = vpow2.f32 %v3298_v33  ;;  %v3374_v57 = vadd.f32 %v3358_v31, %v3246_v42  ;;  %vm3566_vm2 = vcmp.eq.s32.totalorder %v8331_v46, 3 }
 0x217   : > { %v3634_v58 = vmul.f32 1.442695, %v3614_v24  ;;  %5678 = vpow2.f32 %v3410_v60  ;;  %v8402_v38 = vunpack.c.h.bf16 %v8390_v41  ;;  %v748_v19 = vmax.f32 %v732_v50, %v8381_v2 }
 0x218   : > { %v3551_v14 = vadd.f32 %v5667_v48, %v3439_v29  ;;  %v8408_v32 = vadd.f32 %v3807_v4, %v3711_v12  ;;  %v3470_v23 = vsel %vm3454_vm1, %v8310_v8, 0.0  ;;  %5680 = vpow2.f32 %v3522_v1 }
 0x219   : > { %v5671_v49 = vpop.eup %5670  ;;  %v3746_v52 = vmul.f32 1.442695, %v3726_v13  ;;  %vm3678_vm3 = vcmp.eq.s32.totalorder %v8331_v46, 4  ;;  %v8415_v47 = vunpack.c.h.bf16 %v8399_v26  ;;  %v764_v22 = vmax.f32 %v748_v19, %v8393_v7 }
 0x21a   : > { %v5673_v21 = vpop.eup %5672  ;;  %v3663_v30 = vadd.f32 %v5669_v45, %v3551_v14  ;;  %v3582_v36 = vsel %vm3566_vm2, %v8316_v5, 0.0  ;;  %5682 = vpow2.f32 %v3634_v58  ;;  %vm876_vm4 = vcmp.eq.s32.totalorder %v8405_v61, 0 }
 0x21b   : > { %v2677_v37 = vmul.f32 0.6931472, %v5673_v21  ;;  %v3486_v6 = vadd.f32 %v3470_v23, %v3374_v57  ;;  %v780_v35 = vmax.f32 %v764_v22, %v8402_v38  ;;  %vm988_vm6 = vcmp.eq.s32.totalorder %v8405_v61, 1 }
 0x21c   : > { %v3775_v8 = vadd.f32 %v5671_v49, %v3663_v30  ;;  %v3694_v53 = vsel %vm3678_vm3, %v8324_v43, 0.0  ;;  %5684 = vpow2.f32 %v3746_v52  ;;  %vm3790_vm7 = vcmp.eq.s32.totalorder %v8331_v46, 5 }
 0x21d   : > { %v2700_v54 = vadd.f32 %v2677_v37, %v8209_v27  ;;  %v8428_v28 = vmax.f32 %v780_v35, %v8415_v47  ;;  %v892_v5 = vsel %vm876_vm4, %v8363_v15, 0.0  ;;  %vm1100_vm8 = vcmp.eq.s32.totalorder %v8405_v61, 2 }
 0x21e   : > { %5686 = vlog2.f32 %v3775_v8  ;;  %v1004_v3 = vsel %vm988_vm6, %v8366_v34, 0.0  ;;  %v8435_v42 = vunpack.c.l.bf16 %v8346_v62  ;;  %v8438_v27 = vunpack.c.l.bf16 %v8349_v9 }
 0x21f   : > { %v2716_v4 = vsub.f32 %v2700_v54, %v8341_v25  ;;  %v5675_v43 = vpop.eup %5674  ;;  %v812_v40 = vsub.f32 %v8363_v15, %v8428_v28  ;;  %v924_v51 = vsub.f32 %v8366_v34, %v8428_v28  ;;  %v1036_v17 = vsub.f32 %v8381_v2, %v8428_v28 }
 0x220   : > { %v1148_v25 = vsub.f32 %v8393_v7, %v8428_v28  ;;  %v5677_v20 = vpop.eup %5676  ;;  %v3598_v11 = vadd.f32 %v3582_v36, %v3486_v6  ;;  %v1260_v9 = vsub.f32 %v8402_v38, %v8428_v28  ;;  %v8452_v10 = vunpack.c.l.bf16 %v8359_v44  ;;  %v8503_v6 = vld [vmem:[%s6543_s17 + $0x308] sm:$0xff]  }
 0x221   : > { %v2748_v62 = vsel %vm1537_vm5, %v2716_v4, 0.0  ;;  %v5679_v15 = vpop.eup %5678  ;;  %v3326_v56 = vadd.f32 %v5677_v20, %v5675_v43  ;;  %v839_v34 = vmul.f32 1.442695, %v812_v40  ;;  %v951_v31 = vmul.f32 1.442695, %v924_v51  ;;  %v8529_v20 = vld [vmem:[%s6543_s17 + $0x320] sm:$0xff]  }
 0x222   : > { %2749 = vadd.xlane.f32.xlu0 %v2748_v62  ;;  %v1063_v24 = vmul.f32 1.442695, %v1036_v17  ;;  %v5681_v0 = vpop.eup %5680  ;;  %v1020_v59 = vadd.f32 %v1004_v3, %v892_v5  ;;  %v1116_v39 = vsel %vm1100_vm8, %v8381_v2, 0.0  ;;  %v1175_v33 = vmul.f32 1.442695, %v1148_v25 }
 0x223   : > { %v1372_v60 = vsub.f32 %v8415_v47, %v8428_v28  ;;  %v3438_v48 = vadd.f32 %v5679_v15, %v3326_v56  ;;  %5688 = vpow2.f32 %v839_v34  ;;  %v8460_v44 = vunpack.c.l.bf16 %v8384_v18  ;;  %v8474_v18 = vld [vmem:[%s6562_s12 + $0xf0] sm:$0xff] }
 0x224   : > { %v731_v12 = vmax.f32 %v8435_v42, %v8438_v27  ;;  %v5683_v1 = vpop.eup %5682  ;;  %v8467_v13 = vsel %vm3790_vm7, %v8335_v16, 0.0  ;;  %5690 = vpow2.f32 %v951_v31  ;;  %vm1212_vm9 = vcmp.eq.s32.totalorder %v8405_v61, 3 }
 0x225   : > { %v1287_v2 = vmul.f32 1.442695, %v1260_v9  ;;  %v3550_v29 = vadd.f32 %v5681_v0, %v3438_v48  ;;  %5692 = vpow2.f32 %v1063_v24  ;;  %v8471_v50 = vunpack.c.l.bf16 %v8390_v41  ;;  %v8535_v24 = vld [vmem:[%s6543_s17 + $0x338] sm:$0xff]  }
 0x226   : > { %v747_v45 = vmax.f32 %v731_v12, %v8452_v10  ;;  %v5685_v57 = vpop.eup %5684  ;;  %v1132_v58 = vadd.f32 %v1116_v39, %v1020_v59  ;;  %5694 = vpow2.f32 %v1175_v33  ;;  %vm1324_vm10 = vcmp.eq.s32.totalorder %v8405_v61, 4 }
 0x227   : > { %v1399_v46 = vmul.f32 1.442695, %v1372_v60  ;;  %v3662_v14 = vadd.f32 %v5683_v1, %v3550_v29  ;;  %v1228_v19 = vsel %vm1212_vm9, %v8393_v7, 0.0  ;;  %v8480_v49 = vunpack.c.l.bf16 %v8399_v26  ;;  %v8490_v7 = vld [vmem:[%s6543_s17 + $0x2d8] sm:$0xff]   ;;  %v8493_v26 = vld [vmem:[%s6543_s17 + $0x2f0] sm:$0xff]  }
 0x228   : > { %v5687_v16 = vpop.eup %5686  ;;  %v763_v41 = vmax.f32 %v747_v45, %v8460_v44  ;;  %v8483_v52 = vadd.f32 %v3694_v53, %v3598_v11  ;;  %5696 = vpow2.f32 %v1287_v2  ;;  %vm875_vm11 = vcmp.eq.s32.totalorder %v8474_v18, 0  ;;  %v8546_v1 = vld [vmem:[%s6543_s17 + $0x350] sm:$0xff]  }
 0x229   : > { %v3845_v23 = vmul.f32 0.6931472, %v5687_v16  ;;  %v3774_v21 = vadd.f32 %v5685_v57, %v3662_v14  ;;  %v1340_v30 = vsel %vm1324_vm10, %v8402_v38, 0.0  ;;  %vm987_vm12 = vcmp.eq.s32.totalorder %v8474_v18, 1 }
 0x22a   : > { %v779_v22 = vmax.f32 %v763_v41, %v8471_v50  ;;  %v1244_v36 = vadd.f32 %v1228_v19, %v1132_v58  ;;  %5698 = vpow2.f32 %v1399_v46  ;;  %vm1436_vm13 = vcmp.eq.s32.totalorder %v8405_v61, 5 }
 0x22b   : > { %v3871_v37 = vadd.f32 %v3845_v23, %v8285_v55  ;;  %5700 = vlog2.f32 %v3774_v21  ;;  %v891_v38 = vsel %vm875_vm11, %v8435_v42, 0.0  ;;  %vm1099_vm14 = vcmp.eq.s32.totalorder %v8474_v18, 2 }
 0x22c   : > { %v8498_v8 = vmax.f32 %v779_v22, %v8480_v49  ;;  %v1003_v54 = vsel %vm987_vm12, %v8438_v27, 0.0  ;;  %v8508_v55 = vunpack.c.h.bf16 %v8490_v7  ;;  %v8511_v53 = vunpack.c.h.bf16 %v8493_v26 }
 0x22d   : > { %v3887_v35 = vsub.f32 %v3871_v37, %v8408_v32  ;;  %v5689_v5 = vpop.eup %5688  ;;  %v1115_v17 = vsel %vm1099_vm14, %v8452_v10, 0.0  ;;  %v1019_v34 = vadd.f32 %v1003_v54, %v891_v38  ;;  %vm1211_vm15 = vcmp.eq.s32.totalorder %v8474_v18, 3 }
 0x22e   : > { %v811_v4 = vsub.f32 %v8435_v42, %v8498_v8  ;;  %v923_v3 = vsub.f32 %v8438_v27, %v8498_v8  ;;  %v1035_v43 = vsub.f32 %v8452_v10, %v8498_v8  ;;  %v1147_v32 = vsub.f32 %v8460_v44, %v8498_v8  ;;  %v5691_v40 = vpop.eup %5690 }
 0x22f   : > { %v3913_v51 = vsel %vm1537_vm5, %v3887_v35, 0.0  ;;  %v1259_v25 = vsub.f32 %v8471_v50, %v8498_v8  ;;  %v8526_v42 = vunpack.c.h.bf16 %v8503_v6  ;;  %v5693_v27 = vpop.eup %5692  ;;  %v972_v62 = vadd.f32 %v5691_v40, %v5689_v5 }
 0x230   : > { %3914 = vadd.xlane.f32.xlu1 %v3913_v51  ;;  %v837_v11 = vmul.f32 1.442695, %v811_v4  ;;  %v949_v9 = vmul.f32 1.442695, %v923_v3  ;;  %v1061_v15 = vmul.f32 1.442695, %v1035_v43  ;;  %v5695_v56 = vpop.eup %5694  ;;  %v1371_v10 = vsub.f32 %v8480_v49, %v8498_v8 }
 0x231   : > { %v1173_v31 = vmul.f32 1.442695, %v1147_v32  ;;  %v1084_v0 = vadd.f32 %v5693_v27, %v972_v62  ;;  %v8538_v59 = vunpack.c.h.bf16 %v8529_v20  ;;  %v1919_v39 = vmax.f32 %v8508_v55, %v8511_v53 }
 0x232   : > { %5702 = vpow2.f32 %v837_v11  ;;  %v5697_v33 = vpop.eup %5696  ;;  %v1356_v60 = vadd.f32 %v1340_v30, %v1244_v36  ;;  %v1452_v48 = vsel %vm1436_vm13, %v8415_v47, 0.0  ;;  %v1285_v12 = vmul.f32 1.442695, %v1259_v25  ;;  %v8556_v47 = vld [vmem:[%s6562_s12 + $0x108] sm:$0xff] }
 0x233   : > { %5704 = vpow2.f32 %v949_v9  ;;  %v1196_v2 = vadd.f32 %v5695_v56, %v1084_v0  ;;  %v8549_v29 = vunpack.c.h.bf16 %v8535_v24  ;;  %v1935_v45 = vmax.f32 %v1919_v39, %v8526_v42 }
 0x234   : > { %5706 = vpow2.f32 %v1061_v15  ;;  %v5699_v57 = vpop.eup %5698  ;;  %v1131_v58 = vadd.f32 %v1115_v17, %v1019_v34  ;;  %v1227_v46 = vsel %vm1211_vm15, %v8460_v44, 0.0  ;;  %v1397_v61 = vmul.f32 1.442695, %v1371_v10 }
 0x235   : > { %5708 = vpow2.f32 %v1173_v31  ;;  %v5701_v16 = vpop.eup %5700  ;;  %v1308_v14 = vadd.f32 %v5697_v33, %v1196_v2  ;;  %vm1323_vm0 = vcmp.eq.s32.totalorder %v8474_v18, 4  ;;  %v8560_v19 = vunpack.c.h.bf16 %v8546_v1  ;;  %v8612_v33 = vld [vmem:[%s6562_s12 + $0x100] sm:$0xff] }
 0x236   : > { %v1951_v41 = vmax.f32 %v1935_v45, %v8538_v59  ;;  %v3822_v23 = vadd.f32 %v8467_v13, %v8483_v52  ;;  %v3843_v21 = vmul.f32 0.6931472, %v5701_v16  ;;  %5710 = vpow2.f32 %v1285_v12 }
 0x237   : > { %vm1435_vm1 = vcmp.eq.s32.totalorder %v8474_v18, 5  ;;  %v1420_v44 = vadd.f32 %v5699_v57, %v1308_v14  ;;  %v8566_v30 = vadd.f32 %v1452_v48, %v1356_v60  ;;  %vm2063_vm2 = vcmp.eq.s32.totalorder %v8556_v47, 0 }
 0x238   : > { %v1967_v22 = vmax.f32 %v1951_v41, %v8549_v29  ;;  %v3870_v37 = vadd.f32 %v3843_v21, %v8355_v63  ;;  %v1243_v36 = vadd.f32 %v1227_v46, %v1131_v58  ;;  %v1339_v38 = vsel %vm1323_vm0, %v8471_v50, 0.0  ;;  %v8632_v41 = vld [vmem:[%s6543_s17 + $0x1c0] sm:$0xff]  }
 0x239   : > { %5712 = vpow2.f32 %v1397_v61  ;;  %v1451_v13 = vsel %vm1435_vm1, %v8480_v49, 0.0  ;;  %vm2175_vm3 = vcmp.eq.s32.totalorder %v8556_v47, 1  ;;  %v2079_v35 = vsel %vm2063_vm2, %v8508_v55, 0.0 }
 0x23a   : > { %5714 = vlog2.f32 %v1420_v44  ;;  %v8574_v52 = vmax.f32 %v1967_v22, %v8560_v19  ;;  %v3886_v18 = vsub.f32 %v3870_v37, %v3822_v23  ;;  %v8579_v54 = vunpack.c.l.bf16 %v8490_v7  ;;  %v8646_v22 = vld [vmem:[%s6543_s17 + $0x1f0] sm:$0xff]  }
 0x23b   : > { %v8582_v63 = vunpack.c.l.bf16 %v8493_v26  ;;  %v2191_v32 = vsel %vm2175_vm3, %v8511_v53, 0.0  ;;  %v8597_v40 = vunpack.c.l.bf16 %v8503_v6  ;;  %v1355_v11 = vadd.f32 %v1339_v38, %v1243_v36 }
 0x23c   : > { %v5703_v5 = vpop.eup %5702  ;;  %v1999_v50 = vsub.f32 %v8508_v55, %v8574_v52  ;;  %v2111_v49 = vsub.f32 %v8511_v53, %v8574_v52  ;;  %v2223_v4 = vsub.f32 %v8526_v42, %v8574_v52  ;;  %v2335_v3 = vsub.f32 %v8538_v59, %v8574_v52 }
 0x23d   : > { %v5705_v43 = vpop.eup %5704  ;;  %v3910_v7 = vsel %vm1537_vm5, %v3886_v18, 0.0  ;;  %v2447_v26 = vsub.f32 %v8549_v29, %v8574_v52  ;;  %vm2287_vm4 = vcmp.eq.s32.totalorder %v8556_v47, 2  ;;  %v2559_v53 = vsub.f32 %v8560_v19, %v8574_v52 }
 0x23e   : > { %v5707_v55 = vpop.eup %5706  ;;  %3911 = vadd.xlane.f32.xlu0 %v3910_v7  ;;  %v971_v51 = vadd.f32 %v5705_v43, %v5703_v5  ;;  %v2026_v17 = vmul.f32 1.442695, %v1999_v50  ;;  %v2138_v25 = vmul.f32 1.442695, %v2111_v49  ;;  %v2250_v27 = vmul.f32 1.442695, %v2223_v4 }
 0x23f   : > { %v5709_v62 = vpop.eup %5708  ;;  %v2362_v9 = vmul.f32 1.442695, %v2335_v3  ;;  %v8603_v6 = vunpack.c.l.bf16 %v8529_v20  ;;  %v1918_v56 = vmax.f32 %v8579_v54, %v8582_v63  ;;  %v2207_v31 = vadd.f32 %v2191_v32, %v2079_v35 }
 0x240   : > { %v1083_v15 = vadd.f32 %v5707_v55, %v971_v51  ;;  %5716 = vpow2.f32 %v2026_v17  ;;  %v5711_v34 = vpop.eup %5710  ;;  %vm2399_vm6 = vcmp.eq.s32.totalorder %v8556_v47, 3  ;;  %v2474_v10 = vmul.f32 1.442695, %v2447_v26 }
 0x241   : > { %5718 = vpow2.f32 %v2138_v25  ;;  %v8609_v39 = vunpack.c.l.bf16 %v8535_v24  ;;  %v1934_v60 = vmax.f32 %v1918_v56, %v8597_v40  ;;  %v8615_v48 = vadd.f32 %v1451_v13, %v1355_v11 }
 0x242   : > { %v1195_v0 = vadd.f32 %v5709_v62, %v1083_v15  ;;  %5720 = vpow2.f32 %v2250_v27  ;;  %v2303_v12 = vsel %vm2287_vm4, %v8526_v42, 0.0  ;;  %v2586_v2 = vmul.f32 1.442695, %v2559_v53  ;;  %v8679_v62 = vld [vmem:[%s6543_s17 + $0x220] sm:$0xff]  }
 0x243   : > { %v5713_v20 = vpop.eup %5712  ;;  %5722 = vpow2.f32 %v2362_v9  ;;  %vm2511_vm7 = vcmp.eq.s32.totalorder %v8556_v47, 4  ;;  %v8622_v24 = vunpack.c.l.bf16 %v8546_v1  ;;  %v1950_v58 = vmax.f32 %v1934_v60, %v8603_v6  ;;  %v8635_v1 = vld [vmem:[%s6543_s17 + $0x1d8] sm:$0xff]  }
 0x244   : > { %v5715_v45 = vpop.eup %5714  ;;  %v1307_v57 = vadd.f32 %v5711_v34, %v1195_v0  ;;  %v2415_v61 = vsel %vm2399_vm6, %v8538_v59, 0.0  ;;  %5724 = vpow2.f32 %v2474_v10  ;;  %vm2062_vm8 = vcmp.eq.s32.totalorder %v8612_v33, 0  ;;  %v8693_v34 = vld [vmem:[%s6543_s17 + $0x238] sm:$0xff]  }
 0x245   : > { %v1496_v46 = vmul.f32 0.6931472, %v5715_v45  ;;  %v2319_v16 = vadd.f32 %v2303_v12, %v2207_v31  ;;  %v1966_v14 = vmax.f32 %v1950_v58, %v8609_v39  ;;  %vm2174_vm9 = vcmp.eq.s32.totalorder %v8612_v33, 1  ;;  %v8699_v0 = vld [vmem:[%s6562_s12 + $0xb8] sm:$0xff] }
 0x246   : > { %v1419_v42 = vadd.f32 %v5713_v20, %v1307_v57  ;;  %v2527_v21 = vsel %vm2511_vm7, %v8549_v29, 0.0  ;;  %5726 = vpow2.f32 %v2586_v2  ;;  %vm2623_vm10 = vcmp.eq.s32.totalorder %v8556_v47, 5 }
 0x247   : > { %v1516_v23 = vadd.f32 %v1496_v46, %v8428_v28  ;;  %v8641_v59 = vmax.f32 %v1966_v14, %v8622_v24  ;;  %v2078_v44 = vsel %vm2062_vm8, %v8579_v54, 0.0  ;;  %vm2286_vm11 = vcmp.eq.s32.totalorder %v8612_v33, 2 }
 0x248   : > { %5728 = vlog2.f32 %v1419_v42  ;;  %v2190_v28 = vsel %vm2174_vm9, %v8582_v63, 0.0  ;;  %v8651_v29 = vunpack.c.h.bf16 %v8632_v41  ;;  %v8654_v36 = vunpack.c.h.bf16 %v8635_v1 }
 0x249   : > { %v1532_v37 = vsub.f32 %v1516_v23, %v8566_v30  ;;  %v1998_v13 = vsub.f32 %v8579_v54, %v8641_v59  ;;  %v2110_v18 = vsub.f32 %v8582_v63, %v8641_v59  ;;  %v2222_v35 = vsub.f32 %v8597_v40, %v8641_v59  ;;  %v8671_v54 = vld [vmem:[%s6543_s17 + $0x208] sm:$0xff]  }
 0x24a   : > { %v5717_v38 = vpop.eup %5716  ;;  %v2334_v30 = vsub.f32 %v8603_v6, %v8641_v59  ;;  %v2431_v49 = vadd.f32 %v2415_v61, %v2319_v16  ;;  %v2446_v4 = vsub.f32 %v8609_v39, %v8641_v59  ;;  %v8668_v3 = vunpack.c.h.bf16 %v8646_v22 }
 0x24b   : > { %v5719_v5 = vpop.eup %5718  ;;  %v1571_v50 = vsel %vm1537_vm5, %v1532_v37, 0.0  ;;  %v2024_v7 = vmul.f32 1.442695, %v1998_v13  ;;  %v2136_v32 = vmul.f32 1.442695, %v2110_v18  ;;  %v2206_v51 = vadd.f32 %v2190_v28, %v2078_v44 }
 0x24c   : > { %v5721_v63 = vpop.eup %5720  ;;  %1572 = vadd.xlane.f32.xlu1 %v1571_v50  ;;  %v2159_v43 = vadd.f32 %v5719_v5, %v5717_v38  ;;  %v2248_v26 = vmul.f32 1.442695, %v2222_v35  ;;  %v2302_v17 = vsel %vm2286_vm11, %v8597_v40, 0.0  ;;  %v2360_v25 = vmul.f32 1.442695, %v2334_v30 }
 0x24d   : > { %v5723_v55 = vpop.eup %5722  ;;  %v2558_v27 = vsub.f32 %v8622_v24, %v8641_v59  ;;  %5730 = vpow2.f32 %v2024_v7  ;;  %v8682_v9 = vunpack.c.h.bf16 %v8671_v54  ;;  %v3089_v53 = vmax.f32 %v8651_v29, %v8654_v36 }
 0x24e   : > { %v2271_v11 = vadd.f32 %v5721_v63, %v2159_v43  ;;  %v5725_v15 = vpop.eup %5724  ;;  %v8689_v40 = vsel %vm2623_vm10, %v8560_v19, 0.0  ;;  %5732 = vpow2.f32 %v2136_v32  ;;  %vm2398_vm12 = vcmp.eq.s32.totalorder %v8612_v33, 3 }
 0x24f   : > { %v2472_v56 = vmul.f32 1.442695, %v2446_v4  ;;  %5734 = vpow2.f32 %v2248_v26  ;;  %v8696_v10 = vunpack.c.h.bf16 %v8679_v62  ;;  %v3105_v60 = vmax.f32 %v3089_v53, %v8668_v3 }
 0x250   : > { %v2383_v31 = vadd.f32 %v5723_v55, %v2271_v11  ;;  %v5727_v20 = vpop.eup %5726  ;;  %v2318_v12 = vadd.f32 %v2302_v17, %v2206_v51  ;;  %5736 = vpow2.f32 %v2360_v25  ;;  %vm2510_vm13 = vcmp.eq.s32.totalorder %v8612_v33, 4 }
 0x251   : > { %v2584_v47 = vmul.f32 1.442695, %v2558_v27  ;;  %v2414_v45 = vsel %vm2398_vm12, %v8603_v6, 0.0  ;;  %v8705_v57 = vunpack.c.h.bf16 %v8693_v34  ;;  %v3121_v58 = vmax.f32 %v3105_v60, %v8682_v9 }
 0x252   : > { %v5729_v19 = vpop.eup %5728  ;;  %v2495_v2 = vadd.f32 %v5725_v15, %v2383_v31  ;;  %v8708_v61 = vadd.f32 %v2527_v21, %v2431_v49  ;;  %5738 = vpow2.f32 %v2472_v56  ;;  %vm3233_vm14 = vcmp.eq.s32.totalorder %v8699_v0, 0 }
 0x253   : > { %v1494_v46 = vmul.f32 0.6931472, %v5729_v19  ;;  %v2526_v16 = vsel %vm2510_vm13, %v8609_v39, 0.0  ;;  %v3137_v14 = vmax.f32 %v3121_v58, %v8696_v10  ;;  %vm3345_vm15 = vcmp.eq.s32.totalorder %v8699_v0, 1  ;;  %v8778_v58 = vld [vmem:[%s6543_s17 + $0x360] sm:$0xff]  }
 0x254   : > { %v2607_v42 = vadd.f32 %v5727_v20, %v2495_v2  ;;  %v2430_v23 = vadd.f32 %v2414_v45, %v2318_v12  ;;  %5740 = vpow2.f32 %v2584_v47  ;;  %vm2622_vm0 = vcmp.eq.s32.totalorder %v8612_v33, 5  ;;  %v8763_v33 = vld [vmem:[%s6562_s12 + $0xb0] sm:$0xff] }
 0x255   : > { %v1515_v6 = vadd.f32 %v1494_v46, %v8498_v8  ;;  %v8717_v21 = vmax.f32 %v3137_v14, %v8705_v57  ;;  %v3249_v44 = vsel %vm3233_vm14, %v8651_v29, 0.0  ;;  %vm3457_vm1 = vcmp.eq.s32.totalorder %v8699_v0, 2 }
 0x256   : > { %5742 = vlog2.f32 %v2607_v42  ;;  %v3361_v37 = vsel %vm3345_vm15, %v8654_v36, 0.0  ;;  %v8724_v28 = vunpack.c.l.bf16 %v8632_v41  ;;  %v8727_v8 = vunpack.c.l.bf16 %v8635_v1 }
 0x257   : > { %v1531_v39 = vsub.f32 %v1515_v6, %v8615_v48  ;;  %v5731_v38 = vpop.eup %5730  ;;  %v3169_v13 = vsub.f32 %v8651_v29, %v8717_v21  ;;  %v3281_v18 = vsub.f32 %v8654_v36, %v8717_v21  ;;  %v3393_v35 = vsub.f32 %v8668_v3, %v8717_v21 }
 0x258   : > { %v3505_v48 = vsub.f32 %v8682_v9, %v8717_v21  ;;  %v5733_v30 = vpop.eup %5732  ;;  %v3473_v5 = vsel %vm3457_vm1, %v8668_v3, 0.0  ;;  %v3617_v1 = vsub.f32 %v8696_v10, %v8717_v21  ;;  %v8742_v50 = vunpack.c.l.bf16 %v8646_v22 }
 0x259   : > { %v1568_v41 = vsel %vm1537_vm5, %v1531_v39, 0.0  ;;  %v5735_v29 = vpop.eup %5734  ;;  %v2158_v36 = vadd.f32 %v5733_v30, %v5731_v38  ;;  %v3192_v49 = vmul.f32 1.442695, %v3169_v13  ;;  %v3304_v4 = vmul.f32 1.442695, %v3281_v18 }
 0x25a   : > { %1569 = vadd.xlane.f32.xlu0 %v1568_v41  ;;  %v3416_v63 = vmul.f32 1.442695, %v3393_v35  ;;  %v5737_v43 = vpop.eup %5736  ;;  %v3377_v7 = vadd.f32 %v3361_v37, %v3249_v44  ;;  %v3528_v32 = vmul.f32 1.442695, %v3505_v48  ;;  %vm3569_vm2 = vcmp.eq.s32.totalorder %v8699_v0, 3  ;;  %v8816_v48 = vld [vmem:[%s6543_s17 + $0x3a8] sm:$0xff]  }
 0x25b   : > { %v3729_v3 = vsub.f32 %v8705_v57, %v8717_v21  ;;  %v2270_v26 = vadd.f32 %v5735_v29, %v2158_v36  ;;  %5744 = vpow2.f32 %v3192_v49  ;;  %v8748_v55 = vunpack.c.l.bf16 %v8671_v54 }
 0x25c   : > { %v3088_v22 = vmax.f32 %v8724_v28, %v8727_v8  ;;  %v5739_v51 = vpop.eup %5738  ;;  %v2542_v17 = vadd.f32 %v2526_v16, %v2430_v23  ;;  %v2638_v25 = vsel %vm2622_vm0, %v8622_v24, 0.0  ;;  %5746 = vpow2.f32 %v3304_v4  ;;  %v8791_v16 = vld [vmem:[%s6543_s17 + $0x390] sm:$0xff]  }
 0x25d   : > { %v3640_v27 = vmul.f32 1.442695, %v3617_v1  ;;  %v2382_v11 = vadd.f32 %v5737_v43, %v2270_v26  ;;  %5748 = vpow2.f32 %v3416_v63  ;;  %v8756_v53 = vunpack.c.l.bf16 %v8679_v62  ;;  %v8822_v63 = vld [vmem:[%s6543_s17 + $0x3c0] sm:$0xff]  }
 0x25e   : > { %v3104_v54 = vmax.f32 %v3088_v22, %v8742_v50  ;;  %v5741_v15 = vpop.eup %5740  ;;  %v3489_v56 = vadd.f32 %v3473_v5, %v3377_v7  ;;  %5750 = vpow2.f32 %v3528_v32  ;;  %v3585_v31 = vsel %vm3569_vm2, %v8682_v9, 0.0 }
 0x25f   : > { %v3752_v60 = vmul.f32 1.442695, %v3729_v3  ;;  %v2494_v20 = vadd.f32 %v5739_v51, %v2382_v11  ;;  %vm3681_vm3 = vcmp.eq.s32.totalorder %v8699_v0, 4  ;;  %v8767_v62 = vunpack.c.l.bf16 %v8693_v34  ;;  %v8781_v34 = vld [vmem:[%s6543_s17 + $0x378] sm:$0xff]  }
 0x260   : > { %v5743_v24 = vpop.eup %5742  ;;  %v3120_v12 = vmax.f32 %v3104_v54, %v8748_v55  ;;  %v2655_v47 = vadd.f32 %v8689_v40, %v8708_v61  ;;  %5752 = vpow2.f32 %v3640_v27  ;;  %vm3793_vm4 = vcmp.eq.s32.totalorder %v8699_v0, 5  ;;  %v8831_v51 = vld [vmem:[%s6543_s17 + $0x3d8] sm:$0xff]   ;;  %v8837_v27 = vld [vmem:[%s6562_s12 + $0x128] sm:$0xff] }
 0x261   : > { %v2683_v19 = vmul.f32 0.6931472, %v5743_v24  ;;  %v2606_v9 = vadd.f32 %v5741_v15, %v2494_v20  ;;  %v8773_v2 = vadd.f32 %v2638_v25, %v2542_v17  ;;  %vm3232_vm6 = vcmp.eq.s32.totalorder %v8763_v33, 0 }
 0x262   : > { %v3136_v45 = vmax.f32 %v3120_v12, %v8756_v53  ;;  %v3601_v42 = vadd.f32 %v3585_v31, %v3489_v56  ;;  %v3697_v40 = vsel %vm3681_vm3, %v8696_v10, 0.0  ;;  %5754 = vpow2.f32 %v3752_v60 }
 0x263   : > { %v2703_v46 = vadd.f32 %v2683_v19, %v8574_v52  ;;  %5756 = vlog2.f32 %v2606_v9  ;;  %v3809_v0 = vsel %vm3793_vm4, %v8705_v57, 0.0  ;;  %vm3344_vm7 = vcmp.eq.s32.totalorder %v8763_v33, 1 }
 0x264   : > { %v8787_v61 = vmax.f32 %v3136_v45, %v8767_v62  ;;  %v3248_v6 = vsel %vm3232_vm6, %v8724_v28, 0.0  ;;  %v8795_v52 = vunpack.c.h.bf16 %v8778_v58  ;;  %v8798_v10 = vunpack.c.h.bf16 %v8781_v34 }
 0x265   : > { %v2719_v14 = vsub.f32 %v2703_v46, %v2655_v47  ;;  %v5745_v23 = vpop.eup %5744  ;;  %v3360_v18 = vsel %vm3344_vm7, %v8727_v8, 0.0  ;;  %v3713_v49 = vadd.f32 %v3697_v40, %v3601_v42  ;;  %vm3456_vm8 = vcmp.eq.s32.totalorder %v8763_v33, 2 }
 0x266   : > { %v3168_v57 = vsub.f32 %v8724_v28, %v8787_v61  ;;  %v3280_v44 = vsub.f32 %v8727_v8, %v8787_v61  ;;  %v3392_v39 = vsub.f32 %v8742_v50, %v8787_v61  ;;  %v3504_v37 = vsub.f32 %v8748_v55, %v8787_v61  ;;  %v5747_v38 = vpop.eup %5746 }
 0x267   : > { %v2757_v13 = vsel %vm1537_vm5, %v2719_v14, 0.0  ;;  %v3616_v35 = vsub.f32 %v8756_v53, %v8787_v61  ;;  %v8813_v28 = vunpack.c.h.bf16 %v8791_v16  ;;  %v5749_v30 = vpop.eup %5748  ;;  %v3329_v41 = vadd.f32 %v5747_v38, %v5745_v23 }
 0x268   : > { %2758 = vadd.xlane.f32.xlu1 %v2757_v13  ;;  %v3190_v5 = vmul.f32 1.442695, %v3168_v57  ;;  %v3302_v1 = vmul.f32 1.442695, %v3280_v44  ;;  %v3414_v29 = vmul.f32 1.442695, %v3392_v39  ;;  %v5751_v36 = vpop.eup %5750  ;;  %v3728_v4 = vsub.f32 %v8767_v62, %v8787_v61 }
 0x269   : > { %v3526_v8 = vmul.f32 1.442695, %v3504_v37  ;;  %v3441_v43 = vadd.f32 %v5749_v30, %v3329_v41  ;;  %v8825_v7 = vunpack.c.h.bf16 %v8816_v48  ;;  %v734_v32 = vmax.f32 %v8795_v52, %v8798_v10 }
 0x26a   : > { %5758 = vpow2.f32 %v3190_v5  ;;  %v5753_v3 = vpop.eup %5752  ;;  %v3376_v26 = vadd.f32 %v3360_v18, %v3248_v6  ;;  %vm3568_vm9 = vcmp.eq.s32.totalorder %v8763_v33, 3  ;;  %v3638_v22 = vmul.f32 1.442695, %v3616_v35 }
 0x26b   : > { %5760 = vpow2.f32 %v3302_v1  ;;  %v3553_v17 = vadd.f32 %v5751_v36, %v3441_v43  ;;  %v8834_v25 = vunpack.c.h.bf16 %v8822_v63  ;;  %v750_v11 = vmax.f32 %v734_v32, %v8813_v28 }
 0x26c   : > { %5762 = vpow2.f32 %v3414_v29  ;;  %v5755_v54 = vpop.eup %5754  ;;  %v8840_v15 = vadd.f32 %v3809_v0, %v3713_v49  ;;  %v3472_v56 = vsel %vm3456_vm8, %v8742_v50, 0.0  ;;  %v3750_v31 = vmul.f32 1.442695, %v3728_v4 }
 0x26d   : > { %5764 = vpow2.f32 %v3526_v8  ;;  %v5757_v60 = vpop.eup %5756  ;;  %v3665_v24 = vadd.f32 %v5753_v3, %v3553_v17  ;;  %vm3680_vm10 = vcmp.eq.s32.totalorder %v8763_v33, 4  ;;  %v8847_v20 = vunpack.c.h.bf16 %v8831_v51 }
 0x26e   : > { %v766_v12 = vmax.f32 %v750_v11, %v8825_v7  ;;  %v2681_v47 = vmul.f32 0.6931472, %v5757_v60  ;;  %v3584_v19 = vsel %vm3568_vm9, %v8748_v55, 0.0  ;;  %5766 = vpow2.f32 %v3638_v22 }
 0x26f   : > { %vm878_vm11 = vcmp.eq.s32.totalorder %v8837_v27, 0  ;;  %v3777_v50 = vadd.f32 %v5755_v54, %v3665_v24  ;;  %v3488_v9 = vadd.f32 %v3472_v56, %v3376_v26  ;;  %vm990_vm12 = vcmp.eq.s32.totalorder %v8837_v27, 1 }
 0x270   : > { %v782_v45 = vmax.f32 %v766_v12, %v8834_v25  ;;  %v2702_v46 = vadd.f32 %v2681_v47, %v8641_v59  ;;  %v3696_v42 = vsel %vm3680_vm10, %v8756_v53, 0.0  ;;  %5768 = vpow2.f32 %v3750_v31 }
 0x271   : > { %vm3792_vm13 = vcmp.eq.s32.totalorder %v8763_v33, 5  ;;  %5770 = vlog2.f32 %v3777_v50  ;;  %v894_v55 = vsel %vm878_vm11, %v8795_v52, 0.0  ;;  %vm1102_vm14 = vcmp.eq.s32.totalorder %v8837_v27, 2 }
 0x272   : > { %v8860_v40 = vmax.f32 %v782_v45, %v8847_v20  ;;  %v2718_v0 = vsub.f32 %v2702_v46, %v8773_v2  ;;  %v1006_v14 = vsel %vm990_vm12, %v8798_v10, 0.0  ;;  %v8867_v6 = vunpack.c.l.bf16 %v8778_v58 }
 0x273   : > { %v8870_v59 = vunpack.c.l.bf16 %v8781_v34  ;;  %v3600_v37 = vadd.f32 %v3584_v19, %v3488_v9  ;;  %v8884_v38 = vunpack.c.l.bf16 %v8791_v16  ;;  %v1022_v41 = vadd.f32 %v1006_v14, %v894_v55  ;;  %v8935_v9 = vld [vmem:[%s6543_s17 + $0x398] sm:$0xff]  }
 0x274   : > { %v5759_v53 = vpop.eup %5758  ;;  %v814_v23 = vsub.f32 %v8795_v52, %v8860_v40  ;;  %v926_v57 = vsub.f32 %v8798_v10, %v8860_v40  ;;  %v1038_v44 = vsub.f32 %v8813_v28, %v8860_v40  ;;  %v1150_v2 = vsub.f32 %v8825_v7, %v8860_v40 }
 0x275   : > { %v5761_v39 = vpop.eup %5760  ;;  %v2754_v58 = vsel %vm1537_vm5, %v2718_v0, 0.0  ;;  %v1262_v34 = vsub.f32 %v8834_v25, %v8860_v40  ;;  %v1118_v5 = vsel %vm1102_vm14, %v8813_v28, 0.0  ;;  %v1374_v29 = vsub.f32 %v8847_v20, %v8860_v40 }
 0x276   : > { %v5763_v52 = vpop.eup %5762  ;;  %2755 = vadd.xlane.f32.xlu0 %v2754_v58  ;;  %v3328_v13 = vadd.f32 %v5761_v39, %v5759_v53  ;;  %v843_v10 = vmul.f32 1.442695, %v814_v23  ;;  %v955_v18 = vmul.f32 1.442695, %v926_v57  ;;  %v1067_v35 = vmul.f32 1.442695, %v1038_v44 }
 0x277   : > { %v5765_v30 = vpop.eup %5764  ;;  %v1179_v1 = vmul.f32 1.442695, %v1150_v2  ;;  %v8892_v16 = vunpack.c.l.bf16 %v8816_v48  ;;  %v733_v49 = vmax.f32 %v8867_v6, %v8870_v59  ;;  %v8899_v4 = vsel %vm3792_vm13, %v8767_v62, 0.0  ;;  %v8906_v48 = vld [vmem:[%s6562_s12 + $0x120] sm:$0xff]  ;;  %v8961_v39 = vld [vmem:[%s6543_s17 + $0x3b0] sm:$0xff]  }
 0x278   : > { %v3440_v36 = vadd.f32 %v5763_v52, %v3328_v13  ;;  %5772 = vpow2.f32 %v843_v10  ;;  %v5767_v8 = vpop.eup %5766  ;;  %vm1214_vm15 = vcmp.eq.s32.totalorder %v8837_v27, 3  ;;  %v1291_v28 = vmul.f32 1.442695, %v1262_v34 }
 0x279   : > { %5774 = vpow2.f32 %v955_v18  ;;  %v8903_v32 = vunpack.c.l.bf16 %v8822_v63  ;;  %v749_v3 = vmax.f32 %v733_v49, %v8884_v38  ;;  %v1134_v22 = vadd.f32 %v1118_v5, %v1022_v41 }
 0x27a   : > { %v3552_v43 = vadd.f32 %v5765_v30, %v3440_v36  ;;  %5776 = vpow2.f32 %v1067_v35  ;;  %v5769_v26 = vpop.eup %5768  ;;  %vm1326_vm0 = vcmp.eq.s32.totalorder %v8837_v27, 4  ;;  %v1403_v33 = vmul.f32 1.442695, %v1374_v29  ;;  %v8967_v35 = vld [vmem:[%s6543_s17 + $0x3c8] sm:$0xff]  }
 0x27b   : > { %5778 = vpow2.f32 %v1179_v1  ;;  %v5771_v62 = vpop.eup %5770  ;;  %v1230_v11 = vsel %vm1214_vm15, %v8825_v7, 0.0  ;;  %v8912_v54 = vunpack.c.l.bf16 %v8831_v51  ;;  %v765_v63 = vmax.f32 %v749_v3, %v8892_v16  ;;  %v8922_v7 = vld [vmem:[%s6543_s17 + $0x368] sm:$0xff]   ;;  %v8925_v51 = vld [vmem:[%s6543_s17 + $0x380] sm:$0xff]  }
 0x27c   : > { %v3664_v17 = vadd.f32 %v5767_v8, %v3552_v43  ;;  %v3849_v56 = vmul.f32 0.6931472, %v5771_v62  ;;  %v8915_v31 = vadd.f32 %v3696_v42, %v3600_v37  ;;  %5780 = vpow2.f32 %v1291_v28  ;;  %v8978_v8 = vld [vmem:[%s6543_s17 + $0x3e0] sm:$0xff]  }
 0x27d   : > { %vm877_vm1 = vcmp.eq.s32.totalorder %v8906_v48, 0  ;;  %v1342_v24 = vsel %vm1326_vm0, %v8834_v25, 0.0  ;;  %v781_v12 = vmax.f32 %v765_v63, %v8903_v32  ;;  %vm989_vm2 = vcmp.eq.s32.totalorder %v8906_v48, 1 }
 0x27e   : > { %v3776_v60 = vadd.f32 %v5769_v26, %v3664_v17  ;;  %v3873_v47 = vadd.f32 %v3849_v56, %v8717_v21  ;;  %v1246_v19 = vadd.f32 %v1230_v11, %v1134_v22  ;;  %5782 = vpow2.f32 %v1403_v33 }
 0x27f   : > { %vm1438_vm3 = vcmp.eq.s32.totalorder %v8837_v27, 5  ;;  %v8930_v50 = vmax.f32 %v781_v12, %v8912_v54  ;;  %v893_v25 = vsel %vm877_vm1, %v8867_v6, 0.0  ;;  %vm1101_vm4 = vcmp.eq.s32.totalorder %v8906_v48, 2 }
 0x280   : > { %5784 = vlog2.f32 %v3776_v60  ;;  %v3889_v45 = vsub.f32 %v3873_v47, %v8840_v15  ;;  %v1005_v46 = vsel %vm989_vm2, %v8870_v59, 0.0  ;;  %v8940_v21 = vunpack.c.h.bf16 %v8922_v7 }
 0x281   : > { %v8943_v42 = vunpack.c.h.bf16 %v8925_v51  ;;  %v813_v0 = vsub.f32 %v8867_v6, %v8930_v50  ;;  %v925_v14 = vsub.f32 %v8870_v59, %v8930_v50  ;;  %v1037_v53 = vsub.f32 %v8884_v38, %v8930_v50 }
 0x282   : > { %v5773_v55 = vpop.eup %5772  ;;  %v1149_v15 = vsub.f32 %v8892_v16, %v8930_v50  ;;  %v3919_v57 = vsel %vm1537_vm5, %v3889_v45, 0.0  ;;  %v1117_v44 = vsel %vm1101_vm4, %v8884_v38, 0.0  ;;  %v1261_v2 = vsub.f32 %v8903_v32, %v8930_v50 }
 0x283   : > { %v5775_v23 = vpop.eup %5774  ;;  %v8958_v6 = vunpack.c.h.bf16 %v8935_v9  ;;  %3920 = vadd.xlane.f32.xlu1 %v3919_v57  ;;  %v841_v37 = vmul.f32 1.442695, %v813_v0  ;;  %v953_v34 = vmul.f32 1.442695, %v925_v14  ;;  %v1065_v52 = vmul.f32 1.442695, %v1037_v53 }
 0x284   : > { %v5777_v59 = vpop.eup %5776  ;;  %v974_v58 = vadd.f32 %v5775_v23, %v5773_v55  ;;  %v1021_v10 = vadd.f32 %v1005_v46, %v893_v25  ;;  %v1177_v18 = vmul.f32 1.442695, %v1149_v15  ;;  %vm1213_vm6 = vcmp.eq.s32.totalorder %v8906_v48, 3 }
 0x285   : > { %v5779_v13 = vpop.eup %5778  ;;  %v1373_v38 = vsub.f32 %v8912_v54, %v8930_v50  ;;  %5786 = vpow2.f32 %v841_v37  ;;  %v8970_v41 = vunpack.c.h.bf16 %v8961_v39  ;;  %v1921_v5 = vmax.f32 %v8940_v21, %v8943_v42 }
 0x286   : > { %v1086_v30 = vadd.f32 %v5777_v59, %v974_v58  ;;  %v5781_v1 = vpop.eup %5780  ;;  %v1358_v29 = vadd.f32 %v1342_v24, %v1246_v19  ;;  %v1454_v36 = vsel %vm1438_vm3, %v8847_v20, 0.0  ;;  %5788 = vpow2.f32 %v953_v34  ;;  %v8988_v20 = vld [vmem:[%s6562_s12 + $0x138] sm:$0xff] }
 0x287   : > { %v1289_v49 = vmul.f32 1.442695, %v1261_v2  ;;  %5790 = vpow2.f32 %v1065_v52  ;;  %v8981_v43 = vunpack.c.h.bf16 %v8967_v35  ;;  %v1937_v3 = vmax.f32 %v1921_v5, %v8958_v6 }
 0x288   : > { %v1198_v28 = vadd.f32 %v5779_v13, %v1086_v30  ;;  %v5783_v26 = vpop.eup %5782  ;;  %v1133_v22 = vadd.f32 %v1117_v44, %v1021_v10  ;;  %5792 = vpow2.f32 %v1177_v18  ;;  %v1229_v33 = vsel %vm1213_vm6, %v8892_v16, 0.0 }
 0x289   : > { %v1401_v27 = vmul.f32 1.442695, %v1373_v38  ;;  %vm1325_vm7 = vcmp.eq.s32.totalorder %v8906_v48, 4  ;;  %v8992_v11 = vunpack.c.h.bf16 %v8978_v8  ;;  %v1953_v63 = vmax.f32 %v1937_v3, %v8970_v41 }
 0x28a   : > { %v5785_v62 = vpop.eup %5784  ;;  %v1310_v17 = vadd.f32 %v5781_v1, %v1198_v28  ;;  %v3824_v56 = vadd.f32 %v8899_v4, %v8915_v31  ;;  %5794 = vpow2.f32 %v1289_v49  ;;  %vm1437_vm8 = vcmp.eq.s32.totalorder %v8906_v48, 5  ;;  %v9044_v1 = vld [vmem:[%s6562_s12 + $0x130] sm:$0xff] }
 0x28b   : > { %v3847_v60 = vmul.f32 0.6931472, %v5785_v62  ;;  %v8998_v24 = vadd.f32 %v1454_v36, %v1358_v29  ;;  %v1969_v12 = vmax.f32 %v1953_v63, %v8981_v43  ;;  %vm2065_vm9 = vcmp.eq.s32.totalorder %v8988_v20, 0  ;;  %v9064_v63 = vld [vmem:[%s6543_s17 + $0x250] sm:$0xff]  }
 0x28c   : > { %v1422_v16 = vadd.f32 %v5783_v26, %v1310_v17  ;;  %v1245_v19 = vadd.f32 %v1229_v33, %v1133_v22  ;;  %v1341_v25 = vsel %vm1325_vm7, %v8903_v32, 0.0  ;;  %5796 = vpow2.f32 %v1401_v27 }
 0x28d   : > { %v3872_v47 = vadd.f32 %v3847_v60, %v8787_v61  ;;  %v1453_v4 = vsel %vm1437_vm8, %v8912_v54, 0.0  ;;  %v9006_v31 = vmax.f32 %v1969_v12, %v8992_v11  ;;  %vm2177_vm10 = vcmp.eq.s32.totalorder %v8988_v20, 1  ;;  %v9078_v12 = vld [vmem:[%s6543_s17 + $0x280] sm:$0xff]  }
 0x28e   : > { %5798 = vlog2.f32 %v1422_v16  ;;  %v2081_v45 = vsel %vm2065_vm9, %v8940_v21, 0.0  ;;  %v9011_v46 = vunpack.c.l.bf16 %v8922_v7  ;;  %v9014_v61 = vunpack.c.l.bf16 %v8925_v51 }
 0x28f   : > { %v3888_v48 = vsub.f32 %v3872_v47, %v3824_v56  ;;  %v5787_v55 = vpop.eup %5786  ;;  %v2001_v32 = vsub.f32 %v8940_v21, %v9006_v31  ;;  %v2113_v54 = vsub.f32 %v8943_v42, %v9006_v31  ;;  %v2225_v0 = vsub.f32 %v8958_v6, %v9006_v31 }
 0x290   : > { %v2337_v14 = vsub.f32 %v8970_v41, %v9006_v31  ;;  %v5789_v53 = vpop.eup %5788  ;;  %v2193_v15 = vsel %vm2177_vm10, %v8943_v42, 0.0  ;;  %v2449_v51 = vsub.f32 %v8981_v43, %v9006_v31  ;;  %v9029_v23 = vunpack.c.l.bf16 %v8935_v9 }
 0x291   : > { %v3916_v7 = vsel %vm1537_vm5, %v3888_v48, 0.0  ;;  %v5791_v21 = vpop.eup %5790  ;;  %v973_v57 = vadd.f32 %v5789_v53, %v5787_v55  ;;  %v2030_v44 = vmul.f32 1.442695, %v2001_v32  ;;  %v2142_v2 = vmul.f32 1.442695, %v2113_v54 }
 0x292   : > { %3917 = vadd.xlane.f32.xlu0 %v3916_v7  ;;  %v2254_v59 = vmul.f32 1.442695, %v2225_v0  ;;  %v5793_v58 = vpop.eup %5792  ;;  %v1357_v37 = vadd.f32 %v1341_v25, %v1245_v19  ;;  %vm2289_vm11 = vcmp.eq.s32.totalorder %v8988_v20, 2  ;;  %v2366_v34 = vmul.f32 1.442695, %v2337_v14 }
 0x293   : > { %v2561_v42 = vsub.f32 %v8992_v11, %v9006_v31  ;;  %v1085_v52 = vadd.f32 %v5791_v21, %v973_v57  ;;  %5800 = vpow2.f32 %v2030_v44  ;;  %v9035_v9 = vunpack.c.l.bf16 %v8961_v39 }
 0x294   : > { %v1920_v13 = vmax.f32 %v9011_v46, %v9014_v61  ;;  %v5795_v10 = vpop.eup %5794  ;;  %5802 = vpow2.f32 %v2142_v2  ;;  %v2209_v18 = vadd.f32 %v2193_v15, %v2081_v45  ;;  %vm2401_vm12 = vcmp.eq.s32.totalorder %v8988_v20, 3 }
 0x295   : > { %v2478_v38 = vmul.f32 1.442695, %v2449_v51  ;;  %v1197_v30 = vadd.f32 %v5793_v58, %v1085_v52  ;;  %5804 = vpow2.f32 %v2254_v59  ;;  %v9041_v5 = vunpack.c.l.bf16 %v8967_v35  ;;  %v9111_v58 = vld [vmem:[%s6543_s17 + $0x2b0] sm:$0xff]  }
 0x296   : > { %v1936_v29 = vmax.f32 %v1920_v13, %v9029_v23  ;;  %v5797_v39 = vpop.eup %5796  ;;  %v9047_v36 = vadd.f32 %v1453_v4, %v1357_v37  ;;  %v2305_v49 = vsel %vm2289_vm11, %v8958_v6, 0.0  ;;  %5806 = vpow2.f32 %v2366_v34 }
 0x297   : > { %v2590_v28 = vmul.f32 1.442695, %v2561_v42  ;;  %v1309_v26 = vadd.f32 %v5795_v10, %v1197_v30  ;;  %vm2513_vm13 = vcmp.eq.s32.totalorder %v8988_v20, 4  ;;  %v9054_v35 = vunpack.c.l.bf16 %v8978_v8  ;;  %v9067_v8 = vld [vmem:[%s6543_s17 + $0x268] sm:$0xff]  }
 0x298   : > { %v5799_v3 = vpop.eup %5798  ;;  %v1952_v22 = vmax.f32 %v1936_v29, %v9035_v9  ;;  %v2417_v27 = vsel %vm2401_vm12, %v8970_v41, 0.0  ;;  %5808 = vpow2.f32 %v2478_v38  ;;  %vm2064_vm14 = vcmp.eq.s32.totalorder %v9044_v1, 0  ;;  %v9125_v10 = vld [vmem:[%s6543_s17 + $0x2c8] sm:$0xff]  }
 0x299   : > { %v1500_v33 = vmul.f32 0.6931472, %v5799_v3  ;;  %v1421_v6 = vadd.f32 %v5797_v39, %v1309_v26  ;;  %v2321_v62 = vadd.f32 %v2305_v49, %v2209_v18  ;;  %vm2176_vm15 = vcmp.eq.s32.totalorder %v9044_v1, 1  ;;  %v9131_v30 = vld [vmem:[%s6562_s12 + $0xe8] sm:$0xff] }
 0x29a   : > { %v1968_v17 = vmax.f32 %v1952_v22, %v9041_v5  ;;  %v2529_v60 = vsel %vm2513_vm13, %v8981_v43, 0.0  ;;  %5810 = vpow2.f32 %v2590_v28  ;;  %vm2625_vm0 = vcmp.eq.s32.totalorder %v8988_v20, 5 }
 0x29b   : > { %v1518_v56 = vadd.f32 %v1500_v33, %v8860_v40  ;;  %5812 = vlog2.f32 %v1421_v6  ;;  %v2080_v16 = vsel %vm2064_vm14, %v9011_v46, 0.0  ;;  %vm2288_vm1 = vcmp.eq.s32.totalorder %v9044_v1, 2 }
 0x29c   : > { %v9073_v41 = vmax.f32 %v1968_v17, %v9054_v35  ;;  %v2192_v40 = vsel %vm2176_vm15, %v9014_v61, 0.0  ;;  %v9083_v43 = vunpack.c.h.bf16 %v9064_v63  ;;  %v9086_v19 = vunpack.c.h.bf16 %v9067_v8 }
 0x29d   : > { %v1534_v47 = vsub.f32 %v1518_v56, %v8998_v24  ;;  %v5801_v25 = vpop.eup %5800  ;;  %v2433_v54 = vadd.f32 %v2417_v27, %v2321_v62  ;;  %v9100_v14 = vunpack.c.h.bf16 %v9078_v12  ;;  %v2208_v57 = vadd.f32 %v2192_v40, %v2080_v16 }
 0x29e   : > { %v2000_v4 = vsub.f32 %v9011_v46, %v9073_v41  ;;  %v2112_v48 = vsub.f32 %v9014_v61, %v9073_v41  ;;  %v2224_v45 = vsub.f32 %v9029_v23, %v9073_v41  ;;  %v2336_v24 = vsub.f32 %v9035_v9, %v9073_v41  ;;  %v5803_v55 = vpop.eup %5802  ;;  %v9103_v46 = vld [vmem:[%s6543_s17 + $0x298] sm:$0xff]  }
 0x29f   : > { %v1577_v32 = vsel %vm1537_vm5, %v1534_v47, 0.0  ;;  %v2448_v0 = vsub.f32 %v9041_v5, %v9073_v41  ;;  %v5805_v61 = vpop.eup %5804  ;;  %v2161_v53 = vadd.f32 %v5803_v55, %v5801_v25  ;;  %v2304_v44 = vsel %vm2288_vm1, %v9029_v23, 0.0 }
 0x2a0   : > { %1578 = vadd.xlane.f32.xlu1 %v1577_v32  ;;  %v2028_v7 = vmul.f32 1.442695, %v2000_v4  ;;  %v2140_v15 = vmul.f32 1.442695, %v2112_v48  ;;  %v2252_v51 = vmul.f32 1.442695, %v2224_v45  ;;  %v5807_v21 = vpop.eup %5806  ;;  %v2560_v59 = vsub.f32 %v9054_v35, %v9073_v41 }
 0x2a1   : > { %v2364_v2 = vmul.f32 1.442695, %v2336_v24  ;;  %v2273_v37 = vadd.f32 %v5805_v61, %v2161_v53  ;;  %v9114_v34 = vunpack.c.h.bf16 %v9103_v46  ;;  %v3091_v42 = vmax.f32 %v9083_v43, %v9086_v19 }
 0x2a2   : > { %5814 = vpow2.f32 %v2028_v7  ;;  %v5809_v52 = vpop.eup %5808  ;;  %v9121_v23 = vsel %vm2625_vm0, %v8992_v11, 0.0  ;;  %vm2400_vm2 = vcmp.eq.s32.totalorder %v9044_v1, 3  ;;  %v2476_v13 = vmul.f32 1.442695, %v2448_v0 }
 0x2a3   : > { %5816 = vpow2.f32 %v2140_v15  ;;  %v2385_v18 = vadd.f32 %v5807_v21, %v2273_v37  ;;  %v9128_v38 = vunpack.c.h.bf16 %v9111_v58  ;;  %v3107_v29 = vmax.f32 %v3091_v42, %v9100_v14 }
 0x2a4   : > { %5818 = vpow2.f32 %v2252_v51  ;;  %v5811_v39 = vpop.eup %5810  ;;  %v2320_v49 = vadd.f32 %v2304_v44, %v2208_v57  ;;  %vm2512_vm3 = vcmp.eq.s32.totalorder %v9044_v1, 4  ;;  %v2588_v20 = vmul.f32 1.442695, %v2560_v59 }
 0x2a5   : > { %5820 = vpow2.f32 %v2364_v2  ;;  %v5813_v11 = vpop.eup %5812  ;;  %v2497_v28 = vadd.f32 %v5809_v52, %v2385_v18  ;;  %v2416_v3 = vsel %vm2400_vm2, %v9035_v9, 0.0  ;;  %v9137_v26 = vunpack.c.h.bf16 %v9125_v10 }
 0x2a6   : > { %v3123_v22 = vmax.f32 %v3107_v29, %v9114_v34  ;;  %v1498_v33 = vmul.f32 0.6931472, %v5813_v11  ;;  %v9140_v27 = vadd.f32 %v2529_v60, %v2433_v54  ;;  %5822 = vpow2.f32 %v2476_v13 }
 0x2a7   : > { %vm3235_vm4 = vcmp.eq.s32.totalorder %v9131_v30, 0  ;;  %v2609_v6 = vadd.f32 %v5811_v39, %v2497_v28  ;;  %v2528_v62 = vsel %vm2512_vm3, %v9041_v5, 0.0  ;;  %vm3347_vm6 = vcmp.eq.s32.totalorder %v9131_v30, 1 }
 0x2a8   : > { %v3139_v17 = vmax.f32 %v3123_v22, %v9128_v38  ;;  %v1517_v9 = vadd.f32 %v1498_v33, %v8930_v50  ;;  %v2432_v56 = vadd.f32 %v2416_v3, %v2320_v49  ;;  %5824 = vpow2.f32 %v2588_v20  ;;  %v9209_v22 = vld [vmem:[%s6543_s17 + $0x3f0] sm:$0xff]  }
 0x2a9   : > { %vm2624_vm7 = vcmp.eq.s32.totalorder %v9044_v1, 5  ;;  %5826 = vlog2.f32 %v2609_v6  ;;  %v3251_v16 = vsel %vm3235_vm4, %v9083_v43, 0.0  ;;  %vm3459_vm8 = vcmp.eq.s32.totalorder %v9131_v30, 2 }
 0x2aa   : > { %v9149_v60 = vmax.f32 %v3139_v17, %v9137_v26  ;;  %v1533_v5 = vsub.f32 %v1517_v9, %v9047_v36  ;;  %v3363_v47 = vsel %vm3347_vm6, %v9086_v19, 0.0  ;;  %v9156_v40 = vunpack.c.l.bf16 %v9064_v63 }
 0x2ab   : > { %v9159_v50 = vunpack.c.l.bf16 %v9067_v8  ;;  %v3475_v55 = vsel %vm3459_vm8, %v9100_v14, 0.0  ;;  %v9174_v32 = vunpack.c.l.bf16 %v9078_v12  ;;  %v3379_v7 = vadd.f32 %v3363_v47, %v3251_v16 }
 0x2ac   : > { %v5815_v25 = vpop.eup %5814  ;;  %v3171_v4 = vsub.f32 %v9083_v43, %v9149_v60  ;;  %v3283_v48 = vsub.f32 %v9086_v19, %v9149_v60  ;;  %v3395_v45 = vsub.f32 %v9100_v14, %v9149_v60  ;;  %v3507_v36 = vsub.f32 %v9114_v34, %v9149_v60 }
 0x2ad   : > { %v5817_v24 = vpop.eup %5816  ;;  %v1574_v63 = vsel %vm1537_vm5, %v1533_v5, 0.0  ;;  %v3619_v8 = vsub.f32 %v9128_v38, %v9149_v60  ;;  %vm3571_vm9 = vcmp.eq.s32.totalorder %v9131_v30, 3  ;;  %v3731_v14 = vsub.f32 %v9137_v26, %v9149_v60 }
 0x2ae   : > { %v5819_v43 = vpop.eup %5818  ;;  %1575 = vadd.xlane.f32.xlu0 %v1574_v63  ;;  %v2160_v19 = vadd.f32 %v5817_v24, %v5815_v25  ;;  %v3196_v54 = vmul.f32 1.442695, %v3171_v4  ;;  %v3308_v0 = vmul.f32 1.442695, %v3283_v48  ;;  %v3420_v61 = vmul.f32 1.442695, %v3395_v45 }
 0x2af   : > { %v5821_v53 = vpop.eup %5820  ;;  %v3532_v15 = vmul.f32 1.442695, %v3507_v36  ;;  %v9180_v21 = vunpack.c.l.bf16 %v9103_v46  ;;  %v3090_v12 = vmax.f32 %v9156_v40, %v9159_v50  ;;  %v2544_v44 = vadd.f32 %v2528_v62, %v2432_v56  ;;  %v9222_v62 = vld [vmem:[%s6543_s17 + $0x420] sm:$0xff]   ;;  %v9247_v45 = vld [vmem:[%s6543_s17 + $0x438] sm:$0xff]  }
 0x2b0   : > { %v2272_v51 = vadd.f32 %v5819_v43, %v2160_v19  ;;  %5828 = vpow2.f32 %v3196_v54  ;;  %v5823_v57 = vpop.eup %5822  ;;  %v2640_v2 = vsel %vm2624_vm7, %v9054_v35, 0.0  ;;  %v3644_v59 = vmul.f32 1.442695, %v3619_v8 }
 0x2b1   : > { %5830 = vpow2.f32 %v3308_v0  ;;  %v9188_v42 = vunpack.c.l.bf16 %v9111_v58  ;;  %v3106_v46 = vmax.f32 %v3090_v12, %v9174_v32  ;;  %v3491_v13 = vadd.f32 %v3475_v55, %v3379_v7 }
 0x2b2   : > { %v2384_v37 = vadd.f32 %v5821_v53, %v2272_v51  ;;  %5832 = vpow2.f32 %v3420_v61  ;;  %v5825_v52 = vpop.eup %5824  ;;  %v3587_v18 = vsel %vm3571_vm9, %v9114_v34, 0.0  ;;  %v3756_v1 = vmul.f32 1.442695, %v3731_v14  ;;  %v9203_v34 = vld [vmem:[%s6562_s12 + $0xe0] sm:$0xff]  ;;  %v9258_v53 = vld [vmem:[%s6543_s17 + $0x450] sm:$0xff]  }
 0x2b3   : > { %5834 = vpow2.f32 %v3532_v15  ;;  %v5827_v35 = vpop.eup %5826  ;;  %vm3683_vm10 = vcmp.eq.s32.totalorder %v9131_v30, 4  ;;  %v9196_v58 = vunpack.c.l.bf16 %v9125_v10  ;;  %v3122_v39 = vmax.f32 %v3106_v46, %v9180_v21  ;;  %v9212_v10 = vld [vmem:[%s6543_s17 + $0x408] sm:$0xff]  }
 0x2b4   : > { %v2496_v29 = vadd.f32 %v5823_v57, %v2384_v37  ;;  %v2657_v49 = vadd.f32 %v9121_v23, %v9140_v27  ;;  %v2687_v20 = vmul.f32 0.6931472, %v5827_v35  ;;  %5836 = vpow2.f32 %v3644_v59  ;;  %v9269_v57 = vld [vmem:[%s6543_s17 + $0x468] sm:$0xff]   ;;  %v9275_v59 = vld [vmem:[%s6562_s12 + $0x158] sm:$0xff] }
 0x2b5   : > { %vm3795_vm11 = vcmp.eq.s32.totalorder %v9131_v30, 5  ;;  %v9205_v28 = vadd.f32 %v2640_v2, %v2544_v44  ;;  %v3138_v3 = vmax.f32 %v3122_v39, %v9188_v42  ;;  %v3603_v6 = vadd.f32 %v3587_v18, %v3491_v13 }
 0x2b6   : > { %v2608_v11 = vadd.f32 %v5825_v52, %v2496_v29  ;;  %v2705_v33 = vadd.f32 %v2687_v20, %v9006_v31  ;;  %v3699_v23 = vsel %vm3683_vm10, %v9128_v38, 0.0  ;;  %5838 = vpow2.f32 %v3756_v1 }
 0x2b7   : > { %v3811_v30 = vsel %vm3795_vm11, %v9137_v26, 0.0  ;;  %v9218_v27 = vmax.f32 %v3138_v3, %v9196_v58  ;;  %vm3234_vm12 = vcmp.eq.s32.totalorder %v9203_v34, 0  ;;  %vm3346_vm13 = vcmp.eq.s32.totalorder %v9203_v34, 1 }
 0x2b8   : > { %5840 = vlog2.f32 %v2608_v11  ;;  %v2721_v17 = vsub.f32 %v2705_v33, %v2657_v49  ;;  %v9226_v31 = vunpack.c.h.bf16 %v9209_v22  ;;  %v9229_v38 = vunpack.c.h.bf16 %v9212_v10 }
 0x2b9   : > { %v3170_v26 = vsub.f32 %v9156_v40, %v9218_v27  ;;  %v3282_v56 = vsub.f32 %v9159_v50, %v9218_v27  ;;  %v3394_v16 = vsub.f32 %v9174_v32, %v9218_v27  ;;  %v3506_v5 = vsub.f32 %v9180_v21, %v9218_v27 }
 0x2ba   : > { %v5829_v9 = vpop.eup %5828  ;;  %v2763_v25 = vsel %vm1537_vm5, %v2721_v17, 0.0  ;;  %vm3458_vm14 = vcmp.eq.s32.totalorder %v9203_v34, 2  ;;  %v3618_v4 = vsub.f32 %v9188_v42, %v9218_v27  ;;  %v9244_v48 = vunpack.c.h.bf16 %v9222_v62 }
 0x2bb   : > { %v5831_v47 = vpop.eup %5830  ;;  %2764 = vadd.xlane.f32.xlu1 %v2763_v25  ;;  %v3194_v63 = vmul.f32 1.442695, %v3170_v26  ;;  %v3306_v55 = vmul.f32 1.442695, %v3282_v56  ;;  %v3418_v8 = vmul.f32 1.442695, %v3394_v16  ;;  %v3730_v61 = vsub.f32 %v9196_v58, %v9218_v27 }
 0x2bc   : > { %v5833_v36 = vpop.eup %5832  ;;  %v3331_v24 = vadd.f32 %v5831_v47, %v5829_v9  ;;  %v3250_v19 = vsel %vm3234_vm12, %v9156_v40, 0.0  ;;  %v3362_v54 = vsel %vm3346_vm13, %v9159_v50, 0.0  ;;  %v3530_v0 = vmul.f32 1.442695, %v3506_v5 }
 0x2bd   : > { %v5835_v43 = vpop.eup %5834  ;;  %5842 = vpow2.f32 %v3194_v63  ;;  %v9261_v15 = vunpack.c.h.bf16 %v9247_v45  ;;  %v736_v14 = vmax.f32 %v9226_v31, %v9229_v38  ;;  %v3715_v51 = vadd.f32 %v3699_v23, %v3603_v6 }
 0x2be   : > { %v3443_v7 = vadd.f32 %v5833_v36, %v3331_v24  ;;  %v5837_v40 = vpop.eup %5836  ;;  %5844 = vpow2.f32 %v3306_v55  ;;  %v3474_v50 = vsel %vm3458_vm14, %v9174_v32, 0.0  ;;  %v3642_v12 = vmul.f32 1.442695, %v3618_v4 }
 0x2bf   : > { %5846 = vpow2.f32 %v3418_v8  ;;  %v9272_v2 = vunpack.c.h.bf16 %v9258_v53  ;;  %v752_v37 = vmax.f32 %v736_v14, %v9244_v48  ;;  %v3378_v52 = vadd.f32 %v3362_v54, %v3250_v19 }
 0x2c0   : > { %v3555_v44 = vadd.f32 %v5835_v43, %v3443_v7  ;;  %v5839_v46 = vpop.eup %5838  ;;  %5848 = vpow2.f32 %v3530_v0  ;;  %vm3570_vm15 = vcmp.eq.s32.totalorder %v9203_v34, 3  ;;  %v3754_v13 = vmul.f32 1.442695, %v3730_v61 }
 0x2c1   : > { %vm3682_vm0 = vcmp.eq.s32.totalorder %v9203_v34, 4  ;;  %v9281_v1 = vunpack.c.h.bf16 %v9269_v57  ;;  %v768_v35 = vmax.f32 %v752_v37, %v9261_v15  ;;  %v9284_v39 = vadd.f32 %v3811_v30, %v3715_v51  ;;  %v9335_v51 = vld [vmem:[%s6562_s12 + $0x150] sm:$0xff] }
 0x2c2   : > { %v5841_v18 = vpop.eup %5840  ;;  %v3667_v32 = vadd.f32 %v5837_v40, %v3555_v44  ;;  %5850 = vpow2.f32 %v3642_v12  ;;  %vm880_vm1 = vcmp.eq.s32.totalorder %v9275_v59, 0  ;;  %v3586_v20 = vsel %vm3570_vm15, %v9180_v21, 0.0 }
 0x2c3   : > { %v2685_v29 = vmul.f32 0.6931472, %v5841_v18  ;;  %v784_v11 = vmax.f32 %v768_v35, %v9272_v2  ;;  %vm992_vm2 = vcmp.eq.s32.totalorder %v9275_v59, 1  ;;  %v3490_v33 = vadd.f32 %v3474_v50, %v3378_v52  ;;  %v9360_v35 = vld [vmem:[%s6543_s17 + $0x410] sm:$0xff]  }
 0x2c4   : > { %v3779_v49 = vadd.f32 %v5839_v46, %v3667_v32  ;;  %v3698_v6 = vsel %vm3682_vm0, %v9188_v42, 0.0  ;;  %5852 = vpow2.f32 %v3754_v13  ;;  %vm3794_vm3 = vcmp.eq.s32.totalorder %v9203_v34, 5 }
 0x2c5   : > { %v2704_v3 = vadd.f32 %v2685_v29, %v9073_v41  ;;  %v9294_v23 = vmax.f32 %v784_v11, %v9281_v1  ;;  %v896_v30 = vsel %vm880_vm1, %v9226_v31, 0.0  ;;  %v1008_v17 = vsel %vm992_vm2, %v9229_v38, 0.0 }
 0x2c6   : > { %5854 = vlog2.f32 %v3779_v49  ;;  %v9300_v9 = vunpack.c.l.bf16 %v9209_v22  ;;  %v9303_v41 = vunpack.c.l.bf16 %v9212_v10  ;;  %vm1104_vm4 = vcmp.eq.s32.totalorder %v9275_v59, 2 }
 0x2c7   : > { %v2720_v21 = vsub.f32 %v2704_v3, %v9205_v28  ;;  %v5843_v42 = vpop.eup %5842  ;;  %v816_v26 = vsub.f32 %v9226_v31, %v9294_v23  ;;  %v928_v56 = vsub.f32 %v9229_v38, %v9294_v23  ;;  %v1040_v16 = vsub.f32 %v9244_v48, %v9294_v23  ;;  %v9372_v3 = vld [vmem:[%s6543_s17 + $0x428] sm:$0xff]  }
 0x2c8   : > { %v1152_v28 = vsub.f32 %v9261_v15, %v9294_v23  ;;  %v5845_v5 = vpop.eup %5844  ;;  %v1264_v10 = vsub.f32 %v9272_v2, %v9294_v23  ;;  %v9318_v47 = vunpack.c.l.bf16 %v9222_v62  ;;  %v3602_v63 = vadd.f32 %v3586_v20, %v3490_v33 }
 0x2c9   : > { %v2760_v22 = vsel %vm1537_vm5, %v2720_v21, 0.0  ;;  %v5847_v31 = vpop.eup %5846  ;;  %v3330_v38 = vadd.f32 %v5845_v5, %v5843_v42  ;;  %v847_v25 = vmul.f32 1.442695, %v816_v26  ;;  %v959_v4 = vmul.f32 1.442695, %v928_v56 }
 0x2ca   : > { %2761 = vadd.xlane.f32.xlu0 %v2760_v22  ;;  %v1071_v36 = vmul.f32 1.442695, %v1040_v16  ;;  %v5849_v24 = vpop.eup %5848  ;;  %v1024_v55 = vadd.f32 %v1008_v17, %v896_v30  ;;  %v1183_v8 = vmul.f32 1.442695, %v1152_v28  ;;  %v1376_v43 = vsub.f32 %v9281_v1, %v9294_v23  ;;  %v9398_v28 = vld [vmem:[%s6543_s17 + $0x440] sm:$0xff]  }
 0x2cb   : > { %v3442_v19 = vadd.f32 %v5847_v31, %v3330_v38  ;;  %5856 = vpow2.f32 %v847_v25  ;;  %v9323_v54 = vunpack.c.l.bf16 %v9247_v45  ;;  %v735_v62 = vmax.f32 %v9300_v9, %v9303_v41 }
 0x2cc   : > { %v5851_v0 = vpop.eup %5850  ;;  %5858 = vpow2.f32 %v959_v4  ;;  %v1120_v61 = vsel %vm1104_vm4, %v9244_v48, 0.0  ;;  %vm1216_vm6 = vcmp.eq.s32.totalorder %v9275_v59, 3  ;;  %v1295_v7 = vmul.f32 1.442695, %v1264_v10 }
 0x2cd   : > { %v3554_v14 = vadd.f32 %v5849_v24, %v3442_v19  ;;  %5860 = vpow2.f32 %v1071_v36  ;;  %v9332_v40 = vunpack.c.l.bf16 %v9258_v53  ;;  %v751_v45 = vmax.f32 %v735_v62, %v9318_v47  ;;  %v9418_v62 = vld [vmem:[%s6543_s17 + $0x470] sm:$0xff]  }
 0x2ce   : > { %v5853_v50 = vpop.eup %5852  ;;  %v9341_v12 = vsel %vm3794_vm3, %v9196_v58, 0.0  ;;  %5862 = vpow2.f32 %v1183_v8  ;;  %vm1328_vm7 = vcmp.eq.s32.totalorder %v9275_v59, 4  ;;  %v1407_v48 = vmul.f32 1.442695, %v1376_v43 }
 0x2cf   : > { %v3666_v37 = vadd.f32 %v5851_v0, %v3554_v14  ;;  %v1136_v53 = vadd.f32 %v1120_v61, %v1024_v55  ;;  %v9345_v46 = vunpack.c.l.bf16 %v9269_v57  ;;  %v767_v52 = vmax.f32 %v751_v45, %v9323_v54  ;;  %v9357_v57 = vld [vmem:[%s6543_s17 + $0x3f8] sm:$0xff]  }
 0x2d0   : > { %v5855_v44 = vpop.eup %5854  ;;  %v1232_v58 = vsel %vm1216_vm6, %v9261_v15, 0.0  ;;  %5864 = vpow2.f32 %v1295_v7  ;;  %vm879_vm8 = vcmp.eq.s32.totalorder %v9335_v51, 0  ;;  %v9352_v34 = vadd.f32 %v3698_v6, %v3602_v63  ;;  %v9406_v63 = vld [vmem:[%s6543_s17 + $0x458] sm:$0xff]  }
 0x2d1   : > { %v3853_v13 = vmul.f32 0.6931472, %v5855_v44  ;;  %v3778_v18 = vadd.f32 %v5853_v50, %v3666_v37  ;;  %v783_v32 = vmax.f32 %v767_v52, %v9332_v40  ;;  %vm991_vm9 = vcmp.eq.s32.totalorder %v9335_v51, 1 }
 0x2d2   : > { %v1344_v15 = vsel %vm1328_vm7, %v9272_v2, 0.0  ;;  %5866 = vpow2.f32 %v1407_v48  ;;  %vm1440_vm10 = vcmp.eq.s32.totalorder %v9275_v59, 5  ;;  %v1248_v49 = vadd.f32 %v1232_v58, %v1136_v53 }
 0x2d3   : > { %v3875_v29 = vadd.f32 %v3853_v13, %v9149_v60  ;;  %5868 = vlog2.f32 %v3778_v18  ;;  %v9368_v20 = vmax.f32 %v783_v32, %v9345_v46  ;;  %v895_v11 = vsel %vm879_vm8, %v9300_v9, 0.0  ;;  %v9435_v32 = vld [vmem:[%s6562_s12 + $0x168] sm:$0xff] }
 0x2d4   : > { %v1007_v60 = vsel %vm991_vm9, %v9303_v41, 0.0  ;;  %v9377_v6 = vunpack.c.h.bf16 %v9357_v57  ;;  %v9380_v2 = vunpack.c.h.bf16 %v9360_v35  ;;  %vm1103_vm11 = vcmp.eq.s32.totalorder %v9335_v51, 2 }
 0x2d5   : > { %v3891_v33 = vsub.f32 %v3875_v29, %v9284_v39  ;;  %v5857_v30 = vpop.eup %5856  ;;  %v815_v21 = vsub.f32 %v9300_v9, %v9368_v20  ;;  %v927_v17 = vsub.f32 %v9303_v41, %v9368_v20  ;;  %v1039_v42 = vsub.f32 %v9318_v47, %v9368_v20 }
 0x2d6   : > { %v1151_v39 = vsub.f32 %v9323_v54, %v9368_v20  ;;  %v5859_v26 = vpop.eup %5858  ;;  %v1263_v16 = vsub.f32 %v9332_v40, %v9368_v20  ;;  %v9395_v9 = vunpack.c.h.bf16 %v9372_v3  ;;  %v1456_v25 = vsel %vm1440_vm10, %v9281_v1, 0.0 }
 0x2d7   : > { %v3925_v56 = vsel %vm1537_vm5, %v3891_v33, 0.0  ;;  %v5861_v41 = vpop.eup %5860  ;;  %v976_v5 = vadd.f32 %v5859_v26, %v5857_v30  ;;  %v845_v22 = vmul.f32 1.442695, %v815_v21  ;;  %v957_v10 = vmul.f32 1.442695, %v927_v17 }
 0x2d8   : > { %3926 = vadd.xlane.f32.xlu1 %v3925_v56  ;;  %v1069_v31 = vmul.f32 1.442695, %v1039_v42  ;;  %v5863_v38 = vpop.eup %5862  ;;  %v1023_v4 = vadd.f32 %v1007_v60, %v895_v11  ;;  %v1181_v36 = vmul.f32 1.442695, %v1151_v39  ;;  %v1375_v24 = vsub.f32 %v9345_v46, %v9368_v20 }
 0x2d9   : > { %v1088_v55 = vadd.f32 %v5861_v41, %v976_v5  ;;  %5870 = vpow2.f32 %v845_v22  ;;  %v9409_v8 = vunpack.c.h.bf16 %v9398_v28  ;;  %v1923_v43 = vmax.f32 %v9377_v6, %v9380_v2 }
 0x2da   : > { %v5865_v19 = vpop.eup %5864  ;;  %5872 = vpow2.f32 %v957_v10  ;;  %v1119_v59 = vsel %vm1103_vm11, %v9318_v47, 0.0  ;;  %vm1215_vm12 = vcmp.eq.s32.totalorder %v9335_v51, 3  ;;  %v1293_v1 = vmul.f32 1.442695, %v1263_v16 }
 0x2db   : > { %v1200_v0 = vadd.f32 %v5863_v38, %v1088_v55  ;;  %5874 = vpow2.f32 %v1069_v31  ;;  %v9421_v61 = vunpack.c.h.bf16 %v9406_v63  ;;  %v1939_v7 = vmax.f32 %v1923_v43, %v9395_v9 }
 0x2dc   : > { %v5867_v14 = vpop.eup %5866  ;;  %v1360_v45 = vadd.f32 %v1344_v15, %v1248_v49  ;;  %5876 = vpow2.f32 %v1181_v36  ;;  %vm1327_vm13 = vcmp.eq.s32.totalorder %v9335_v51, 4  ;;  %v1405_v50 = vmul.f32 1.442695, %v1375_v24 }
 0x2dd   : > { %v5869_v47 = vpop.eup %5868  ;;  %v1312_v48 = vadd.f32 %v5865_v19, %v1200_v0  ;;  %v1135_v44 = vadd.f32 %v1119_v59, %v1023_v4  ;;  %v9426_v37 = vunpack.c.h.bf16 %v9418_v62  ;;  %v1955_v53 = vmax.f32 %v1939_v7, %v9409_v8 }
 0x2de   : > { %v3826_v52 = vadd.f32 %v9341_v12, %v9352_v34  ;;  %v3851_v13 = vmul.f32 0.6931472, %v5869_v47  ;;  %v1231_v58 = vsel %vm1215_vm12, %v9323_v54, 0.0  ;;  %5878 = vpow2.f32 %v1293_v1  ;;  %v9501_v47 = vld [vmem:[%s6562_s12 + $0x160] sm:$0xff] }
 0x2df   : > { %v1424_v18 = vadd.f32 %v5867_v14, %v1312_v48  ;;  %v1971_v29 = vmax.f32 %v1955_v53, %v9421_v61  ;;  %v9439_v49 = vadd.f32 %v1456_v25, %v1360_v45  ;;  %v1343_v11 = vsel %vm1327_vm13, %v9332_v40, 0.0 }
 0x2e0   : > { %v3874_v15 = vadd.f32 %v3851_v13, %v9218_v27  ;;  %5880 = vpow2.f32 %v1405_v50  ;;  %v1247_v12 = vadd.f32 %v1231_v58, %v1135_v44  ;;  %vm1439_vm14 = vcmp.eq.s32.totalorder %v9335_v51, 5  ;;  %v9505_v44 = vld [vmem:[%s6543_s17 + $0x2e0] sm:$0xff]  }
 0x2e1   : > { %5882 = vlog2.f32 %v1424_v18  ;;  %v9446_v54 = vmax.f32 %v1971_v29, %v9426_v37  ;;  %vm2067_vm15 = vcmp.eq.s32.totalorder %v9435_v32, 0  ;;  %v9450_v33 = vunpack.c.l.bf16 %v9357_v57  ;;  %v9521_v29 = vld [vmem:[%s6543_s17 + $0x310] sm:$0xff]  }
 0x2e2   : > { %v3890_v34 = vsub.f32 %v3874_v15, %v3826_v52  ;;  %v9453_v27 = vunpack.c.l.bf16 %v9360_v35  ;;  %vm2179_vm0 = vcmp.eq.s32.totalorder %v9435_v32, 1  ;;  %v9468_v39 = vunpack.c.l.bf16 %v9372_v3 }
 0x2e3   : > { %v5871_v60 = vpop.eup %5870  ;;  %v2003_v40 = vsub.f32 %v9377_v6, %v9446_v54  ;;  %v2115_v30 = vsub.f32 %v9380_v2, %v9446_v54  ;;  %v2227_v21 = vsub.f32 %v9395_v9, %v9446_v54  ;;  %v2339_v17 = vsub.f32 %v9409_v8, %v9446_v54 }
 0x2e4   : > { %v5873_v42 = vpop.eup %5872  ;;  %v3922_v57 = vsel %vm1537_vm5, %v3890_v34, 0.0  ;;  %v2451_v35 = vsub.f32 %v9421_v61, %v9446_v54  ;;  %v1455_v10 = vsel %vm1439_vm14, %v9345_v46, 0.0  ;;  %vm2291_vm1 = vcmp.eq.s32.totalorder %v9435_v32, 2 }
 0x2e5   : > { %v5875_v26 = vpop.eup %5874  ;;  %3923 = vadd.xlane.f32.xlu0 %v3922_v57  ;;  %v975_v56 = vadd.f32 %v5873_v42, %v5871_v60  ;;  %v2034_v16 = vmul.f32 1.442695, %v2003_v40  ;;  %v2146_v41 = vmul.f32 1.442695, %v2115_v30  ;;  %v2258_v5 = vmul.f32 1.442695, %v2227_v21 }
 0x2e6   : > { %v5877_v22 = vpop.eup %5876  ;;  %v2370_v31 = vmul.f32 1.442695, %v2339_v17  ;;  %v2563_v38 = vsub.f32 %v9426_v37, %v9446_v54  ;;  %v9477_v3 = vunpack.c.l.bf16 %v9398_v28  ;;  %v1922_v4 = vmax.f32 %v9450_v33, %v9453_v27  ;;  %v9547_v17 = vld [vmem:[%s6543_s17 + $0x328] sm:$0xff]  }
 0x2e7   : > { %v1087_v25 = vadd.f32 %v5875_v26, %v975_v56  ;;  %5884 = vpow2.f32 %v2034_v16  ;;  %v2083_v51 = vsel %vm2067_vm15, %v9377_v6, 0.0  ;;  %v2195_v46 = vsel %vm2179_vm0, %v9380_v2, 0.0 }
 0x2e8   : > { %v5879_v36 = vpop.eup %5878  ;;  %5886 = vpow2.f32 %v2146_v41  ;;  %v2482_v24 = vmul.f32 1.442695, %v2451_v35  ;;  %v9488_v43 = vunpack.c.l.bf16 %v9406_v63  ;;  %v1938_v28 = vmax.f32 %v1922_v4, %v9468_v39 }
 0x2e9   : > { %v1199_v55 = vadd.f32 %v5877_v22, %v1087_v25  ;;  %5888 = vpow2.f32 %v2258_v5  ;;  %v1359_v59 = vadd.f32 %v1343_v11, %v1247_v12  ;;  %vm2403_vm2 = vcmp.eq.s32.totalorder %v9435_v32, 3 }
 0x2ea   : > { %v5881_v19 = vpop.eup %5880  ;;  %5890 = vpow2.f32 %v2370_v31  ;;  %v2594_v6 = vmul.f32 1.442695, %v2563_v38  ;;  %v2211_v2 = vadd.f32 %v2195_v46, %v2083_v51  ;;  %v9493_v7 = vunpack.c.l.bf16 %v9418_v62  ;;  %v9508_v62 = vld [vmem:[%s6543_s17 + $0x2f8] sm:$0xff]  }
 0x2eb   : > { %v5883_v1 = vpop.eup %5882  ;;  %v1311_v0 = vadd.f32 %v5879_v36, %v1199_v55  ;;  %v1954_v63 = vmax.f32 %v1938_v28, %v9477_v3  ;;  %v2307_v45 = vsel %vm2291_vm1, %v9395_v9, 0.0  ;;  %5892 = vpow2.f32 %v2482_v24  ;;  %v9567_v24 = vld [vmem:[%s6543_s17 + $0x358] sm:$0xff]  }
 0x2ec   : > { %v1504_v14 = vmul.f32 0.6931472, %v5883_v1  ;;  %vm2515_vm3 = vcmp.eq.s32.totalorder %v9435_v32, 4  ;;  %v9511_v52 = vadd.f32 %v1455_v10, %v1359_v59  ;;  %v2419_v9 = vsel %vm2403_vm2, %v9409_v8, 0.0  ;;  %v9553_v10 = vld [vmem:[%s6543_s17 + $0x340] sm:$0xff]  }
 0x2ed   : > { %v1423_v50 = vadd.f32 %v5881_v19, %v1311_v0  ;;  %v1970_v48 = vmax.f32 %v1954_v63, %v9488_v43  ;;  %5894 = vpow2.f32 %v2594_v6  ;;  %v2323_v13 = vadd.f32 %v2307_v45, %v2211_v2 }
 0x2ee   : > { %v1520_v53 = vadd.f32 %v1504_v14, %v9294_v23  ;;  %v2531_v58 = vsel %vm2515_vm3, %v9421_v61, 0.0  ;;  %vm2066_vm4 = vcmp.eq.s32.totalorder %v9501_v47, 0  ;;  %v9526_v23 = vunpack.c.h.bf16 %v9505_v44 }
 0x2ef   : > { %5896 = vlog2.f32 %v1423_v50  ;;  %v9518_v18 = vmax.f32 %v1970_v48, %v9493_v7  ;;  %v9529_v8 = vunpack.c.h.bf16 %v9508_v62  ;;  %vm2178_vm6 = vcmp.eq.s32.totalorder %v9501_v47, 1 }
 0x2f0   : > { %v1536_v15 = vsub.f32 %v1520_v53, %v9439_v49  ;;  %v9544_v21 = vunpack.c.h.bf16 %v9521_v29  ;;  %v2435_v41 = vadd.f32 %v2419_v9, %v2323_v13  ;;  %vm2627_vm7 = vcmp.eq.s32.totalorder %v9435_v32, 5 }
 0x2f1   : > { %v5885_v11 = vpop.eup %5884  ;;  %v2002_v61 = vsub.f32 %v9450_v33, %v9518_v18  ;;  %v2114_v12 = vsub.f32 %v9453_v27, %v9518_v18  ;;  %v2226_v34 = vsub.f32 %v9468_v39, %v9518_v18  ;;  %v2338_v49 = vsub.f32 %v9477_v3, %v9518_v18 }
 0x2f2   : > { %v5887_v60 = vpop.eup %5886  ;;  %v1583_v40 = vsel %vm1537_vm5, %v1536_v15, 0.0  ;;  %v2450_v30 = vsub.f32 %v9488_v43, %v9518_v18  ;;  %v2562_v22 = vsub.f32 %v9493_v7, %v9518_v18  ;;  %v9556_v38 = vunpack.c.h.bf16 %v9547_v17 }
 0x2f3   : > { %v5889_v42 = vpop.eup %5888  ;;  %1584 = vadd.xlane.f32.xlu1 %v1583_v40  ;;  %v2163_v57 = vadd.f32 %v5887_v60, %v5885_v11  ;;  %v2032_v35 = vmul.f32 1.442695, %v2002_v61  ;;  %v2144_v26 = vmul.f32 1.442695, %v2114_v12  ;;  %v2256_v56 = vmul.f32 1.442695, %v2226_v34 }
 0x2f4   : > { %v5891_v16 = vpop.eup %5890  ;;  %v2368_v5 = vmul.f32 1.442695, %v2338_v49  ;;  %v3093_v25 = vmax.f32 %v9526_v23, %v9529_v8  ;;  %v2082_v36 = vsel %vm2066_vm4, %v9450_v33, 0.0  ;;  %v2194_v51 = vsel %vm2178_vm6, %v9453_v27, 0.0 }
 0x2f5   : > { %v2275_v31 = vadd.f32 %v5889_v42, %v2163_v57  ;;  %5898 = vpow2.f32 %v2032_v35  ;;  %v5893_v4 = vpop.eup %5892  ;;  %v2480_v46 = vmul.f32 1.442695, %v2450_v30  ;;  %v9570_v28 = vunpack.c.h.bf16 %v9553_v10 }
 0x2f6   : > { %5900 = vpow2.f32 %v2144_v26  ;;  %v3109_v19 = vmax.f32 %v3093_v25, %v9544_v21  ;;  %v2547_v6 = vadd.f32 %v2531_v58, %v2435_v41  ;;  %vm2290_vm8 = vcmp.eq.s32.totalorder %v9501_v47, 2 }
 0x2f7   : > { %v2387_v55 = vadd.f32 %v5891_v16, %v2275_v31  ;;  %5902 = vpow2.f32 %v2256_v56  ;;  %v5895_v59 = vpop.eup %5894  ;;  %v2592_v33 = vmul.f32 1.442695, %v2562_v22  ;;  %v2643_v27 = vsel %vm2627_vm7, %v9426_v37, 0.0  ;;  %v9617_v56 = vpop.xlane.xlu1 %1545 }
 0x2f8   : > { %5904 = vpow2.f32 %v2368_v5  ;;  %v9578_v2 = vunpack.c.h.bf16 %v9567_v24  ;;  %v3125_v63 = vmax.f32 %v3109_v19, %v9556_v38  ;;  %v2210_v45 = vadd.f32 %v2194_v51, %v2082_v36  ;;  %v9619_v16 = vpop.xlane.xlu0 %1539 }
 0x2f9   : > { %v5897_v1 = vpop.eup %5896  ;;  %v2499_v0 = vadd.f32 %v5893_v4, %v2387_v55  ;;  %vm2402_vm9 = vcmp.eq.s32.totalorder %v9501_v47, 3  ;;  %5906 = vpow2.f32 %v2480_v46  ;;  %v2306_v48 = vsel %vm2290_vm8, %v9468_v39, 0.0 }
 0x2fa   : > { %v1502_v14 = vmul.f32 0.6931472, %v5897_v1  ;;  %v3141_v53 = vmax.f32 %v3125_v63, %v9570_v28  ;;  %v9585_v13 = vadd.f32 %v2643_v27, %v2547_v6  ;;  %5908 = vpow2.f32 %v2592_v33 }
 0x2fb   : > { %v2611_v50 = vadd.f32 %v5895_v59, %v2499_v0  ;;  %v2418_v37 = vsel %vm2402_vm9, %v9477_v3, 0.0  ;;  %vm2514_vm10 = vcmp.eq.s32.totalorder %v9501_v47, 4  ;;  %v2322_v15 = vadd.f32 %v2306_v48, %v2210_v45  ;;  %v9643_v27 = vpop.xlane.xlu1 %1548  ;;  %v9658_v48 = vld [vmem:[%s6543_s17 + $0x370] sm:$0xff]  }
 0x2fc   : > { %v1519_v9 = vadd.f32 %v1502_v14, %v9368_v20  ;;  %v9590_v32 = vmax.f32 %v3141_v53, %v9578_v2  ;;  %v9594_v39 = vunpack.c.l.bf16 %v9505_v44  ;;  %v9597_v20 = vunpack.c.l.bf16 %v9508_v62  ;;  %v9610_v62 = vld [vmem:[%s6562_s12 + $0x118] sm:$0xff]  ;;  %v9645_v63 = vpop.xlane.xlu0 %1542  ;;  %v9661_v53 = vld [vmem:[%s6543_s17 + $0x388] sm:$0xff]  }
 0x2fd   : > { %5910 = vlog2.f32 %v2611_v50  ;;  %v2530_v49 = vsel %vm2514_vm10, %v9488_v43, 0.0  ;;  %v9615_v40 = vunpack.c.l.bf16 %v9521_v29  ;;  %v2434_v43 = vadd.f32 %v2418_v37, %v2322_v15  ;;  %v9674_v15 = vld [vmem:[%s6543_s17 + $0x3a0] sm:$0xff]  }
 0x2fe   : > { %v1535_v58 = vsub.f32 %v1519_v9, %v9511_v52  ;;  %v3173_v61 = vsub.f32 %v9526_v23, %v9590_v32  ;;  %v3285_v3 = vsub.f32 %v9529_v8, %v9590_v32  ;;  %v3397_v12 = vsub.f32 %v9544_v21, %v9590_v32 }
 0x2ff   : > { %v5899_v11 = vpop.eup %5898  ;;  %v3509_v52 = vsub.f32 %v9556_v38, %v9590_v32  ;;  %v3621_v60 = vsub.f32 %v9570_v28, %v9590_v32  ;;  %vm2626_vm11 = vcmp.eq.s32.totalorder %v9501_v47, 5  ;;  %v3733_v22 = vsub.f32 %v9578_v2, %v9590_v32 }
 0x300   : > { %v5901_v34 = vpop.eup %5900  ;;  %v1580_v44 = vsel %vm1537_vm5, %v1535_v58, 0.0  ;;  %v3200_v57 = vmul.f32 1.442695, %v3173_v61  ;;  %v3312_v35 = vmul.f32 1.442695, %v3285_v3  ;;  %v9625_v31 = vunpack.c.l.bf16 %v9547_v17 }
 0x301   : > { %v5903_v30 = vpop.eup %5902  ;;  %1581 = vadd.xlane.f32.xlu0 %v1580_v44  ;;  %v2162_v42 = vadd.f32 %v5901_v34, %v5899_v11  ;;  %v3424_v26 = vmul.f32 1.442695, %v3397_v12  ;;  %v3536_v5 = vmul.f32 1.442695, %v3509_v52  ;;  %v3092_v25 = vmax.f32 %v9594_v39, %v9597_v20  ;;  %v9692_v34 = vpop.xlane.xlu1 %2728 }
 0x302   : > { %v5905_v41 = vpop.eup %5904  ;;  %5912 = vpow2.f32 %v3200_v57  ;;  %vm3237_vm12 = vcmp.eq.s32.totalorder %v9610_v62, 0  ;;  %vm3349_vm13 = vcmp.eq.s32.totalorder %v9610_v62, 1  ;;  %v3648_v36 = vmul.f32 1.442695, %v3621_v60  ;;  %v9694_v44 = vpop.xlane.xlu0 %2725  ;;  %v9704_v57 = vld [vmem:[%s6543_s17 + $0x3b8] sm:$0xff]  }
 0x303   : > { %v2274_v29 = vadd.f32 %v5903_v30, %v2162_v42  ;;  %v5907_v4 = vpop.eup %5906  ;;  %5914 = vpow2.f32 %v3312_v35  ;;  %v9632_v46 = vunpack.c.l.bf16 %v9553_v10  ;;  %v3108_v55 = vmax.f32 %v3092_v25, %v9615_v40 }
 0x304   : > { %5916 = vpow2.f32 %v3424_v26  ;;  %v5909_v19 = vpop.eup %5908  ;;  %v2546_v17 = vadd.f32 %v2530_v49, %v2434_v43  ;;  %v2642_v59 = vsel %vm2626_vm11, %v9493_v7, 0.0  ;;  %v3760_v6 = vmul.f32 1.442695, %v3733_v22 }
 0x305   : > { %v2386_v51 = vadd.f32 %v5905_v41, %v2274_v29  ;;  %5918 = vpow2.f32 %v3536_v5  ;;  %vm3461_vm14 = vcmp.eq.s32.totalorder %v9610_v62, 2  ;;  %v9640_v10 = vunpack.c.l.bf16 %v9567_v24  ;;  %v9654_v24 = vld [vmem:[%s6562_s12 + $0x110] sm:$0xff] }
 0x306   : > { %v3124_v0 = vmax.f32 %v3108_v55, %v9625_v31  ;;  %v3253_v7 = vsel %vm3237_vm12, %v9526_v23, 0.0  ;;  %v3365_v14 = vsel %vm3349_vm13, %v9529_v8, 0.0  ;;  %5920 = vpow2.f32 %v3648_v36  ;;  %v9713_v36 = vld [vmem:[%s6543_s17 + $0x3d0] sm:$0xff]  }
 0x307   : > { %v5911_v33 = vpop.eup %5910  ;;  %v2498_v1 = vadd.f32 %v5907_v4, %v2386_v51  ;;  %v9664_v37 = vadd.f32 %v2642_v59, %v2546_v17  ;;  %v3477_v23 = vsel %vm3461_vm14, %v9544_v21, 0.0  ;;  %5922 = vpow2.f32 %v3760_v6 }
 0x308   : > { %v2691_v47 = vmul.f32 0.6931472, %v5911_v33  ;;  %v3140_v50 = vmax.f32 %v3124_v0, %v9632_v46  ;;  %v3381_v8 = vadd.f32 %v3365_v14, %v3253_v7  ;;  %vm3573_vm15 = vcmp.eq.s32.totalorder %v9610_v62, 3  ;;  %v9727_v33 = vld [vmem:[%s6543_s17 + $0x3e8] sm:$0xff]   ;;  %v9733_v7 = vpop.xlane.xlu1 %2734  ;;  %v9735_v14 = vpop.xlane.xlu0 %2731 }
 0x309   : > { %v2610_v45 = vadd.f32 %v5909_v19, %v2498_v1  ;;  %vm3236_vm0 = vcmp.eq.s32.totalorder %v9654_v24, 0  ;;  %v9682_v21 = vunpack.c.h.bf16 %v9661_v53  ;;  %vm3348_vm1 = vcmp.eq.s32.totalorder %v9654_v24, 1 }
 0x30a   : > { %v2707_v9 = vadd.f32 %v2691_v47, %v9446_v54  ;;  %v9671_v58 = vmax.f32 %v3140_v50, %v9640_v10  ;;  %v9679_v54 = vunpack.c.h.bf16 %v9658_v48  ;;  %v9701_v42 = vunpack.c.h.bf16 %v9674_v15 }
 0x30b   : > { %5924 = vlog2.f32 %v2610_v45  ;;  %v3589_v29 = vsel %vm3573_vm15, %v9556_v38, 0.0  ;;  %vm3685_vm2 = vcmp.eq.s32.totalorder %v9610_v62, 4  ;;  %v9716_v55 = vunpack.c.h.bf16 %v9704_v57 }
 0x30c   : > { %v2723_v11 = vsub.f32 %v2707_v9, %v9585_v13  ;;  %v5913_v61 = vpop.eup %5912  ;;  %v3172_v3 = vsub.f32 %v9594_v39, %v9671_v58  ;;  %v3284_v12 = vsub.f32 %v9597_v20, %v9671_v58  ;;  %v3396_v52 = vsub.f32 %v9615_v40, %v9671_v58 }
 0x30d   : > { %v3508_v13 = vsub.f32 %v9625_v31, %v9671_v58  ;;  %v5915_v49 = vpop.eup %5914  ;;  %v3620_v30 = vsub.f32 %v9632_v46, %v9671_v58  ;;  %v3732_v4 = vsub.f32 %v9640_v10, %v9671_v58  ;;  %v3095_v19 = vmax.f32 %v9679_v54, %v9682_v21 }
 0x30e   : > { %v2769_v60 = vsel %vm1537_vm5, %v2723_v11, 0.0  ;;  %v5917_v35 = vpop.eup %5916  ;;  %v3333_v26 = vadd.f32 %v5915_v49, %v5913_v61  ;;  %v3198_v41 = vmul.f32 1.442695, %v3172_v3  ;;  %v3310_v43 = vmul.f32 1.442695, %v3284_v12 }
 0x30f   : > { %2770 = vadd.xlane.f32.xlu1 %v2769_v60  ;;  %v3422_v5 = vmul.f32 1.442695, %v3396_v52  ;;  %v5919_v22 = vpop.eup %5918  ;;  %v3534_v25 = vmul.f32 1.442695, %v3508_v13  ;;  %v3252_v38 = vsel %vm3236_vm0, %v9594_v39, 0.0  ;;  %v3364_v59 = vsel %vm3348_vm1, %v9597_v20, 0.0 }
 0x310   : > { %v3445_v51 = vadd.f32 %v5917_v35, %v3333_v26  ;;  %5926 = vpow2.f32 %v3198_v41  ;;  %v5921_v17 = vpop.eup %5920  ;;  %v3646_v6 = vmul.f32 1.442695, %v3620_v30  ;;  %v9730_v0 = vunpack.c.h.bf16 %v9713_v36 }
 0x311   : > { %5928 = vpow2.f32 %v3310_v43  ;;  %v3111_v47 = vmax.f32 %v3095_v19, %v9701_v42  ;;  %v5923_v39 = vpop.eup %5922  ;;  %v3493_v45 = vadd.f32 %v3477_v23, %v3381_v8  ;;  %vm3460_vm3 = vcmp.eq.s32.totalorder %v9654_v24, 2 }
 0x312   : > { %v3557_v1 = vadd.f32 %v5919_v22, %v3445_v51  ;;  %5930 = vpow2.f32 %v3422_v5  ;;  %v3758_v20 = vmul.f32 1.442695, %v3732_v4  ;;  %vm3797_vm4 = vcmp.eq.s32.totalorder %v9610_v62, 5  ;;  %v9758_v62 = vpop.xlane.xlu0 %1551 }
 0x313   : > { %5932 = vpow2.f32 %v3534_v25  ;;  %v9740_v11 = vunpack.c.h.bf16 %v9727_v33  ;;  %v3127_v61 = vmax.f32 %v3111_v47, %v9716_v55  ;;  %v3380_v12 = vadd.f32 %v3364_v59, %v3252_v38 }
 0x314   : > { %v3669_v9 = vadd.f32 %v5921_v17, %v3557_v1  ;;  %vm3572_vm6 = vcmp.eq.s32.totalorder %v9654_v24, 3  ;;  %5934 = vpow2.f32 %v3646_v6  ;;  %v3701_v23 = vsel %vm3685_vm2, %v9570_v28, 0.0  ;;  %v9756_v28 = vpop.xlane.xlu1 %1554 }
 0x315   : > { %v5925_v50 = vpop.eup %5924  ;;  %v3476_v52 = vsel %vm3460_vm3, %v9615_v40, 0.0  ;;  %v3143_v13 = vmax.f32 %v3127_v61, %v9730_v0  ;;  %v3605_v60 = vadd.f32 %v3589_v29, %v3493_v45  ;;  %v3813_v30 = vsel %vm3797_vm4, %v9578_v2, 0.0 }
 0x316   : > { %v2689_v3 = vmul.f32 0.6931472, %v5925_v50  ;;  %v3781_v8 = vadd.f32 %v5923_v39, %v3669_v9  ;;  %5936 = vpow2.f32 %v3758_v20  ;;  %v3588_v35 = vsel %vm3572_vm6, %v9625_v31, 0.0  ;;  %v9793_v61 = vpop.xlane.xlu0 %2737 }
 0x317   : > { %vm3684_vm7 = vcmp.eq.s32.totalorder %v9654_v24, 4  ;;  %v9754_v26 = vmax.f32 %v3143_v13, %v9740_v11  ;;  %v3492_v41 = vadd.f32 %v3476_v52, %v3380_v12  ;;  %v9765_v2 = vunpack.c.l.bf16 %v9661_v53 }
 0x318   : > { %v2706_v49 = vadd.f32 %v2689_v3, %v9518_v18  ;;  %5938 = vlog2.f32 %v3781_v8  ;;  %v9762_v18 = vunpack.c.l.bf16 %v9658_v48  ;;  %v3717_v25 = vadd.f32 %v3701_v23, %v3605_v60  ;;  %v9791_v9 = vpop.xlane.xlu1 %2740  ;;  %v9797_v23 = vld [vmem:[%s6562_s12 + $0x148] sm:$0xff] }
 0x319   : > { %v3175_v31 = vsub.f32 %v9679_v54, %v9754_v26  ;;  %v3287_v5 = vsub.f32 %v9682_v21, %v9754_v26  ;;  %v3399_v22 = vsub.f32 %v9701_v42, %v9754_v26  ;;  %v3623_v53 = vsub.f32 %v9730_v0, %v9754_v26 }
 0x31a   : > { %v2722_v40 = vsub.f32 %v2706_v49, %v9664_v37  ;;  %v5927_v43 = vpop.eup %5926  ;;  %v3511_v37 = vsub.f32 %v9716_v55, %v9754_v26  ;;  %v9779_v4 = vunpack.c.l.bf16 %v9674_v15  ;;  %v3604_v1 = vadd.f32 %v3588_v35, %v3492_v41 }
 0x31b   : > { %v5929_v29 = vpop.eup %5928  ;;  %v3204_v17 = vmul.f32 1.442695, %v3175_v31  ;;  %v3316_v38 = vmul.f32 1.442695, %v3287_v5  ;;  %v3428_v59 = vmul.f32 1.442695, %v3399_v22  ;;  %v3735_v45 = vsub.f32 %v9740_v11, %v9754_v26  ;;  %v9820_v22 = vpop.xlane.xlu0 %1557 }
 0x31c   : > { %v2766_v48 = vsel %vm1537_vm5, %v2722_v40, 0.0  ;;  %v5931_v51 = vpop.eup %5930  ;;  %v3332_v19 = vadd.f32 %v5929_v29, %v5927_v43  ;;  %v3700_v47 = vsel %vm3684_vm7, %v9632_v46, 0.0  ;;  %v3540_v39 = vmul.f32 1.442695, %v3511_v37  ;;  %v9813_v5 = vld [vmem:[%s6543_s17 + $0x400] sm:$0xff]  }
 0x31d   : > { %2767 = vadd.xlane.f32.xlu0 %v2766_v48  ;;  %v5933_v6 = vpop.eup %5932  ;;  %5940 = vpow2.f32 %v3204_v17  ;;  %v9787_v15 = vunpack.c.l.bf16 %v9704_v57  ;;  %v3094_v50 = vmax.f32 %v9762_v18, %v9765_v2  ;;  %vm3796_vm8 = vcmp.eq.s32.totalorder %v9654_v24, 5 }
 0x31e   : > { %v3444_v20 = vadd.f32 %v5931_v51, %v3332_v19  ;;  %v5935_v3 = vpop.eup %5934  ;;  %5942 = vpow2.f32 %v3316_v38  ;;  %v3652_v46 = vmul.f32 1.442695, %v3623_v53  ;;  %v9800_v8 = vunpack.c.l.bf16 %v9713_v36  ;;  %v9831_v51 = vld [vmem:[%s6543_s17 + $0x430] sm:$0xff]  }
 0x31f   : > { %5944 = vpow2.f32 %v3428_v59  ;;  %v3110_v57 = vmax.f32 %v3094_v50, %v9779_v4  ;;  %v3829_v13 = vadd.f32 %v3813_v30, %v3717_v25  ;;  %v3716_v49 = vadd.f32 %v3700_v47, %v3604_v1  ;;  %v9859_v50 = vld [vmem:[%s6543_s17 + $0x448] sm:$0xff]  }
 0x320   : > { %v3556_v12 = vadd.f32 %v5933_v6, %v3444_v20  ;;  %v5937_v52 = vpop.eup %5936  ;;  %5946 = vpow2.f32 %v3540_v39  ;;  %v3764_v60 = vmul.f32 1.442695, %v3735_v45  ;;  %v3812_v40 = vsel %vm3796_vm8, %v9640_v10, 0.0  ;;  %v9816_v10 = vld [vmem:[%s6543_s17 + $0x418] sm:$0xff]   ;;  %v9841_v6 = vld [vmem:[%s6562_s12 + $0x140] sm:$0xff] }
 0x321   : > { %v9805_v41 = vunpack.c.l.bf16 %v9727_v33  ;;  %v3126_v43 = vmax.f32 %v3110_v57, %v9787_v15  ;;  %vm3239_vm9 = vcmp.eq.s32.totalorder %v9797_v23, 0  ;;  %vm3351_vm10 = vcmp.eq.s32.totalorder %v9797_v23, 1  ;;  %v9818_v33 = vpop.xlane.xlu1 %1560 }
 0x322   : > { %v5939_v35 = vpop.eup %5938  ;;  %v3668_v24 = vadd.f32 %v5935_v3, %v3556_v12  ;;  %5948 = vpow2.f32 %v3652_v46  ;;  %vm3463_vm11 = vcmp.eq.s32.totalorder %v9797_v23, 2  ;;  %v9823_v29 = vadd.f32 %v3812_v40, %v3716_v49  ;;  %v9863_v49 = vpop.xlane.xlu0 %2743 }
 0x323   : > { %v3857_v36 = vmul.f32 0.6931472, %v5939_v35  ;;  %v3142_v31 = vmax.f32 %v3126_v43, %v9800_v8  ;;  %5950 = vpow2.f32 %v3764_v60  ;;  %v3255_v48 = vsel %vm3239_vm9, %v9679_v54, 0.0  ;;  %v9869_v43 = vld [vmem:[%s6543_s17 + $0x460] sm:$0xff]  }
 0x324   : > { %v3780_v30 = vadd.f32 %v5937_v52, %v3668_v24  ;;  %v3367_v25 = vsel %vm3351_vm10, %v9682_v21, 0.0  ;;  %v3479_v17 = vsel %vm3463_vm11, %v9701_v42, 0.0  ;;  %v9835_v38 = vunpack.c.h.bf16 %v9813_v5 }
 0x325   : > { %v3877_v37 = vadd.f32 %v3857_v36, %v9590_v32  ;;  %v9828_v53 = vmax.f32 %v3142_v31, %v9805_v41  ;;  %v9838_v32 = vunpack.c.h.bf16 %v9816_v10  ;;  %vm3575_vm12 = vcmp.eq.s32.totalorder %v9797_v23, 3 }
 0x326   : > { %5952 = vlog2.f32 %v3780_v30  ;;  %v9856_v20 = vunpack.c.h.bf16 %v9831_v51  ;;  %v3383_v35 = vadd.f32 %v3367_v25, %v3255_v48  ;;  %vm3238_vm13 = vcmp.eq.s32.totalorder %v9841_v6, 0  ;;  %v9879_v25 = vld [vmem:[%s6543_s17 + $0x478] sm:$0xff]   ;;  %s10204_s17 = scalar_lea.hbm %s10255_s7, %s4496_s8 }
 0x327   : > { %v3893_v19 = vsub.f32 %v3877_v37, %v3829_v13  ;;  %v5941_v59 = vpop.eup %5940  ;;  %v3174_v54 = vsub.f32 %v9762_v18, %v9828_v53  ;;  %v3286_v21 = vsub.f32 %v9765_v2, %v9828_v53  ;;  %v3398_v1 = vsub.f32 %v9779_v4, %v9828_v53  ;;  %v9861_v13 = vpop.xlane.xlu1 %2746 }
 0x328   : > { %v3510_v42 = vsub.f32 %v9787_v15, %v9828_v53  ;;  %v5943_v47 = vpop.eup %5942  ;;  %v3622_v45 = vsub.f32 %v9800_v8, %v9828_v53  ;;  %v3734_v40 = vsub.f32 %v9805_v41, %v9828_v53  ;;  %v9872_v30 = vunpack.c.h.bf16 %v9859_v50 }
 0x329   : > { %v3931_v39 = vsel %vm1537_vm5, %v3893_v19, 0.0  ;;  %v5945_v3 = vpop.eup %5944  ;;  %v3335_v46 = vadd.f32 %v5943_v47, %v5941_v59  ;;  %v3202_v12 = vmul.f32 1.442695, %v3174_v54  ;;  %v3314_v57 = vmul.f32 1.442695, %v3286_v21 }
 0x32a   : > { %3932 = vadd.xlane.f32.xlu1 %v3931_v39  ;;  %v3426_v52 = vmul.f32 1.442695, %v3398_v1  ;;  %v5947_v60 = vpop.eup %5946  ;;  %v3538_v24 = vmul.f32 1.442695, %v3510_v42  ;;  %v3097_v31 = vmax.f32 %v9835_v38, %v9838_v32  ;;  %vm3687_vm14 = vcmp.eq.s32.totalorder %v9797_v23, 4 }
 0x32b   : > { %v3447_v36 = vadd.f32 %v5945_v3, %v3335_v46  ;;  %5954 = vpow2.f32 %v3202_v12  ;;  %vm3350_vm15 = vcmp.eq.s32.totalorder %v9841_v6, 1  ;;  %v3650_v48 = vmul.f32 1.442695, %v3622_v45 }
 0x32c   : > { %v5949_v37 = vpop.eup %5948  ;;  %5956 = vpow2.f32 %v3314_v57  ;;  %v9882_v59 = vunpack.c.h.bf16 %v9869_v43  ;;  %v3113_v54 = vmax.f32 %v3097_v31, %v9856_v20  ;;  %v3495_v1 = vadd.f32 %v3479_v17, %v3383_v35  ;;  %v9893_v57 = vpop.xlane.xlu1 %3902 }
 0x32d   : > { %v3559_v19 = vadd.f32 %v5947_v60, %v3447_v36  ;;  %5958 = vpow2.f32 %v3426_v52  ;;  %v5951_v21 = vpop.eup %5950  ;;  %v3254_v42 = vsel %vm3238_vm13, %v9762_v18, 0.0  ;;  %v3762_v47 = vmul.f32 1.442695, %v3734_v40  ;;  %v9895_v52 = vpop.xlane.xlu0 %3899 }
 0x32e   : > { %5960 = vpow2.f32 %v3538_v24  ;;  %v3366_v45 = vsel %vm3350_vm15, %v9765_v2, 0.0  ;;  %v9890_v46 = vunpack.c.h.bf16 %v9879_v25  ;;  %v3129_v12 = vmax.f32 %v3113_v54, %v9872_v30 }
 0x32f   : > { %v3671_v3 = vadd.f32 %v5949_v37, %v3559_v19  ;;  %v3591_v18 = vsel %vm3575_vm12, %v9716_v55, 0.0  ;;  %vm3462_vm0 = vcmp.eq.s32.totalorder %v9841_v6, 2  ;;  %5962 = vpow2.f32 %v3650_v48 }
 0x330   : > { %v5953_v39 = vpop.eup %5952  ;;  %v3703_v2 = vsel %vm3687_vm14, %v9730_v0, 0.0  ;;  %vm3574_vm1 = vcmp.eq.s32.totalorder %v9841_v6, 3  ;;  %v3145_v35 = vmax.f32 %v3129_v12, %v9882_v59  ;;  %vm3799_vm2 = vcmp.eq.s32.totalorder %v9797_v23, 5 }
 0x331   : > { %v3855_v17 = vmul.f32 0.6931472, %v5953_v39  ;;  %v3783_v60 = vadd.f32 %v5951_v21, %v3671_v3  ;;  %v3382_v40 = vadd.f32 %v3366_v45, %v3254_v42  ;;  %5964 = vpow2.f32 %v3762_v47 }
 0x332   : > { %v3607_v36 = vadd.f32 %v3591_v18, %v3495_v1  ;;  %v3478_v55 = vsel %vm3462_vm0, %v9779_v4, 0.0  ;;  %v9910_v31 = vmax.f32 %v3145_v35, %v9890_v46  ;;  %v3590_v37 = vsel %vm3574_vm1, %v9787_v15, 0.0  ;;  %v9928_v15 = vpop.xlane.xlu1 %3908 }
 0x333   : > { %v3876_v24 = vadd.f32 %v3855_v17, %v9671_v58  ;;  %5966 = vlog2.f32 %v3783_v60  ;;  %v9915_v48 = vunpack.c.l.bf16 %v9813_v5  ;;  %v9918_v58 = vunpack.c.l.bf16 %v9816_v10  ;;  %v9930_v5 = vpop.xlane.xlu0 %3905 }
 0x334   : > { %v3177_v54 = vsub.f32 %v9835_v38, %v9910_v31  ;;  %v3289_v4 = vsub.f32 %v9838_v32, %v9910_v31  ;;  %v3401_v21 = vsub.f32 %v9856_v20, %v9910_v31  ;;  %v3494_v42 = vadd.f32 %v3478_v55, %v3382_v40 }
 0x335   : > { %v3892_v0 = vsub.f32 %v3876_v24, %v9823_v29  ;;  %v5955_v19 = vpop.eup %5954  ;;  %v3513_v29 = vsub.f32 %v9872_v30, %v9910_v31  ;;  %v3625_v47 = vsub.f32 %v9882_v59, %v9910_v31  ;;  %v9936_v39 = vunpack.c.l.bf16 %v9831_v51 }
 0x336   : > { %v5957_v1 = vpop.eup %5956  ;;  %v3208_v12 = vmul.f32 1.442695, %v3177_v54  ;;  %v3320_v17 = vmul.f32 1.442695, %v3289_v4  ;;  %v3432_v18 = vmul.f32 1.442695, %v3401_v21  ;;  %v3719_v35 = vadd.f32 %v3703_v2, %v3607_v36 }
 0x337   : > { %v3928_v10 = vsel %vm1537_vm5, %v3892_v0, 0.0  ;;  %v5959_v3 = vpop.eup %5958  ;;  %v3334_v45 = vadd.f32 %v5957_v1, %v5955_v19  ;;  %vm3686_vm3 = vcmp.eq.s32.totalorder %v9841_v6, 4  ;;  %v3544_v24 = vmul.f32 1.442695, %v3513_v29  ;;  %v9950_v21 = vld [vmem:[%s6562_s12 + $0x178] sm:$0xff]  ;;  %v9956_v1 = vpop.xlane.xlu1 %1566 }
 0x338   : > { %3929 = vadd.xlane.f32.xlu0 %v3928_v10  ;;  %v5961_v60 = vpop.eup %5960  ;;  %v3737_v40 = vsub.f32 %v9890_v46, %v9910_v31  ;;  %5968 = vpow2.f32 %v3208_v12  ;;  %v9942_v51 = vunpack.c.l.bf16 %v9859_v50  ;;  %v3096_v0 = vmax.f32 %v9915_v48, %v9918_v58  ;;  %v9958_v10 = vpop.xlane.xlu0 %1563 }
 0x339   : > { %v3446_v55 = vadd.f32 %v5959_v3, %v3334_v45  ;;  %v5963_v19 = vpop.eup %5962  ;;  %v3815_v54 = vsel %vm3799_vm2, %v9740_v11, 0.0  ;;  %v3606_v2 = vadd.f32 %v3590_v37, %v3494_v42  ;;  %5970 = vpow2.f32 %v3320_v17  ;;  %v5324_v17 = vld [vmem:[#allocation5] sm:$0xff]  }
 0x33a   : > { %v3656_v36 = vmul.f32 1.442695, %v3625_v47  ;;  %5972 = vpow2.f32 %v3432_v18  ;;  %v9953_v29 = vunpack.c.l.bf16 %v9869_v43  ;;  %v3112_v50 = vmax.f32 %v3096_v0, %v9936_v39 }
 0x33b   : > { %v3558_v4 = vadd.f32 %v5961_v60, %v3446_v55  ;;  %v5965_v3 = vpop.eup %5964  ;;  %v3702_v11 = vsel %vm3686_vm3, %v9800_v8, 0.0  ;;  %vm3798_vm4 = vcmp.eq.s32.totalorder %v9841_v6, 5  ;;  %5974 = vpow2.f32 %v3544_v24 }
 0x33c   : > { %v3768_v23 = vmul.f32 1.442695, %v3737_v40  ;;  %v3831_v42 = vadd.f32 %v3815_v54, %v3719_v35  ;;  %v9965_v43 = vunpack.c.l.bf16 %v9879_v25  ;;  %v3128_v45 = vmax.f32 %v3112_v50, %v9942_v51  ;;  %v9980_v54 = vpop.xlane.xlu0 %2749 }
 0x33d   : > { %v5967_v37 = vpop.eup %5966  ;;  %v3670_v47 = vadd.f32 %v5963_v19, %v3558_v4  ;;  %vm3241_vm6 = vcmp.eq.s32.totalorder %v9950_v21, 0  ;;  %vm3353_vm7 = vcmp.eq.s32.totalorder %v9950_v21, 1  ;;  %5976 = vpow2.f32 %v3656_v36  ;;  %v9978_v19 = vpop.xlane.xlu1 %2752  ;;  %10293 = vst [vmem:[#allocation20_spill] sm:$0xff] %v9980_v54  ;;  %v5325_v36 = vld [vmem:[#allocation5 + $0x8] sm:$0xff]  }
 0x33e   : > { %v3861_v12 = vmul.f32 0.6931472, %v5967_v37  ;;  %v3718_v8 = vadd.f32 %v3702_v11, %v3606_v2  ;;  %v3814_v6 = vsel %vm3798_vm4, %v9805_v41, 0.0  ;;  %v3144_v60 = vmax.f32 %v3128_v45, %v9953_v29 }
 0x33f   : > { %v3782_v18 = vadd.f32 %v5965_v3, %v3670_v47  ;;  %5978 = vpow2.f32 %v3768_v23  ;;  %v1602_v25 = vlaneseq  ;;  %v3257_v24 = vsel %vm3241_vm6, %v9835_v38, 0.0 }
 0x340   : > { %v3879_v35 = vadd.f32 %v3861_v12, %v9754_v26  ;;  %v3369_v40 = vsel %vm3353_vm7, %v9838_v32, 0.0  ;;  %v9976_v55 = vmax.f32 %v3144_v60, %v9965_v43  ;;  %v6231_v0 = vmov 0.0  }
 0x341   : > { %5980 = vlog2.f32 %v3782_v18  ;;  %5221 = vmatprep.subr.bf16.mxu0 %v6231_v0  ;;  %vm3465_vm8 = vcmp.eq.s32.totalorder %v9950_v21, 2  ;;  %v9983_v26 = vand.u32 127, %v1602_v25  ;;  %v1605_v2 = vshrl.u32 %v1602_v25, 7 }
 0x342   : > { %v3895_v41 = vsub.f32 %v3879_v35, %v3831_v42  ;;  %5222 = vmatpush3.bf16.msra.mxu0 %v5324_v17  ;;  %v5969_v38 = vpop.eup %5968  ;;  %v3176_v32 = vsub.f32 %v9915_v48, %v9976_v55  ;;  %v3288_v4 = vsub.f32 %v9918_v58, %v9976_v55  ;;  %v3400_v50 = vsub.f32 %v9936_v39, %v9976_v55 }
 0x343   : > { %v3512_v3 = vsub.f32 %v9942_v51, %v9976_v55  ;;  %5223 = vmatprep.subr.bf16.mxu0 %v6231_v0  ;;  %v5971_v11 = vpop.eup %5970  ;;  %v3385_v37 = vadd.f32 %v3369_v40, %v3257_v24  ;;  %v3624_v42 = vsub.f32 %v9953_v29, %v9976_v55  ;;  %v3830_v35 = vadd.f32 %v3814_v6, %v3718_v8  ;;  %v10008_v8 = vpop.xlane.xlu0 %3911 }
 0x344   : > { %v3937_v23 = vsel %vm1537_vm5, %v3895_v41, 0.0  ;;  %v5973_v47 = vpop.eup %5972  ;;  %v3337_v45 = vadd.f32 %v5971_v11, %v5969_v38  ;;  %v3206_v12 = vmul.f32 1.442695, %v3176_v32  ;;  %v3318_v17 = vmul.f32 1.442695, %v3288_v4  ;;  %v10006_v4 = vpop.xlane.xlu1 %3914 }
 0x345   : > { %3938 = vadd.xlane.f32.xlu1 %v3937_v23  ;;  %v3430_v18 = vmul.f32 1.442695, %v3400_v50  ;;  %v5975_v60 = vpop.eup %5974  ;;  %v3481_v25 = vsel %vm3465_vm8, %v9856_v20, 0.0  ;;  %v3542_v54 = vmul.f32 1.442695, %v3512_v3  ;;  %v3736_v24 = vsub.f32 %v9965_v43, %v9976_v55 }
 0x346   : > { %5224 = vmatpush3.bf16.msra.mxu0 %v5325_v36  ;;  %v3449_v40 = vadd.f32 %v5973_v47, %v3337_v45  ;;  %5982 = vpow2.f32 %v3206_v12  ;;  %v10002_v41 = vsub.s32 %v9983_v26, %v1605_v2  ;;  %v1608_v38 = vadd.s32 4294967288, %v9983_v26  ;;  %v437_v32 = vld [vmem:[%s6531_s19] sm:$0xf]  ;;  %s425_s19 = scalar_lea.vmem [#allocation11], %s4264_s21 }
 0x347   : > { %v5977_v6 = vpop.eup %5976  ;;  %5984 = vpow2.f32 %v3318_v17  ;;  %v3654_v20 = vmul.f32 1.442695, %v3624_v42  ;;  %vm461_vm9 = vcmask 261120   ;;  %v3497_v50 = vadd.f32 %v3481_v25, %v3385_v37  ;;  %s4091_s15 = sshll.u32 %s425_s19, 4  ;;  %s10206_s15 = int_to_ptr.vmem [resolvable:$true] %s4091_s15 }
 0x348   : > { %v3561_v3 = vadd.f32 %v5975_v60, %v3449_v40  ;;  %vm3577_vm10 = vcmp.eq.s32.totalorder %v9950_v21, 3  ;;  %5986 = vpow2.f32 %v3430_v18  ;;  %vm6232_vm11 = vmmov 0   ;;  %v10025_v17 = vpop.xlane.xlu1 %1572  ;;  %s6146_s28 = scalar_lea.vmem %s10206_s15, 128 }
 0x349   : > { %5225 = vmatprep.mubr.msk.bf16.mxu0 %vm6232_vm11, %v6231_v0  ;;  %v5979_v36 = vpop.eup %5978  ;;  %5988 = vpow2.f32 %v3542_v54  ;;  %v3766_v11 = vmul.f32 1.442695, %v3736_v24  ;;  %v10011_v23 = vsub.s32 %v1608_v38, %v1605_v2  ;;  %vm1613_vm12 = vcmask 130112   ;;  %p6147_p9 = scmp.ne.s32.totalorder %s10206_s15, %s6146_s28 }
 0x34a   : > { %5226 = vmatmul.mubr.msk.bf16.vlgmr.msra.gmra.mrb[0].mxu0 %vm461_vm9, %v437_v32  ;;  %v3673_v45 = vadd.f32 %v5977_v6, %v3561_v3  ;;  %v1618_v42 = vrot.slane %v9617_v56, %v10002_v41  ;;  %v1607_v37 = vrot.slane %v9619_v16, %v10002_v41  ;;  %vm1678_vm13 = vcmask 1041409   ;;  %v10027_v16 = vpop.xlane.xlu0 %1569 }
 0x34b   : > { %v5981_v47 = vpop.eup %5980  ;;  %5990 = vpow2.f32 %v3654_v20  ;;  %v1622_v0 = vrot.slane %v9643_v27, %v10011_v23  ;;  %v1612_v54 = vrot.slane %v9645_v63, %v10011_v23  ;;  %v3593_v2 = vsel %vm3577_vm10, %v9872_v30, 0.0  ;;  %v10033_v63 = vld [vmem:[%s6562_s12 + $0x170] sm:$0xff]  ;;  %p6148_p8 = pnand %p6147_p9, %p10295_p10  ;;  %s6236_s12 = smov [#allocation11]  }
 0x34c   : > { %v3859_v12 = vmul.f32 0.6931472, %v5981_v47  ;;  %vm3689_vm14 = vcmp.eq.s32.totalorder %v9950_v21, 4  ;;  %v3785_v56 = vadd.f32 %v5979_v36, %v3673_v45  ;;  %5992 = vpow2.f32 %v3766_v11  ;;  %s6150_s23 = sshll.u32 %s6236_s12, 4  ;;  %s6151_s23 = int_to_ptr.vmem [resolvable:$false] %s6150_s23 }
 0x34d   : > { %v1623_v60 = vsel %vm1613_vm12, %v1622_v0, %v1618_v42  ;;  %v1614_v27 = vsel %vm1613_vm12, %v1612_v54, %v1607_v37  ;;  %v3609_v24 = vadd.f32 %v3593_v2, %v3497_v50  ;;  %v3705_v38 = vsel %vm3689_vm14, %v9882_v59, 0.0  ;;  %p6149_p4 = pneg %p6148_p8  ;;  %s6152_s16 = scalar_lea.vmem %s6151_s23, 256 }
 0x34e   : > { %v3878_v18 = vadd.f32 %v3859_v12, %v9828_v53  ;;  %5994 = vlog2.f32 %v3785_v56  ;;  %v10036_v25 = vsel %vm1678_vm13, %v1623_v60, %v1614_v27  ;;  %vm3240_vm15 = vcmp.eq.s32.totalorder %v10033_v63, 0  ;;  %v10047_v50 = vpop.xlane.xlu0 %2755  ;;  %p6153_p6 = scmp.lt.s32.totalorder %s10206_s15, %s6151_s23  ;;  %p6154_p1 = scmp.lt.s32.totalorder %s6152_s16, %s6146_s28 }
 0x34f   : > { %vm3352_vm0 = vcmp.eq.s32.totalorder %v10033_v63, 1  ;;  %vm3801_vm1 = vcmp.eq.s32.totalorder %v9950_v21, 5  ;;  %v3969_v3 = vrot.slane %v9893_v57, %v10011_v23  ;;  %v3721_v36 = vadd.f32 %v3705_v38, %v3609_v24 }
 0x350   : > { %v3894_v30 = vsub.f32 %v3878_v18, %v3830_v35  ;;  %v5983_v40 = vpop.eup %5982  ;;  %v10045_v35 = vpop.xlane.xlu1 %2758  ;;  %v3965_v11 = vrot.slane %v9895_v52, %v10002_v41  ;;  %v3978_v47 = vrot.slane %v9928_v15, %v10011_v23  ;;  %v3256_v45 = vsel %vm3240_vm15, %v9915_v48, 0.0  ;;  %p6155_p5 = por %p6154_p1, %p6153_p6 }
 0x351   : > { %v5985_v32 = vpop.eup %5984  ;;  %v3368_v21 = vsel %vm3352_vm0, %v9918_v58, 0.0  ;;  %v3974_v57 = vrot.slane %v9930_v5, %v10002_v41  ;;  %v3817_v12 = vsel %vm3801_vm1, %v9890_v46, 0.0  ;;  %vm3464_vm2 = vcmp.eq.s32.totalorder %v10033_v63, 2 }
 0x352   : > { %v3934_v6 = vsel %vm1537_vm5, %v3894_v30, 0.0  ;;  %v5987_v53 = vpop.eup %5986  ;;  %v3336_v20 = vadd.f32 %v5985_v32, %v5983_v40  ;;  %v3970_v54 = vsel %vm1613_vm12, %v3969_v3, %v3965_v11  ;;  %v3987_v15 = vrot.slane %v10006_v4, %v10011_v23  ;;  %v3918_v30 = vpop.xlane.xlu0 %3917  ;;  %p6156_p3 = pnand %p6155_p5, %p6149_p4 }
 0x353   : > { %3935 = vadd.xlane.f32.xlu0 %v3934_v6  ;;  %v5989_v59 = vpop.eup %5988  ;;  %v3979_v52 = vsel %vm1613_vm12, %v3978_v47, %v3974_v57  ;;  %v3384_v2 = vadd.f32 %v3368_v21, %v3256_v45  ;;  %v3983_v5 = vrot.slane %v10008_v8, %v10002_v41  ;;  %v3833_v18 = vadd.f32 %v3817_v12, %v3721_v36 }
 0x354   : > { %v3448_v42 = vadd.f32 %v5987_v53, %v3336_v20  ;;  %v4034_v58 = vsel %vm1678_vm13, %v3979_v52, %v3970_v54  ;;  %v3480_v46 = vsel %vm3464_vm2, %v9936_v39, 0.0  ;;  %v3921_v27 = vpop.xlane.xlu1 %3920  ;;  %vm3576_vm3 = vcmp.eq.s32.totalorder %v10033_v63, 3 }
 0x355   : > { %v5991_v37 = vpop.eup %5990  ;;  %vm1680_vm4 = vcmask 1042434   ;;  %v3988_v4 = vsel %vm1613_vm12, %v3987_v15, %v3983_v5  ;;  %v3496_v6 = vadd.f32 %v3480_v46, %v3384_v2  ;;  %v3996_v8 = vrot.slane %v3921_v27, %v10011_v23 }
 0x356   : > { %v3560_v0 = vadd.f32 %v5989_v59, %v3448_v42  ;;  %v5993_v48 = vpop.eup %5992  ;;  %v4035_v38 = vsel %vm1680_vm4, %v3988_v4, %v4034_v58  ;;  %v3992_v53 = vrot.slane %v3918_v30, %v10002_v41  ;;  %v3592_v39 = vsel %vm3576_vm3, %v9942_v51, 0.0  ;;  %v1576_v51 = vpop.xlane.xlu0 %1575 }
 0x357   : > { %vm3688_vm6 = vcmp.eq.s32.totalorder %v10033_v63, 4  ;;  %vm1682_vm7 = vcmask 1043459   ;;  %v3608_v11 = vadd.f32 %v3592_v39, %v3496_v6  ;;  %vm3800_vm8 = vcmp.eq.s32.totalorder %v10033_v63, 5 }
 0x358   : > { %v5995_v56 = vpop.eup %5994  ;;  %v3672_v60 = vadd.f32 %v5991_v37, %v3560_v0  ;;  %v3997_v3 = vsel %vm1613_vm12, %v3996_v8, %v3992_v53  ;;  %v3704_v47 = vsel %vm3688_vm6, %v9953_v29, 0.0  ;;  %v3816_v21 = vsel %vm3800_vm8, %v9965_v43, 0.0 }
 0x359   : > { %v3865_v24 = vmul.f32 0.6931472, %v5995_v56  ;;  %v4036_v59 = vsel %vm1682_vm7, %v3997_v3, %v4035_v38  ;;  %v3720_v45 = vadd.f32 %v3704_v47, %v3608_v11  ;;  %vm1684_vm9 = vcmask 1044484  }
 0x35a   : > { %v3784_v40 = vadd.f32 %v5993_v48, %v3672_v60  ;;  %v10084_v54 = vpop.xlane.xlu0 %2761  ;;  %v1627_v5 = vrot.slane %v9758_v62, %v10002_v41  ;;  %v1640_v56 = vrot.slane %v9818_v33, %v10011_v23  ;;  %v1649_v46 = vrot.slane %v9956_v1, %v10011_v23 }
 0x35b   : > { %v3881_v32 = vadd.f32 %v3865_v24, %v9910_v31  ;;  %v1579_v31 = vpop.xlane.xlu1 %1578  ;;  %v3832_v37 = vadd.f32 %v3816_v21, %v3720_v45  ;;  %v1645_v60 = vrot.slane %v9958_v10, %v10002_v41  ;;  %v1658_v27 = vrot.slane %v10025_v17, %v10011_v23 }
 0x35c   : > { %5996 = vlog2.f32 %v3784_v40  ;;  %v1667_v30 = vrot.slane %v1579_v31, %v10011_v23  ;;  %v1663_v33 = vrot.slane %v1576_v51, %v10002_v41  ;;  %vm1688_vm10 = vcmask 1046534  }
 0x35d   : > { %v3897_v20 = vsub.f32 %v3881_v32, %v3833_v18  ;;  %v1636_v18 = vrot.slane %v9820_v22, %v10002_v41  ;;  %v1650_v1 = vsel %vm1613_vm12, %v1649_v46, %v1645_v60  ;;  %vm1690_vm11 = vcmask 1047559  }
 0x35e   : > { %v1668_v40 = vsel %vm1613_vm12, %v1667_v30, %v1663_v33  ;;  %vm1693_vm14 = vcmask 130048   ;;  %v2804_v3 = vrot.slane %v9733_v7, %v10011_v23  ;;  %v2809_v11 = vrot.slane %v9793_v61, %v10002_v41 }
 0x35f   : > { %v3943_v36 = vsel %vm1537_vm5, %v3897_v20, 0.0  ;;  %v10081_v42 = vpop.xlane.xlu1 %2764  ;;  %v1641_v22 = vsel %vm1613_vm12, %v1640_v56, %v1636_v18  ;;  %v2795_v31 = vrot.slane %v9692_v34, %v10011_v23  ;;  %v2791_v47 = vrot.slane %v9694_v44, %v10002_v41  ;;  %v506_v56 = vld [vmem:[%s429_s10] sm:$0xff] }
 0x360   : > { %3944 = vadd.xlane.f32.xlu1 %v3943_v36  ;;  %v2813_v36 = vrot.slane %v9791_v9, %v10011_v23  ;;  %v2822_v45 = vrot.slane %v9861_v13, %v10011_v23  ;;  %v2818_v7 = vrot.slane %v9863_v49, %v10002_v41  ;;  %v10294_v9 = vld [vmem:[#allocation20_spill] sm:$0xff]  ;;  %v2840_v34 = vrot.slane %v10045_v35, %v10011_v23 }
 0x361   : > { %v2827_v51 = vrot.slane %v10294_v9, %v10002_v41  ;;  %v2836_v44 = vrot.slane %v10047_v50, %v10002_v41  ;;  %v2849_v13 = vrot.slane %v10081_v42, %v10011_v23  ;;  %v2845_v49 = vrot.slane %v10084_v54, %v10002_v41 }
 0x362   : > { %v2814_v21 = vsel %vm1613_vm12, %v2813_v36, %v2809_v11  ;;  %vm4058_vm15 = vcmp.eq.s32.totalorder %v9983_v26, 5  ;;  %vm4070_vm0 = vcmp.eq.s32.totalorder %v9983_v26, 6 }
 0x363   : > { %v2850_v54 = vsel %vm1613_vm12, %v2849_v13, %v2845_v49 }
 0x365   : > { %v3927_v15 = vpop.xlane.xlu1 %3926 }
 0x366   : > { %v5997_v57 = vpop.eup %5996  ;;  %v4005_v29 = vrot.slane %v3927_v15, %v10011_v23 }
 0x367   : > { %v3863_v12 = vmul.f32 0.6931472, %v5997_v57  ;;  %v2796_v57 = vsel %vm1613_vm12, %v2795_v31, %v2791_v47 }
 0x369   : > { %v3880_v0 = vadd.f32 %v3863_v12, %v9976_v55  ;;  %v1631_v55 = vrot.slane %v9756_v28, %v10011_v23  ;;  %v1654_v28 = vrot.slane %v10027_v16, %v10002_v41 }
 0x36b   : > { %v3896_v52 = vsub.f32 %v3880_v0, %v3832_v37  ;;  %v1632_v62 = vsel %vm1613_vm12, %v1631_v55, %v1627_v5  ;;  %v1659_v4 = vsel %vm1613_vm12, %v1658_v27, %v1654_v28  ;;  %v2823_v37 = vsel %vm1613_vm12, %v2822_v45, %v2818_v7 }
 0x36c   : > { %v1681_v10 = vsel %vm1680_vm4, %v1632_v62, %v10036_v25  ;;  %v2841_v0 = vsel %vm1613_vm12, %v2840_v34, %v2836_v44 }
 0x36d   : > { %v3940_v48 = vsel %vm1537_vm5, %v3896_v52, 0.0  ;;  %vm1686_vm5 = vcmask 1045509   ;;  %v1683_v16 = vsel %vm1682_vm7, %v1641_v22, %v1681_v10 }
 0x36e   : > { %3941 = vadd.xlane.f32.xlu0 %v3940_v48  ;;  %v1685_v32 = vsel %vm1684_vm9, %v1650_v1, %v1683_v16 }
 0x36f   : > { %v1687_v8 = vsel %vm1686_vm5, %v1659_v4, %v1685_v32 }
 0x370   : > { %v1689_v53 = vsel %vm1688_vm10, %v1668_v40, %v1687_v8  ;;  %v6234_v8 = vmov 4  }
 0x371   : > { %5321 = vset.pattern.permute.xlu1 %v6234_v8 }
 0x372   : > { %v3924_v63 = vpop.xlane.xlu0 %3923 }
 0x373   : > { %v4001_v2 = vrot.slane %v3924_v63, %v10002_v41 }
 0x375   : > { %v4006_v43 = vsel %vm1613_vm12, %v4005_v29, %v4001_v2 }
 0x376   : > { %v10091_v58 = vsel %vm1684_vm9, %v4006_v43, %v4036_v59  ;;  %v2800_v59 = vrot.slane %v9735_v14, %v10002_v41  ;;  %v2831_v14 = vrot.slane %v9978_v19, %v10011_v23 }
 0x378   : > { %v2805_v61 = vsel %vm1613_vm12, %v2804_v3, %v2800_v59  ;;  %v2832_v35 = vsel %vm1613_vm12, %v2831_v14, %v2827_v51 }
 0x379   : > { %v2860_v12 = vsel %vm1678_vm13, %v2805_v61, %v2796_v57  ;;  %vm4050_vm13 = vcmp.eq.s32.totalorder %v9983_v26, 4 }
 0x37a   : > { %v2861_v50 = vsel %vm1680_vm4, %v2814_v21, %v2860_v12 }
 0x37b   : > { %v2862_v52 = vsel %vm1682_vm7, %v2823_v37, %v2861_v50 }
 0x37c   : > { %v2863_v48 = vsel %vm1684_vm9, %v2832_v35, %v2862_v52 }
 0x37d   : > { %v2864_v63 = vsel %vm1686_vm5, %v2841_v0, %v2863_v48 }
 0x37e   : > { %v2865_v43 = vsel %vm1688_vm10, %v2850_v54, %v2864_v63 }
 0x380   : > { %v1585_v24 = vpop.xlane.xlu1 %1584 }
 0x381   : > { %v1676_v17 = vrot.slane %v1585_v24, %v10011_v23 }
 0x38e   : > { %v1582_v38 = vpop.xlane.xlu0 %1581 }
 0x38f   : > { %v1672_v6 = vrot.slane %v1582_v38, %v10002_v41 }
 0x391   : > { %v1677_v25 = vsel %vm1613_vm12, %v1676_v17, %v1672_v6 }
 0x392   : > { %v1691_v39 = vsel %vm1690_vm11, %v1677_v25, %v1689_v53 }
 0x393   : > { %v1694_v20 = vsel %vm1693_vm14, %v1691_v39, 0.0 }
 0x394   : > { %1695 = vadd.xlane.f32.xlu0 %v1694_v20  ;;  %v4267_v20 = vld [vmem:[#allocation7] ss:$0 sm:$0xff] }
 0x39c   : > { %v2771_v19 = vpop.xlane.xlu1 %2770 }
 0x39d   : > { %v2858_v42 = vrot.slane %v2771_v19, %v10011_v23 }
 0x3aa   : > { %v2768_v15 = vpop.xlane.xlu0 %2767 }
 0x3ab   : > { %v2854_v29 = vrot.slane %v2768_v15, %v10002_v41 }
 0x3ad   : > { %v2859_v2 = vsel %vm1613_vm12, %v2858_v42, %v2854_v29 }
 0x3ae   : > { %v2866_v55 = vsel %vm1690_vm11, %v2859_v2, %v2865_v43 }
 0x3af   : > { %v2868_v5 = vsel %vm1693_vm14, %v2866_v55, 0.0 }
 0x3b0   : > { %2869 = vadd.xlane.f32.xlu1 %v2868_v5 }
 0x3b7   : > { %v3933_v18 = vpop.xlane.xlu1 %3932 }
 0x3b8   : > { %v4014_v28 = vrot.slane %v3933_v18, %v10011_v23 }
 0x3c1   : > { %508 = vrot.lane.b32.xlu1 %v506_v56, %s6233_s1 }
 0x3c5   : > { %v3930_v46 = vpop.xlane.xlu0 %3929 }
 0x3c6   : > { %v4010_v62 = vrot.slane %v3930_v46, %v10002_v41 }
 0x3c8   : > { %v4015_v22 = vsel %vm1613_vm12, %v4014_v28, %v4010_v62 }
 0x3c9   : > { %v4038_v16 = vsel %vm1686_vm5, %v4015_v22, %v10091_v58 }
 0x3d2   : > { %v3939_v60 = vpop.xlane.xlu1 %3938 }
 0x3d3   : > { %v4023_v30 = vrot.slane %v3939_v60, %v10011_v23 }
 0x3e0   : > { %v3936_v27 = vpop.xlane.xlu0 %3935 }
 0x3e1   : > { %v4019_v33 = vrot.slane %v3936_v27, %v10002_v41 }
 0x3e3   : > { %v4024_v10 = vsel %vm1613_vm12, %v4023_v30, %v4019_v33 }
 0x3e4   : > { %v4039_v38 = vsel %vm1688_vm10, %v4024_v10, %v4038_v16 }
 0x3ed   : > { %v3945_v24 = vpop.xlane.xlu1 %3944 }
 0x3ee   : > { %v4032_v1 = vrot.slane %v3945_v24, %v10011_v23  ;;  %v4047_v23 = vld [vmem:[%s435_s11] sm:$0xff] }
 0x3fb   : > { %v3942_v4 = vpop.xlane.xlu0 %3941 }
 0x3fc   : > { %v4028_v17 = vrot.slane %v3942_v4, %v10002_v41  ;;  %v6235_v41 = vmov 0  }
 0x3fd   : > { %5323 = vset.pattern.permute.xlu0 %v6235_v41 }
 0x3fe   : > { %v4033_v40 = vsel %vm1613_vm12, %v4032_v1, %v4028_v17  ;;  %vm4048_vm12 = vcmp.lt.s32.totalorder %v9983_v26, 4 }
 0x3ff   : > { %v4040_v32 = vsel %vm1690_vm11, %v4033_v40, %v4039_v38 }
 0x400   : > { %v4042_v6 = vsel %vm1693_vm14, %v4040_v32, 0.0 }
 0x401   : > { %4043 = vadd.xlane.f32.xlu0 %v4042_v6 }
 0x417   : > { %4060 = vrot.lane.b32.xlu0 %v4047_v23, %s6233_s1 }
 0x41d   : > { %v499_v58 = vpop.f32.mrb[0].mxu0 }
 0x41e   : > { %v5227_v25 = vpop.f32.mrb[1].mxu0  ;;  %v500_v3 = vadd.f32 %v4267_v20, %v499_v58 }
 0x41f   : > { %v502_v53 = vpop.f32.mrb[2].mxu0 }
 0x420   : > { %v5228_v39 = vpop.f32.mrb[3].mxu0  ;;  %5998 = vtanh.f32 %v500_v3  ;;  %v4049_v13 = vsel %vm4048_vm12, %v500_v3, 0.0 }
 0x421   : > { %v1696_v31 = vpop.xlane.xlu0 %1695 }
 0x42a   : > { %v5999_v36 = vpop.eup %5998 }
 0x43d   : > { %v2870_v59 = vpop.xlane.xlu1 %2869 }
 0x43e   : > { %v2871_v45 = vadd.f32 %v2870_v59, %v1696_v31 }
 0x441   : > { %v509_v11 = vpop.permute.xlu1 %508 }
 0x442   : > { %v511_v47 = vsub.f32 %v5999_v36, %v509_v11 }
 0x444   : > { %v512_v14 = vmul.f32 %v511_v47, %v511_v47 }
 0x48e   : > { %v4044_v7 = vpop.xlane.xlu0 %4043 }
 0x48f   : > { %v4045_v9 = vadd.f32 %v4044_v7, %v2871_v45 }
 0x491   : > { %v4046_v34 = vmul.f32 0.00043402778, %v4045_v9 }
 0x492   : > { %v4061_v51 = vpop.permute.xlu0 %4060 }
 0x493   : > { %v4063_v61 = vmul.f32 %v4061_v51, %v512_v14  ;;  %v4051_v44 = vmul.f32 %v4047_v23, %v4046_v34 }
 0x495   : > { %4066 = vperm.xlu1 %5321, %v4063_v61  }
 0x499   : > { %5322 = vset.pattern.permute.xlu1 %v6235_v41 }
 0x49a   : > { %4054 = vperm.xlu1 %5322, %v4051_v44  }
 0x49e   : > { %4072 = vperm.xlu1 %5322, %v4047_v23  }
 0x514   : > { %v4067_v21 = vpop.permute.xlu1 %4066 }
 0x519   : > { %v4055_v49 = vpop.permute.xlu1 %4054 }
 0x51a   : > { %v4057_v19 = vsel %vm4050_vm13, %v4055_v49, %v4049_v13 }
 0x51b   : > { %v4069_v57 = vsel %vm4058_vm15, %v4067_v21, %v4057_v19 }
 0x51d   : > { %v4073_v37 = vpop.permute.xlu1 %4072 }
 0x51e   : > { %v4075_v12 = vsel %vm4070_vm0, %v4073_v37, %v4069_v57 }
 0x51f   : > { %4076 = vst [vmem:[%s425_s19] sm:$0xff] %v4075_v12 }
 0x520   : > { %6159 = shalt.err (!%p6156_p3)
}
 0x521   : > { %s6160_s26 = scalar_lea.hbm %s10204_s17, 128  ;;  %s6164_s10 = scalar_lea.hbm %s10255_s7, 256 }
 0x522   : > { %p6161_p7 = scmp.ne.s32.totalorder %s10204_s17, %s6160_s26  ;;  %p6165_p11 = scmp.lt.u32.totalorder %s10204_s17, %s10255_s7 }
 0x523   : > { %p6166_p2 = scmp.lt.u32.totalorder %s6164_s10, %s6160_s26  ;;  %p6168_p9 = scmp.lt.u32.totalorder %s6160_s26, %s10204_s17 }
 0x524   : > { %p6162_p12 = pnand %p6161_p7, %p10295_p10 }
 0x525   : > { %p6167_p0 = por %p6166_p2, %p6165_p11 }
 0x526   : > { %p6163_p13 = pneg %p6162_p12 }
 0x527   : > { %p6169_p8 = por %p6168_p9, %p6167_p0 }
 0x529   : > { %p6170_p4 = pnand %p6169_p8, %p6163_p13 }
 0x52b   : > { %6173 = shalt.err (!%p6170_p4)
}
 0x52c   : > { %5249 = dma.vmem_to_hbm [thread:$0]  (%p10295_p10), %s10206_s15, 128, %s10204_s17, %s4078_s30  }
 0x52d PF: > { %s10296_s9 = sld [smem:[#allocation19_spill]]  ;;  %s4103_s11 = sand.u32 1, %s6208_s24  }
 0x52e   : > { %p10298_p1 = scmp.ge.s32.totalorder %s6220_s27, 2  ;;  %s4104_s21 = scalar_lea.sflag [#allocation4], %s4103_s11 }
 0x533   : > { %p10297_p6 = scmp.ne.s32.totalorder %s10296_s9, 0 }
 0x535   : > { %p5269_p5 = pnand %p10298_p1, %p10297_p6 }
 0x537   : > { %6203 = dma.done.wait (!%p5269_p5), %s4104_s21, 128  }
 0x538   : > { %6205 = vsyncadd (!%p5269_p5), %s4104_s21, 4294967168  ;;  %s10299_s27 = sld [smem:[#allocation17_spill]]  ;;  %s10300_s8 = sld [smem:[#allocation16_spill]] }
 0x539   : > { %s10301_s26 = sld [smem:[#allocation18_spill]]  ;;  %s10302_s24 = smov %s6212_s25 }
 0x53e   : > { %p24_p3 = scmp.ge.s32.totalorder %s10299_s27, 4   ;;  %s10303_s25 = smov %s10300_s8 }
 0x540   :  { %26 = sbr.rel (!%p24_p3) target bundleno = 10 (0xa), region = 135 }
 0x547   :  { %4109 = vsyncpa [#allocation3], 1 }
 0x548   :  { %4111 = vsyncpa [#allocation3 + $0x1], 1 }
 0x549   :  { %4112 = vsyncpa [#allocation6], 1 }
 0x54a   :  { %4113 = vsyncpa [#allocation9], 1 }
 0x54b   :  { %4115 = vsyncpa [#allocation9 + $0x1], 1 }
 0x54c   :  { %4116 = vsyncpa [#allocation4], 1 }
 0x54d   :  { %4118 = vsyncpa [#allocation4 + $0x1], 1 }

</bundles_post_ra>
